<compile_context>
chip_gen: v7x
topology: tpu7x:2x2x1
jax: 0.10.0
libtpu: 0.0.40
codegen_flags: <defaults>
</compile_context>

<pallas_src>
import jax
import jax.numpy as jnp
from jax.experimental import pallas as pl
from jax.experimental.pallas import tpu as pltpu


def _round_up(v, m):
    return ((v + m - 1) // m) * m


# ----------------------------- fused Pallas kernel ---------------------------

def _make_rdb_kernel(H, W, dim, growth, num_layers, c_pad, w_pad):
    g = growth
    L = num_layers

    def kernel(x_ref, wd_ref, bd_ref, wf_ref, bf_ref, out_ref, feat_ref):
        # One-time scratch init per core / per outer parallel index.  Axis 1 is
        # "arbitrary": every core runs j == 0 first for each i it owns, so this
        # is safe under megacore sharding of axis 0.  The border and the lanes
        # >= c_total are never written afterwards, so they stay zero.
        @pl.when(pl.program_id(1) == 0)
        def _init():
            feat_ref[...] = jnp.zeros_like(feat_ref)

        # Stage this step's input slice into the frame interior
        # (rows 1..H, cols 2..W+1, lanes 0..dim).
        x_hw = x_ref[0]                                            # (H, W, dim) f32
        feat_ref[1:H + 1, 2:W + 2, 0:dim] = x_hw.astype(jnp.bfloat16)

        m_pad = (H + 2) * w_pad

        # Dense layers: one batched-tap matmul per layer over the zero-bordered
        # frame, then fold the 9 shifted growth-wide slabs, bias, LeakyReLU and
        # write the new channels back into the frame (== torch.cat on channels).
        for l in range(L):
            frame = feat_ref[...].reshape(m_pad, c_pad)            # bf16 LHS
            y = jax.lax.dot_general(
                frame, wd_ref[l],
                dimension_numbers=(((1,), (0,)), ((), ())),
                preferred_element_type=jnp.float32)                # (m_pad, 9*g) f32
            y = y.reshape(H + 2, w_pad, 9 * g)

            bias = bd_ref[l:l + 1, :].reshape(1, 1, g)             # f32
            acc = jnp.broadcast_to(bias, (H, W, g))
            for dx in range(3):
                # sum the three dy taps (leading-dim slices, cheap), then shift
                # the growth-wide column sum by dx and accumulate.
                cs = (y[0:H,     :, (dx + 0) * g:(dx + 1) * g]
                      + y[1:H + 1, :, (dx + 3) * g:(dx + 4) * g]
                      + y[2:H + 2, :, (dx + 6) * g:(dx + 7) * g])  # (H, w_pad, g)
                acc = acc + cs[:, dx + 1:dx + 1 + W, :]
            act = jnp.where(acc > 0, acc, 0.2 * acc)               # LeakyReLU(0.2)
            off = dim + l * g
            feat_ref[1:H + 1, 2:W + 2, off:off + g] = act.astype(jnp.bfloat16)

        # Final 1x1 conv over the concatenated features + bias + exact f32 residual.
        frame = feat_ref[...].reshape(m_pad, c_pad)
        yf = jax.lax.dot_general(
            frame, wf_ref[...],
            dimension_numbers=(((1,), (0,)), ((), ())),
            preferred_element_type=jnp.float32)                    # (m_pad, dim)
        yf = yf.reshape(H + 2, w_pad, dim)[1:H + 1, 2:W + 2, :]
        out_ref[0] = yf + bf_ref[0:1, :].reshape(1, 1, dim) + x_hw

    return kernel


# ------------------------------ wrappers --------------------------------------

def _prepare_params(params, dim, growth, num_layers, c_pad):
    """Pack weights: taps along the output axis, input channels zero-padded to c_pad."""
    wds, bds = [], []
    for (w, b) in params["dense"]:                    # w: (3,3,cin,growth)
        cin = w.shape[2]
        wcat = jnp.transpose(w, (2, 0, 1, 3)).reshape(cin, 9 * growth)
        wp = jnp.zeros((c_pad, 9 * growth), jnp.float32).at[:cin, :].set(wcat)
        wds.append(wp)
        bds.append(b)
    wd = jnp.stack(wds).astype(jnp.bfloat16)          # (L, c_pad, 9*growth)
    bd = jnp.concatenate(bds, axis=0).astype(jnp.float32)   # (L, growth)
    wf, bf = params["final"]                          # wf: (c_total, dim)
    c_total = wf.shape[0]
    wfp = jnp.zeros((c_pad, dim), jnp.float32).at[:c_total, :].set(wf)
    return wd, bd, wfp.astype(jnp.bfloat16), bf.astype(jnp.float32)


def rdb_forward(x_ncdhw, params):
    """x: (N, C, D, H, W) float32 -> (N, C, D, H, W)."""
    N, C, D, H, W = x_ncdhw.shape
    L = len(params["dense"])
    growth = params["dense"][0][0].shape[-1]
    dim = C
    c_total = dim + growth * L
    c_pad = _round_up(c_total, 128)       # lane-dense contraction axis
    w_pad = _round_up(W + 4, 16)          # 2 zero cols left, >=2 right; bf16-tile aligned
    B = N * D

    # Outer axis "parallel" with >=2 steps when possible (feeds both v7x cores);
    # inner axis "arbitrary" so the one-time scratch init at j==0 is safe.
    c0 = 2 if (B % 2 == 0 and B >= 2) else 1
    c1 = B // c0

    # NCDHW -> (N*D, H, W, C): the conv kernel is [1,3,3], so D behaves as batch.
    x = jnp.transpose(x_ncdhw, (0, 2, 3, 4, 1)).reshape(B, H, W, C)
    wd, bd, wfp, bf = _prepare_params(params, dim, growth, L, c_pad)

    kernel = _make_rdb_kernel(H, W, dim, growth, L, c_pad, w_pad)

    # Explicit scoped-VMEM limit (v5e default is 16 MiB, v6e/v7x 32 MiB), capped
    # at 64 MiB so it never exceeds v7x's physical VMEM.
    frame_bytes = (H + 2) * w_pad * c_pad * 2
    io_bytes = 2 * 2 * (H * W * dim * 4)                       # in+out, double-buffered
    wgt_bytes = 2 * (L * c_pad * 9 * growth + c_pad * dim) * 2
    need = frame_bytes + io_bytes + wgt_bytes + (2 << 20)
    vmem_limit = int(min(max(2 * need, 32 << 20), 64 << 20))

    y = pl.pallas_call(
        kernel,
        out_shape=jax.ShapeDtypeStruct((B, H, W, dim), jnp.float32),
        grid_spec=pltpu.PrefetchScalarGridSpec(
            num_scalar_prefetch=0,
            grid=(c0, c1),
            in_specs=[
                pl.BlockSpec((1, H, W, dim), lambda i, j: (i * c1 + j, 0, 0, 0)),
                pl.BlockSpec((L, c_pad, 9 * growth), lambda i, j: (0, 0, 0)),
                pl.BlockSpec((L, growth), lambda i, j: (0, 0)),
                pl.BlockSpec((c_pad, dim), lambda i, j: (0, 0)),
                pl.BlockSpec((1, dim), lambda i, j: (0, 0)),
            ],
            out_specs=pl.BlockSpec((1, H, W, dim), lambda i, j: (i * c1 + j, 0, 0, 0)),
            scratch_shapes=[pltpu.VMEM((H + 2, w_pad, c_pad), jnp.bfloat16)],
        ),
        compiler_params=pltpu.CompilerParams(
            dimension_semantics=("parallel", "arbitrary"),
            vmem_limit_bytes=vmem_limit,
        ),
    )(x, wd, bd, wfp, bf)

    # back to NCDHW
    return y.reshape(N, D, H, W, C).transpose(0, 4, 1, 2, 3)


def init_rdb_params(key, dim, growth_rate, num_dense_layer):
    params = {"dense": [], "final": None}
    for i in range(num_dense_layer):
        cin = dim + growth_rate * i
        key, kw, kb = jax.random.split(key, 3)
        w = jax.random.normal(kw, (3, 3, cin, growth_rate), jnp.float32) * 0.1
        b = jax.random.normal(kb, (1, growth_rate), jnp.float32) * 0.1
        params["dense"].append((w, b))
    cin = dim + growth_rate * num_dense_layer
    key, kw, kb = jax.random.split(key, 3)
    wf = jax.random.normal(kw, (cin, dim), jnp.float32) * 0.1
    bf = jax.random.normal(kb, (1, dim), jnp.float32) * 0.1
    params["final"] = (wf, bf)
    return params


# ------------------------------ reference -------------------------------------

def rdb_forward_ref(x_ncdhw, params):
    """Pure-JAX f32 reference (lax.conv) used only for correctness checking."""
    N, C, D, H, W = x_ncdhw.shape
    x = jnp.transpose(x_ncdhw, (0, 2, 3, 4, 1)).reshape(N * D, H, W, C)
    out = x
    for (w, b) in params["dense"]:
        dn = jax.lax.conv_dimension_numbers(out.shape, w.shape, ("NHWC", "HWIO", "NHWC"))
        c = jax.lax.conv_general_dilated(out, w, (1, 1), "SAME", dimension_numbers=dn)
        c = c + b[0]
        c = jnp.where(c > 0, c, 0.2 * c)
        out = jnp.concatenate([out, c], axis=-1)
    wf, bf = params["final"]
    y = jnp.einsum("bhwi,io->bhwo", out, wf) + bf[0] + x
    return y.reshape(N, D, H, W, C).transpose(0, 4, 1, 2, 3)


# -------------------------------- main -----------------------------------------

if __name__ == "__main__":
    key = jax.random.PRNGKey(0)
    N, dim, D, H, W = 2, 4, 2, 16, 16
    growth_rate, num_dense_layer = 4, 2

    key, kx, kp = jax.random.split(key, 3)
    x = jax.random.normal(kx, (N, dim, D, H, W), jnp.float32)
    params = init_rdb_params(kp, dim, growth_rate, num_dense_layer)

    y = jax.jit(rdb_forward)(x, params)
    jax.block_until_ready(y)

    y_ref = rdb_forward_ref(x, params)
    assert y.shape == x.shape
    max_err = jnp.max(jnp.abs(y - y_ref))
    # bf16 matmul operands / bf16 feature scratch with f32 accumulation -> small
    # deviation vs the f32 reference.
    assert jnp.allclose(y, y_ref, rtol=3e-2, atol=3e-2), (
        f"mismatch vs reference (max abs err {max_err})")

    print("KERNEL_OK")
</pallas_src>

<mosaic_0001>
module attributes {stable_mosaic.version = 11 : i64} {
  func.func @kernel(%arg0: i32, %arg1: i32, %arg2: memref<1x16x16x4xf32, #tpu.memory_space<vmem>>, %arg3: memref<2x128x36xbf16, #tpu.memory_space<vmem>>, %arg4: memref<2x4xf32, #tpu.memory_space<vmem>>, %arg5: memref<128x4xbf16, #tpu.memory_space<vmem>>, %arg6: memref<1x4xf32, #tpu.memory_space<vmem>>, %arg7: memref<1x16x16x4xf32, #tpu.memory_space<vmem>>, %arg8: memref<18x32x128xbf16, #tpu.memory_space<vmem>>) attributes {dimension_semantics = [#tpu.dimension_semantics<parallel>, #tpu.dimension_semantics<arbitrary>], iteration_bounds = array<i64: 2, 2>, scalar_prefetch = 0 : i64, scratch_operands = 1 : i64, tpu.core_type = #tpu.core_type<tc>, window_params = [{transform_indices = @transform_0, window_bounds = array<i64: 1, 16, 16, 4>}, {pipeline_mode = #tpu.pipeline_mode<synchronous>, transform_indices = @transform_1, window_bounds = array<i64: 2, 128, 36>}, {pipeline_mode = #tpu.pipeline_mode<synchronous>, transform_indices = @transform_2, window_bounds = array<i64: 2, 4>}, {pipeline_mode = #tpu.pipeline_mode<synchronous>, transform_indices = @transform_3, window_bounds = array<i64: 128, 4>}, {pipeline_mode = #tpu.pipeline_mode<synchronous>, transform_indices = @transform_4, window_bounds = array<i64: 1, 4>}, {transform_indices = @transform_5, window_bounds = array<i64: 1, 16, 16, 4>}]} {
    %c0_i32 = arith.constant 0 : i32
    %0 = arith.cmpi eq, %arg1, %c0_i32 : i32
    %1 = arith.extui %0 : i1 to i32
    %c0_i32_0 = arith.constant 0 : i32
    %2 = arith.cmpi ne, %1, %c0_i32_0 : i32
    scf.if %2 {
      %cst_42 = arith.constant 0.000000e+00 : bf16
      %97 = vector.broadcast %cst_42 : bf16 to vector<18x32x128xbf16>
      %c0_43 = arith.constant 0 : index
      %c0_44 = arith.constant 0 : index
      %c0_45 = arith.constant 0 : index
      %98 = vector.load %arg8[%c0_43, %c0_44, %c0_45] : memref<18x32x128xbf16, #tpu.memory_space<vmem>>, vector<18x32x128xbf16>
      tpu.vector_store %arg8[%c0_43, %c0_44, %c0_45], %97 {strides = array<i32>} : memref<18x32x128xbf16, #tpu.memory_space<vmem>>, vector<18x32x128xbf16>,
    } else {
    }
    %c0 = arith.constant 0 : index
    %c0_1 = arith.constant 0 : index
    %c0_2 = arith.constant 0 : index
    %c0_3 = arith.constant 0 : index
    %3 = vector.load %arg2[%c0, %c0_1, %c0_2, %c0_3] : memref<1x16x16x4xf32, #tpu.memory_space<vmem>>, vector<1x16x16x4xf32>
    %4 = vector.shape_cast %3 : vector<1x16x16x4xf32> to vector<16x16x4xf32>
    %5 = arith.truncf %4 : vector<16x16x4xf32> to vector<16x16x4xbf16>
    %c1 = arith.constant 1 : index
    %c2 = arith.constant 2 : index
    %c0_4 = arith.constant 0 : index
    %6 = vector.load %arg8[%c1, %c2, %c0_4] : memref<18x32x128xbf16, #tpu.memory_space<vmem>>, vector<16x16x4xbf16>
    tpu.vector_store %arg8[%c1, %c2, %c0_4], %5 {strides = array<i32>} : memref<18x32x128xbf16, #tpu.memory_space<vmem>>, vector<16x16x4xbf16>,
    %c0_5 = arith.constant 0 : index
    %c0_6 = arith.constant 0 : index
    %c0_7 = arith.constant 0 : index
    %7 = vector.load %arg8[%c0_5, %c0_6, %c0_7] : memref<18x32x128xbf16, #tpu.memory_space<vmem>>, vector<18x32x128xbf16>
    %8 = vector.shape_cast %7 : vector<18x32x128xbf16> to vector<576x128xbf16>
    %c0_8 = arith.constant 0 : index
    %c0_9 = arith.constant 0 : index
    %c0_10 = arith.constant 0 : index
    %9 = vector.load %arg3[%c0_8, %c0_9, %c0_10] : memref<2x128x36xbf16, #tpu.memory_space<vmem>>, vector<1x128x36xbf16>
    %10 = vector.shape_cast %9 : vector<1x128x36xbf16> to vector<128x36xbf16>
    %cst = arith.constant dense<0.000000e+00> : vector<576x36xf32>
    %11 = tpu.matmul %8, %10, %cst {dimension_numbers = #tpu.dot_dimension_numbers<[1], [0], [0], [1], [0, 0, 1, 1], [], []>} : vector<576x128xbf16>, vector<128x36xbf16>, vector<576x36xf32> -> vector<576x36xf32>
    %12 = vector.shape_cast %11 : vector<576x36xf32> to vector<18x32x36xf32>
    %c0_11 = arith.constant 0 : index
    %c0_12 = arith.constant 0 : index
    %13 = vector.load %arg4[%c0_11, %c0_12] : memref<2x4xf32, #tpu.memory_space<vmem>>, vector<1x4xf32>
    %14 = vector.shape_cast %13 : vector<1x4xf32> to vector<1x1x4xf32>
    %15 = vector.shape_cast %14 : vector<1x1x4xf32> to vector<1x1x4xf32>
    %16 = vector.broadcast %15 : vector<1x1x4xf32> to vector<16x16x4xf32>
    %17 = vector.extract_strided_slice %12 {offsets = [0, 0, 0], sizes = [16, 32, 4], strides = [1, 1, 1]} : vector<18x32x36xf32> to vector<16x32x4xf32>
    %18 = vector.extract_strided_slice %12 {offsets = [1, 0, 12], sizes = [16, 32, 4], strides = [1, 1, 1]} : vector<18x32x36xf32> to vector<16x32x4xf32>
    %19 = arith.addf %17, %18 : vector<16x32x4xf32>
    %20 = vector.extract_strided_slice %12 {offsets = [2, 0, 24], sizes = [16, 32, 4], strides = [1, 1, 1]} : vector<18x32x36xf32> to vector<16x32x4xf32>
    %21 = arith.addf %19, %20 : vector<16x32x4xf32>
    %22 = vector.extract_strided_slice %21 {offsets = [0, 1, 0], sizes = [16, 16, 4], strides = [1, 1, 1]} : vector<16x32x4xf32> to vector<16x16x4xf32>
    %23 = arith.addf %16, %22 : vector<16x16x4xf32>
    %24 = vector.extract_strided_slice %12 {offsets = [0, 0, 4], sizes = [16, 32, 4], strides = [1, 1, 1]} : vector<18x32x36xf32> to vector<16x32x4xf32>
    %25 = vector.extract_strided_slice %12 {offsets = [1, 0, 16], sizes = [16, 32, 4], strides = [1, 1, 1]} : vector<18x32x36xf32> to vector<16x32x4xf32>
    %26 = arith.addf %24, %25 : vector<16x32x4xf32>
    %27 = vector.extract_strided_slice %12 {offsets = [2, 0, 28], sizes = [16, 32, 4], strides = [1, 1, 1]} : vector<18x32x36xf32> to vector<16x32x4xf32>
    %28 = arith.addf %26, %27 : vector<16x32x4xf32>
    %29 = vector.extract_strided_slice %28 {offsets = [0, 2, 0], sizes = [16, 16, 4], strides = [1, 1, 1]} : vector<16x32x4xf32> to vector<16x16x4xf32>
    %30 = arith.addf %23, %29 : vector<16x16x4xf32>
    %31 = vector.extract_strided_slice %12 {offsets = [0, 0, 8], sizes = [16, 32, 4], strides = [1, 1, 1]} : vector<18x32x36xf32> to vector<16x32x4xf32>
    %32 = vector.extract_strided_slice %12 {offsets = [1, 0, 20], sizes = [16, 32, 4], strides = [1, 1, 1]} : vector<18x32x36xf32> to vector<16x32x4xf32>
    %33 = arith.addf %31, %32 : vector<16x32x4xf32>
    %34 = vector.extract_strided_slice %12 {offsets = [2, 0, 32], sizes = [16, 32, 4], strides = [1, 1, 1]} : vector<18x32x36xf32> to vector<16x32x4xf32>
    %35 = arith.addf %33, %34 : vector<16x32x4xf32>
    %36 = vector.extract_strided_slice %35 {offsets = [0, 3, 0], sizes = [16, 16, 4], strides = [1, 1, 1]} : vector<16x32x4xf32> to vector<16x16x4xf32>
    %37 = arith.addf %30, %36 : vector<16x16x4xf32>
    %cst_13 = arith.constant 0.000000e+00 : f32
    %38 = vector.broadcast %cst_13 : f32 to vector<16x16x4xf32>
    %39 = arith.cmpf ogt, %37, %38 : vector<16x16x4xf32>
    %cst_14 = arith.constant 2.000000e-01 : f32
    %40 = vector.broadcast %cst_14 : f32 to vector<16x16x4xf32>
    %41 = arith.mulf %40, %37 : vector<16x16x4xf32>
    %42 = arith.select %39, %37, %41 : vector<16x16x4xi1>, vector<16x16x4xf32>
    %43 = arith.truncf %42 : vector<16x16x4xf32> to vector<16x16x4xbf16>
    %c1_15 = arith.constant 1 : index
    %c2_16 = arith.constant 2 : index
    %c4 = arith.constant 4 : index
    %44 = vector.load %arg8[%c1_15, %c2_16, %c4] : memref<18x32x128xbf16, #tpu.memory_space<vmem>>, vector<16x16x4xbf16>
    tpu.vector_store %arg8[%c1_15, %c2_16, %c4], %43 {strides = array<i32>} : memref<18x32x128xbf16, #tpu.memory_space<vmem>>, vector<16x16x4xbf16>,
    %c0_17 = arith.constant 0 : index
    %c0_18 = arith.constant 0 : index
    %c0_19 = arith.constant 0 : index
    %45 = vector.load %arg8[%c0_17, %c0_18, %c0_19] : memref<18x32x128xbf16, #tpu.memory_space<vmem>>, vector<18x32x128xbf16>
    %46 = vector.shape_cast %45 : vector<18x32x128xbf16> to vector<576x128xbf16>
    %c1_20 = arith.constant 1 : index
    %c0_21 = arith.constant 0 : index
    %c0_22 = arith.constant 0 : index
    %47 = vector.load %arg3[%c1_20, %c0_21, %c0_22] : memref<2x128x36xbf16, #tpu.memory_space<vmem>>, vector<1x128x36xbf16>
    %48 = vector.shape_cast %47 : vector<1x128x36xbf16> to vector<128x36xbf16>
    %cst_23 = arith.constant dense<0.000000e+00> : vector<576x36xf32>
    %49 = tpu.matmul %46, %48, %cst_23 {dimension_numbers = #tpu.dot_dimension_numbers<[1], [0], [0], [1], [0, 0, 1, 1], [], []>} : vector<576x128xbf16>, vector<128x36xbf16>, vector<576x36xf32> -> vector<576x36xf32>
    %50 = vector.shape_cast %49 : vector<576x36xf32> to vector<18x32x36xf32>
    %c1_24 = arith.constant 1 : index
    %c0_25 = arith.constant 0 : index
    %51 = vector.load %arg4[%c1_24, %c0_25] : memref<2x4xf32, #tpu.memory_space<vmem>>, vector<1x4xf32>
    %52 = vector.shape_cast %51 : vector<1x4xf32> to vector<1x1x4xf32>
    %53 = vector.shape_cast %52 : vector<1x1x4xf32> to vector<1x1x4xf32>
    %54 = vector.broadcast %53 : vector<1x1x4xf32> to vector<16x16x4xf32>
    %55 = vector.extract_strided_slice %50 {offsets = [0, 0, 0], sizes = [16, 32, 4], strides = [1, 1, 1]} : vector<18x32x36xf32> to vector<16x32x4xf32>
    %56 = vector.extract_strided_slice %50 {offsets = [1, 0, 12], sizes = [16, 32, 4], strides = [1, 1, 1]} : vector<18x32x36xf32> to vector<16x32x4xf32>
    %57 = arith.addf %55, %56 : vector<16x32x4xf32>
    %58 = vector.extract_strided_slice %50 {offsets = [2, 0, 24], sizes = [16, 32, 4], strides = [1, 1, 1]} : vector<18x32x36xf32> to vector<16x32x4xf32>
    %59 = arith.addf %57, %58 : vector<16x32x4xf32>
    %60 = vector.extract_strided_slice %59 {offsets = [0, 1, 0], sizes = [16, 16, 4], strides = [1, 1, 1]} : vector<16x32x4xf32> to vector<16x16x4xf32>
    %61 = arith.addf %54, %60 : vector<16x16x4xf32>
    %62 = vector.extract_strided_slice %50 {offsets = [0, 0, 4], sizes = [16, 32, 4], strides = [1, 1, 1]} : vector<18x32x36xf32> to vector<16x32x4xf32>
    %63 = vector.extract_strided_slice %50 {offsets = [1, 0, 16], sizes = [16, 32, 4], strides = [1, 1, 1]} : vector<18x32x36xf32> to vector<16x32x4xf32>
    %64 = arith.addf %62, %63 : vector<16x32x4xf32>
    %65 = vector.extract_strided_slice %50 {offsets = [2, 0, 28], sizes = [16, 32, 4], strides = [1, 1, 1]} : vector<18x32x36xf32> to vector<16x32x4xf32>
    %66 = arith.addf %64, %65 : vector<16x32x4xf32>
    %67 = vector.extract_strided_slice %66 {offsets = [0, 2, 0], sizes = [16, 16, 4], strides = [1, 1, 1]} : vector<16x32x4xf32> to vector<16x16x4xf32>
    %68 = arith.addf %61, %67 : vector<16x16x4xf32>
    %69 = vector.extract_strided_slice %50 {offsets = [0, 0, 8], sizes = [16, 32, 4], strides = [1, 1, 1]} : vector<18x32x36xf32> to vector<16x32x4xf32>
    %70 = vector.extract_strided_slice %50 {offsets = [1, 0, 20], sizes = [16, 32, 4], strides = [1, 1, 1]} : vector<18x32x36xf32> to vector<16x32x4xf32>
    %71 = arith.addf %69, %70 : vector<16x32x4xf32>
    %72 = vector.extract_strided_slice %50 {offsets = [2, 0, 32], sizes = [16, 32, 4], strides = [1, 1, 1]} : vector<18x32x36xf32> to vector<16x32x4xf32>
    %73 = arith.addf %71, %72 : vector<16x32x4xf32>
    %74 = vector.extract_strided_slice %73 {offsets = [0, 3, 0], sizes = [16, 16, 4], strides = [1, 1, 1]} : vector<16x32x4xf32> to vector<16x16x4xf32>
    %75 = arith.addf %68, %74 : vector<16x16x4xf32>
    %cst_26 = arith.constant 0.000000e+00 : f32
    %76 = vector.broadcast %cst_26 : f32 to vector<16x16x4xf32>
    %77 = arith.cmpf ogt, %75, %76 : vector<16x16x4xf32>
    %cst_27 = arith.constant 2.000000e-01 : f32
    %78 = vector.broadcast %cst_27 : f32 to vector<16x16x4xf32>
    %79 = arith.mulf %78, %75 : vector<16x16x4xf32>
    %80 = arith.select %77, %75, %79 : vector<16x16x4xi1>, vector<16x16x4xf32>
    %81 = arith.truncf %80 : vector<16x16x4xf32> to vector<16x16x4xbf16>
    %c1_28 = arith.constant 1 : index
    %c2_29 = arith.constant 2 : index
    %c8 = arith.constant 8 : index
    %82 = vector.load %arg8[%c1_28, %c2_29, %c8] : memref<18x32x128xbf16, #tpu.memory_space<vmem>>, vector<16x16x4xbf16>
    tpu.vector_store %arg8[%c1_28, %c2_29, %c8], %81 {strides = array<i32>} : memref<18x32x128xbf16, #tpu.memory_space<vmem>>, vector<16x16x4xbf16>,
    %c0_30 = arith.constant 0 : index
    %c0_31 = arith.constant 0 : index
    %c0_32 = arith.constant 0 : index
    %83 = vector.load %arg8[%c0_30, %c0_31, %c0_32] : memref<18x32x128xbf16, #tpu.memory_space<vmem>>, vector<18x32x128xbf16>
    %84 = vector.shape_cast %83 : vector<18x32x128xbf16> to vector<576x128xbf16>
    %c0_33 = arith.constant 0 : index
    %c0_34 = arith.constant 0 : index
    %85 = vector.load %arg5[%c0_33, %c0_34] : memref<128x4xbf16, #tpu.memory_space<vmem>>, vector<128x4xbf16>
    %cst_35 = arith.constant dense<0.000000e+00> : vector<576x4xf32>
    %86 = tpu.matmul %84, %85, %cst_35 {dimension_numbers = #tpu.dot_dimension_numbers<[1], [0], [0], [1], [0, 0, 1, 1], [], []>} : vector<576x128xbf16>, vector<128x4xbf16>, vector<576x4xf32> -> vector<576x4xf32>
    %87 = vector.shape_cast %86 : vector<576x4xf32> to vector<18x32x4xf32>
    %88 = vector.extract_strided_slice %87 {offsets = [1, 2, 0], sizes = [16, 16, 4], strides = [1, 1, 1]} : vector<18x32x4xf32> to vector<16x16x4xf32>
    %c0_36 = arith.constant 0 : index
    %c0_37 = arith.constant 0 : index
    %89 = vector.load %arg6[%c0_36, %c0_37] : memref<1x4xf32, #tpu.memory_space<vmem>>, vector<1x4xf32>
    %90 = vector.shape_cast %89 : vector<1x4xf32> to vector<1x1x4xf32>
    %91 = vector.broadcast %90 : vector<1x1x4xf32> to vector<16x16x4xf32>
    %92 = arith.addf %88, %91 : vector<16x16x4xf32>
    %93 = arith.addf %92, %4 : vector<16x16x4xf32>
    %c0_38 = arith.constant 0 : index
    %c0_39 = arith.constant 0 : index
    %c0_40 = arith.constant 0 : index
    %c0_41 = arith.constant 0 : index
    %94 = vector.load %arg7[%c0_38, %c0_39, %c0_40, %c0_41] : memref<1x16x16x4xf32, #tpu.memory_space<vmem>>, vector<1x16x16x4xf32>
    %95 = vector.shape_cast %94 : vector<1x16x16x4xf32> to vector<16x16x4xf32>
    %96 = vector.shape_cast %93 : vector<16x16x4xf32> to vector<1x16x16x4xf32>
    tpu.vector_store %arg7[%c0_38, %c0_39, %c0_40, %c0_41], %96 {strides = array<i32>} : memref<1x16x16x4xf32, #tpu.memory_space<vmem>>, vector<1x16x16x4xf32>,
    return
  }
  func.func @transform_0(%arg0: i32, %arg1: i32) -> (i32, i32, i32, i32) {
    %c2_i32 = arith.constant 2 : i32
    %0 = arith.muli %arg0, %c2_i32 : i32
    %1 = arith.addi %0, %arg1 : i32
    %c0_i32 = arith.constant 0 : i32
    %c0_i32_0 = arith.constant 0 : i32
    %c0_i32_1 = arith.constant 0 : i32
    %c0_i32_2 = arith.constant 0 : i32
    return %1, %c0_i32, %c0_i32_0, %c0_i32_1 : i32, i32, i32, i32
  }
  func.func @transform_1(%arg0: i32, %arg1: i32) -> (i32, i32, i32) {
    %c0_i32 = arith.constant 0 : i32
    %c0_i32_0 = arith.constant 0 : i32
    %c0_i32_1 = arith.constant 0 : i32
    %c0_i32_2 = arith.constant 0 : i32
    return %c0_i32, %c0_i32_0, %c0_i32_1 : i32, i32, i32
  }
  func.func @transform_2(%arg0: i32, %arg1: i32) -> (i32, i32) {
    %c0_i32 = arith.constant 0 : i32
    %c0_i32_0 = arith.constant 0 : i32
    %c0_i32_1 = arith.constant 0 : i32
    return %c0_i32, %c0_i32_0 : i32, i32
  }
  func.func @transform_3(%arg0: i32, %arg1: i32) -> (i32, i32) {
    %c0_i32 = arith.constant 0 : i32
    %c0_i32_0 = arith.constant 0 : i32
    %c0_i32_1 = arith.constant 0 : i32
    return %c0_i32, %c0_i32_0 : i32, i32
  }
  func.func @transform_4(%arg0: i32, %arg1: i32) -> (i32, i32) {
    %c0_i32 = arith.constant 0 : i32
    %c0_i32_0 = arith.constant 0 : i32
    %c0_i32_1 = arith.constant 0 : i32
    return %c0_i32, %c0_i32_0 : i32, i32
  }
  func.func @transform_5(%arg0: i32, %arg1: i32) -> (i32, i32, i32, i32) {
    %c2_i32 = arith.constant 2 : i32
    %0 = arith.muli %arg0, %c2_i32 : i32
    %1 = arith.addi %0, %arg1 : i32
    %c0_i32 = arith.constant 0 : i32
    %c0_i32_0 = arith.constant 0 : i32
    %c0_i32_1 = arith.constant 0 : i32
    %c0_i32_2 = arith.constant 0 : i32
    return %1, %c0_i32, %c0_i32_0, %c0_i32_1 : i32, i32, i32, i32
  }
}

</mosaic_0001>

<bundles_post_ra>
// kernel: rdb_forward.1
= control target key start
LH: loop header
LB: loop body
LE: loop exit
PB: predicated region body
PF: predicated region fallthrough
CT: control target
= control target key end

     0   :  { %s5777_s18 = smov 0   ;;  %s5779_s19 = smov 0   ;;  %s8787_s0 = inlined_call_operand.vmem [shape: f32[4,16,16,4], index: 0, kind: input, shape index: {}]   ;;  %s8788_s1 = inlined_call_operand.vmem [shape: bf16[2,128,36], index: 1, kind: input, shape index: {}]   ;;  %s8789_s2 = inlined_call_operand.vmem [shape: f32[2,4], index: 2, kind: input, shape index: {}]   ;;  %s8790_s3 = inlined_call_operand.vmem [shape: bf16[128,4], index: 3, kind: input, shape index: {}]   ;;  %s8791_s4 = inlined_call_operand.vmem [shape: f32[1,4], index: 4, kind: input, shape index: {}]   ;;  %s8792_s5 = inlined_call_operand.vmem [shape: f32[4,16,16,4], index: 5, kind: output, shape index: {}]  }
   0x1   :  { %s5781_s20 = smov 0   ;;  %s5783_s21 = smov 0  }
   0x2   :  { %s5785_s22 = smov 0  }
   0x3 LB: > { %s24_s23 = sadd.s32 1, %s5730_s20  ;;  %s27_s24 = sadd.s32 1, %s5734_s21  ;;  %s5738_s22 = sphi %s5785_s22, %s15_s22   ;;  %s5734_s21 = sphi %s5783_s21, %s9165_s21   ;;  %s5730_s20 = sphi %s5781_s20, %s9164_s20   ;;  %s5726_s19 = sphi %s5779_s19, %s9163_s19   ;;  %s5722_s18 = sphi %s5777_s18, %s9162_s18  }
   0x4   : > { %p25_p0 = scmp.ge.s32.totalorder %s24_s23, 2  ;;  %p5128_p1 = scmp.ge.s32.totalorder %s5738_s22, 1 }
   0x5   : > { %p211_p2 = scmp.lt.s32.totalorder %s5738_s22, 5 }
   0x6   : > { %s9167_s23 = smov (%p25_p0, %s24_s23), 0  ;;  %s9169_s24 = smov (!%p25_p0, %s27_s24), %s5734_s21 }
   0x7   : > { %p212_p3 = pnand %p5128_p1, %p211_p2  ;;  %p29_p4 = scmp.ge.s32.totalorder %s9169_s24, 2 }
   0x9   : > { %s9171_s24 = smov (%p29_p4, %s9169_s24), 0  ;;  %215 = sbr.rel (%p212_p3) target bundleno = 1914 (0x77a), region = 40 }
  0x10   : > { %s5129_s25 = sshll.u32 %s5726_s19, 1  ;;  %p5135_p6 = scmp.ne.s32.totalorder %s5722_s18, 0 }
  0x11   : > { %s244_s26 = sadd.s32 %s5722_s18, %s5129_s25  ;;  %v5740_v0 = vmov (!%p5135_p6), 0  }
  0x12   : > { %p245_p5 = scmp.lt.s32.totalorder %s244_s26, 3  ;;  %265 = sbr.rel (%p5135_p6) target bundleno = 36 (0x24), region = 44  ;;  %266 = vst [vmem:[#allocation2] sm:$0xff] (!%p5135_p6), %v5740_v0  ;;  %267 = vst [vmem:[#allocation2 + $0x8] sm:$0xff] (!%p5135_p6), %v5740_v0 }
  0x13   : > { %268 = vst [vmem:[#allocation2 + $0x10] sm:$0xff] (!%p5135_p6), %v5740_v0  ;;  %269 = vst [vmem:[#allocation2 + $0x18] sm:$0xff] (!%p5135_p6), %v5740_v0 }
  0x14   : > { %s9173_s26 = smov (!%p245_p5, %s244_s26), 3  ;;  %270 = vst [vmem:[#allocation2 + $0x20] sm:$0xff] (!%p5135_p6), %v5740_v0  ;;  %271 = vst [vmem:[#allocation2 + $0x28] sm:$0xff] (!%p5135_p6), %v5740_v0 }
  0x15   : > { %s5181_s27 = sshll.u32 %s9173_s26, 8  ;;  %272 = vst [vmem:[#allocation2 + $0x30] sm:$0xff] (!%p5135_p6), %v5740_v0  ;;  %273 = vst [vmem:[#allocation2 + $0x38] sm:$0xff] (!%p5135_p6), %v5740_v0 }
  0x16   : > { %s5810_s30 = scalar_lea.vmem %s8787_s0, %s5181_s27  ;;  %s5815_s8 = scalar_lea.vmem %s8792_s5, %s5181_s27  ;;  %274 = vst [vmem:[#allocation2 + $0x40] sm:$0xff] (!%p5135_p6), %v5740_v0  ;;  %275 = vst [vmem:[#allocation2 + $0x48] sm:$0xff] (!%p5135_p6), %v5740_v0 }
  0x17   : > { %276 = vst [vmem:[#allocation2 + $0x50] sm:$0xff] (!%p5135_p6), %v5740_v0  ;;  %277 = vst [vmem:[#allocation2 + $0x58] sm:$0xff] (!%p5135_p6), %v5740_v0 }
  0x18   : > { %278 = vst [vmem:[#allocation2 + $0x60] sm:$0xff] (!%p5135_p6), %v5740_v0  ;;  %279 = vst [vmem:[#allocation2 + $0x68] sm:$0xff] (!%p5135_p6), %v5740_v0 }
  0x19   : > { %280 = vst [vmem:[#allocation2 + $0x70] sm:$0xff] %v5740_v0  ;;  %281 = vst [vmem:[#allocation2 + $0x78] sm:$0xff] %v5740_v0 }
  0x1a   : > { %282 = vst [vmem:[#allocation2 + $0x80] sm:$0xff] %v5740_v0  ;;  %283 = vst [vmem:[#allocation2 + $0x88] sm:$0xff] %v5740_v0 }
  0x1b   : > { %284 = vst [vmem:[#allocation2 + $0x90] sm:$0xff] %v5740_v0  ;;  %285 = vst [vmem:[#allocation2 + $0x98] sm:$0xff] %v5740_v0 }
  0x1c   : > { %286 = vst [vmem:[#allocation2 + $0xa0] sm:$0xff] %v5740_v0  ;;  %287 = vst [vmem:[#allocation2 + $0xa8] sm:$0xff] %v5740_v0 }
  0x1d   : > { %288 = vst [vmem:[#allocation2 + $0xb0] sm:$0xff] %v5740_v0  ;;  %289 = vst [vmem:[#allocation2 + $0xb8] sm:$0xff] %v5740_v0 }
  0x1e   : > { %290 = vst [vmem:[#allocation2 + $0xc0] sm:$0xff] %v5740_v0  ;;  %291 = vst [vmem:[#allocation2 + $0xc8] sm:$0xff] %v5740_v0 }
  0x1f   : > { %292 = vst [vmem:[#allocation2 + $0xd0] sm:$0xff] %v5740_v0  ;;  %293 = vst [vmem:[#allocation2 + $0xd8] sm:$0xff] %v5740_v0 }
  0x20   : > { %294 = vst [vmem:[#allocation2 + $0xe0] sm:$0xff] %v5740_v0  ;;  %295 = vst [vmem:[#allocation2 + $0xe8] sm:$0xff] %v5740_v0 }
  0x21   : > { %296 = vst [vmem:[#allocation2 + $0xf0] sm:$0xff] %v5740_v0  ;;  %297 = vst [vmem:[#allocation2 + $0xf8] sm:$0xff] %v5740_v0 }
  0x22   : > { %298 = vst [vmem:[#allocation2 + $0x100] sm:$0xff] %v5740_v0  ;;  %299 = vst [vmem:[#allocation2 + $0x108] sm:$0xff] %v5740_v0 }
  0x23   : > { %300 = vst [vmem:[#allocation2 + $0x110] sm:$0xff] %v5740_v0  ;;  %301 = vst [vmem:[#allocation2 + $0x118] sm:$0xff] %v5740_v0 }
  0x24 PF: > { %v5642_v1 = vld [vmem:[%s8788_s1] sm:$0xff]   ;;  %v5643_v2 = vld [vmem:[%s8788_s1 + $0x8] sm:$0xff]   ;;  %v5644_v3 = vld [vmem:[%s8788_s1 + $0x10] sm:$0xff]   ;;  %vm399_vm0 = vcmask 31745   ;;  %vm401_vm1 = vcmask 24576   ;;  %s5741_s6 = smov 116  }
  0x25   : > { %5579 = vmatprep.subr.bf16.mxu1 %v5642_v1  ;;  %5315 = vmatprep.subr.bf16.mxu0 %v5642_v1  ;;  %v5645_v4 = vld [vmem:[%s8788_s1 + $0x18] sm:$0xff]   ;;  %v318_v5 = vld [vmem:[%s5810_s30 + $0x80] sm:$0xff]  ;;  %v319_v6 = vld [vmem:[%s5810_s30 + $0x88] sm:$0xff]  ;;  %s5742_s7 = smov 104   ;;  %vm1372_vm2 = vcmask 1046528   ;;  %vm1645_vm3 = vcmask 1045504  }
  0x26   : > { %5587 = vmatpush3.bf16.msra.mxu1 %v5642_v1  ;;  %5316 = vmatpush3.bf16.msra.mxu0 %v5642_v1  ;;  %v433_v7 = vld [vmem:[#allocation2] sm:$0xff]  ;;  %v342_v8 = vpack.c.bf16 %v319_v6, %v318_v5  ;;  %v303_v10 = vld [vmem:[%s5810_s30 + $0x8] sm:$0xff]  ;;  %v320_v13 = vld [vmem:[%s5810_s30 + $0x90] sm:$0xff]  ;;  %s5743_s9 = smov 120   ;;  %s5744_s10 = smov 124  }
  0x27   : > { %5580 = vmatprep.subr.bf16.mxu1 %v5643_v2  ;;  %5317 = vmatprep.subr.bf16.mxu0 %v5643_v2  ;;  %v302_v9 = vld [vmem:[%s5810_s30] sm:$0xff]  ;;  %v321_v14 = vld [vmem:[%s5810_s30 + $0x98] sm:$0xff]  ;;  %v304_v15 = vld [vmem:[%s5810_s30 + $0x10] sm:$0xff]  ;;  %vm2094_vm7 = vsmask.f32 256  ;;  %s5745_s15 = smov 4  }
  0x28   : > { %5331 = vmatprep.mubr.bf16.mxu0 %v433_v7  ;;  %v5836_v11 = vld [vmem:[%s8788_s1 + $0x20] sm:$0xff]   ;;  %v334_v12 = vpack.c.bf16 %v303_v10, %v302_v9  ;;  %v374_v16 = vrot.slane %v342_v8, 7  ;;  %v343_v17 = vpack.c.bf16 %v321_v14, %v320_v13  ;;  %v305_v18 = vld [vmem:[%s5810_s30 + $0x18] sm:$0xff]  ;;  %v323_v20 = vld [vmem:[%s5810_s30 + $0xa8] sm:$0xff]  ;;  %s5746_s18 = smov 8  }
  0x29   : > { %v322_v19 = vld [vmem:[%s5810_s30 + $0xa0] sm:$0xff]  ;;  %v335_v22 = vpack.c.bf16 %v305_v18, %v304_v15  ;;  %v307_v25 = vld [vmem:[%s5810_s30 + $0x28] sm:$0xff]  ;;  %v324_v26 = vld [vmem:[%s5810_s30 + $0xb0] sm:$0xff] }
  0x2a   : > { %5588 = vmatpush3.bf16.msra.mxu1 %v5643_v2  ;;  %5318 = vmatpush3.bf16.msra.mxu0 %v5643_v2  ;;  %v366_v21 = vrot.slane %v334_v12, 7  ;;  %v344_v23 = vpack.c.bf16 %v323_v20, %v322_v19  ;;  %v306_v24 = vld [vmem:[%s5810_s30 + $0x20] sm:$0xff]  ;;  %417 = vst.msk [vmem:[#allocation2 + $0x90] sm:$0xfe] %vm399_vm0, %v374_v16  ;;  %v375_v27 = vrot.slane %v343_v17, 7  ;;  %v325_v29 = vld [vmem:[%s5810_s30 + $0xb8] sm:$0xff] }
  0x2b   : > { %5581 = vmatprep.subr.bf16.mxu1 %v5644_v3  ;;  %5319 = vmatprep.subr.bf16.mxu0 %v5644_v3  ;;  %418 = vst.msk [vmem:[#allocation2 + $0x98] sm:$0x1] %vm401_vm1, %v374_v16  ;;  %v336_v28 = vpack.c.bf16 %v307_v25, %v306_v24  ;;  %v308_v30 = vld [vmem:[%s5810_s30 + $0x30] sm:$0xff]  ;;  %v309_v31 = vld [vmem:[%s5810_s30 + $0x38] sm:$0xff]  ;;  %v5855_v32 = vld [vmem:[%s8788_s1 + $0x28] sm:$0xff]   ;;  %v367_v33 = vrot.slane %v335_v22, 7  ;;  %v345_v35 = vpack.c.bf16 %v325_v29, %v324_v26 }
  0x2c   : > { %400 = vst.msk [vmem:[#allocation2 + $0x10] sm:$0xfe] %vm399_vm0, %v366_v21  ;;  %v376_v34 = vrot.slane %v344_v23, 7  ;;  %v337_v36 = vpack.c.bf16 %v309_v31, %v308_v30  ;;  %v326_v37 = vld [vmem:[%s5810_s30 + $0xc0] sm:$0xff]  ;;  %v327_v38 = vld [vmem:[%s5810_s30 + $0xc8] sm:$0xff]  ;;  %v312_v43 = vld [vmem:[%s5810_s30 + $0x50] sm:$0xff] }
  0x2d   : > { %402 = vst.msk [vmem:[#allocation2 + $0x18] sm:$0x1] %vm401_vm1, %v366_v21  ;;  %v310_v39 = vld [vmem:[%s5810_s30 + $0x40] sm:$0xff]  ;;  %420 = vst.msk [vmem:[#allocation2 + $0xa8] sm:$0x1] %vm401_vm1, %v375_v27  ;;  %v368_v40 = vrot.slane %v336_v28, 7  ;;  %v346_v41 = vpack.c.bf16 %v327_v38, %v326_v37 }
  0x2e   : > { %5589 = vmatpush3.bf16.msra.mxu1 %v5644_v3  ;;  %5320 = vmatpush3.bf16.msra.mxu0 %v5644_v3  ;;  %419 = vst.msk [vmem:[#allocation2 + $0xa0] sm:$0xfe] %vm399_vm0, %v375_v27  ;;  %v311_v42 = vld [vmem:[%s5810_s30 + $0x48] sm:$0xff]  ;;  %v313_v44 = vld [vmem:[%s5810_s30 + $0x58] sm:$0xff]  ;;  %403 = vst.msk [vmem:[#allocation2 + $0x20] sm:$0xfe] %vm399_vm0, %v367_v33 }
  0x2f   : > { %5582 = vmatprep.subr.bf16.mxu1 %v5645_v4  ;;  %5321 = vmatprep.subr.bf16.mxu0 %v5645_v4  ;;  %404 = vst.msk [vmem:[#allocation2 + $0x28] sm:$0x1] %vm401_vm1, %v367_v33  ;;  %422 = vst.msk [vmem:[#allocation2 + $0xb8] sm:$0x1] %vm401_vm1, %v376_v34  ;;  %v377_v45 = vrot.slane %v345_v35, 7  ;;  %v369_v46 = vrot.slane %v337_v36, 7  ;;  %v338_v47 = vpack.c.bf16 %v311_v42, %v310_v39 }
  0x30   : > { %421 = vst.msk [vmem:[#allocation2 + $0xb0] sm:$0xfe] %vm399_vm0, %v376_v34  ;;  %v339_v48 = vpack.c.bf16 %v313_v44, %v312_v43  ;;  %v328_v49 = vld [vmem:[%s5810_s30 + $0xd0] sm:$0xff]  ;;  %v329_v50 = vld [vmem:[%s5810_s30 + $0xd8] sm:$0xff]  ;;  %v314_v51 = vld [vmem:[%s5810_s30 + $0x60] sm:$0xff]  ;;  %v378_v52 = vrot.slane %v346_v41, 7 }
  0x31   : > { %405 = vst.msk [vmem:[#allocation2 + $0x30] sm:$0xfe] %vm399_vm0, %v368_v40  ;;  %v347_v53 = vpack.c.bf16 %v329_v50, %v328_v49  ;;  %v315_v54 = vld [vmem:[%s5810_s30 + $0x68] sm:$0xff]  ;;  %v316_v55 = vld [vmem:[%s5810_s30 + $0x70] sm:$0xff]  ;;  %v317_v56 = vld [vmem:[%s5810_s30 + $0x78] sm:$0xff]  ;;  %v370_v57 = vrot.slane %v338_v47, 7 }
  0x32   : > { %5590 = vmatpush3.bf16.msra.mxu1 %v5645_v4  ;;  %5322 = vmatpush3.bf16.msra.mxu0 %v5645_v4  ;;  %406 = vst.msk [vmem:[#allocation2 + $0x38] sm:$0x1] %vm401_vm1, %v368_v40  ;;  %424 = vst.msk [vmem:[#allocation2 + $0xc8] sm:$0x1] %vm401_vm1, %v377_v45  ;;  %v371_v58 = vrot.slane %v339_v48, 7  ;;  %v340_v59 = vpack.c.bf16 %v315_v54, %v314_v51  ;;  %v341_v60 = vpack.c.bf16 %v317_v56, %v316_v55  ;;  %v330_v61 = vld [vmem:[%s5810_s30 + $0xe0] sm:$0xff] }
  0x33   : > { %5583 = vmatprep.subr.bf16.mxu1 %v5836_v11  ;;  %5323 = vmatprep.subr.bf16.mxu0 %v5836_v11  ;;  %423 = vst.msk [vmem:[#allocation2 + $0xc0] sm:$0xfe] %vm399_vm0, %v377_v45  ;;  %407 = vst.msk [vmem:[#allocation2 + $0x40] sm:$0xfe] %vm399_vm0, %v369_v46  ;;  %v331_v62 = vld [vmem:[%s5810_s30 + $0xe8] sm:$0xff]  ;;  %v332_v63 = vld [vmem:[%s5810_s30 + $0xf0] sm:$0xff] }
  0x34   : > { %408 = vst.msk [vmem:[#allocation2 + $0x48] sm:$0x1] %vm401_vm1, %v369_v46  ;;  %426 = vst.msk [vmem:[#allocation2 + $0xd8] sm:$0x1] %vm401_vm1, %v378_v52  ;;  %v379_v0 = vrot.slane %v347_v53, 7  ;;  %v348_v1 = vpack.c.bf16 %v331_v62, %v330_v61  ;;  %v333_v2 = vld [vmem:[%s5810_s30 + $0xf8] sm:$0xff] }
  0x35   : > { %425 = vst.msk [vmem:[#allocation2 + $0xd0] sm:$0xfe] %vm399_vm0, %v378_v52  ;;  %v5648_v3 = vld [vmem:[%s8788_s1 + $0x30] sm:$0xff]   ;;  %409 = vst.msk [vmem:[#allocation2 + $0x50] sm:$0xfe] %vm399_vm0, %v370_v57  ;;  %v372_v5 = vrot.slane %v340_v59, 7  ;;  %v349_v7 = vpack.c.bf16 %v333_v2, %v332_v63 }
  0x36   : > { %5591 = vmatpush3.bf16.msra.mxu1 %v5836_v11  ;;  %5324 = vmatpush3.bf16.msra.mxu0 %v5836_v11  ;;  %v451_v4 = vld [vmem:[#allocation2 + $0x90] sm:$0xff]  ;;  %410 = vst.msk [vmem:[#allocation2 + $0x58] sm:$0x1] %vm401_vm1, %v370_v57  ;;  %412 = vst.msk [vmem:[#allocation2 + $0x68] sm:$0x1] %vm401_vm1, %v371_v58  ;;  %v373_v6 = vrot.slane %v341_v60, 7 }
  0x37   : > { %5584 = vmatprep.subr.bf16.mxu1 %v5855_v32  ;;  %5325 = vmatprep.subr.bf16.mxu0 %v5855_v32  ;;  %411 = vst.msk [vmem:[#allocation2 + $0x60] sm:$0xfe] %vm399_vm0, %v371_v58  ;;  %427 = vst.msk [vmem:[#allocation2 + $0xe0] sm:$0xfe] %vm399_vm0, %v379_v0  ;;  %v380_v8 = vrot.slane %v348_v1, 7  ;;  %v381_v9 = vrot.slane %v349_v7, 7 }
  0x38   : > { %5367 = vmatprep.mubr.bf16.mxu1 %v451_v4  ;;  %428 = vst.msk [vmem:[#allocation2 + $0xe8] sm:$0x1] %vm401_vm1, %v379_v0  ;;  %414 = vst.msk [vmem:[#allocation2 + $0x78] sm:$0x1] %vm401_vm1, %v372_v5  ;;  %v5649_v10 = vld [vmem:[%s8788_s1 + $0x38] sm:$0xff]   ;;  %v434_v12 = vld [vmem:[#allocation2 + $0x8] sm:$0xff] }
  0x39   : > { %413 = vst.msk [vmem:[#allocation2 + $0x70] sm:$0xfe] %vm399_vm0, %v372_v5  ;;  %415 = vst.msk [vmem:[#allocation2 + $0x80] sm:$0xfe] %vm399_vm0, %v373_v6  ;;  %v452_v11 = vld [vmem:[#allocation2 + $0x98] sm:$0xff]  ;;  %v435_v13 = vld [vmem:[#allocation2 + $0x10] sm:$0xff] }
  0x3a   : > { %416 = vst.msk [vmem:[#allocation2 + $0x88] sm:$0x1] %vm401_vm1, %v373_v6  ;;  %5592 = vmatpush3.bf16.msra.mxu1 %v5855_v32  ;;  %5326 = vmatpush3.bf16.msra.mxu0 %v5855_v32  ;;  %430 = vst.msk [vmem:[#allocation2 + $0xf8] sm:$0x1] %vm401_vm1, %v380_v8  ;;  %v453_v14 = vld [vmem:[#allocation2 + $0xa0] sm:$0xff]  ;;  %v436_v15 = vld [vmem:[#allocation2 + $0x18] sm:$0xff] }
  0x3b   : > { %429 = vst.msk [vmem:[#allocation2 + $0xf0] sm:$0xfe] %vm399_vm0, %v380_v8  ;;  %5585 = vmatprep.subr.bf16.mxu1 %v5648_v3  ;;  %5327 = vmatprep.subr.bf16.mxu0 %v5648_v3  ;;  %431 = vst.msk [vmem:[#allocation2 + $0x100] sm:$0xfe] %vm399_vm0, %v381_v9  ;;  %v454_v16 = vld [vmem:[#allocation2 + $0xa8] sm:$0xff]  ;;  %v437_v17 = vld [vmem:[#allocation2 + $0x20] sm:$0xff] }
  0x3c   : > { %432 = vst.msk [vmem:[#allocation2 + $0x108] sm:$0x1] %vm401_vm1, %v381_v9  ;;  %v455_v18 = vld [vmem:[#allocation2 + $0xb0] sm:$0xff]  ;;  %v438_v19 = vld [vmem:[#allocation2 + $0x28] sm:$0xff]  ;;  %v456_v20 = vld [vmem:[#allocation2 + $0xb8] sm:$0xff] }
  0x3d   : > { %v439_v21 = vld [vmem:[#allocation2 + $0x30] sm:$0xff]  ;;  %v457_v22 = vld [vmem:[#allocation2 + $0xc0] sm:$0xff]  ;;  %v440_v23 = vld [vmem:[#allocation2 + $0x38] sm:$0xff] }
  0x3e   : > { %5593 = vmatpush3.bf16.msra.mxu1 %v5648_v3  ;;  %5328 = vmatpush3.bf16.msra.mxu0 %v5648_v3  ;;  %v458_v24 = vld [vmem:[#allocation2 + $0xc8] sm:$0xff]  ;;  %v441_v25 = vld [vmem:[#allocation2 + $0x40] sm:$0xff]  ;;  %v459_v26 = vld [vmem:[#allocation2 + $0xd0] sm:$0xff] }
  0x3f   : > { %5586 = vmatprep.subr.bf16.mxu1 %v5649_v10  ;;  %5329 = vmatprep.subr.bf16.mxu0 %v5649_v10  ;;  %v442_v27 = vld [vmem:[#allocation2 + $0x48] sm:$0xff]  ;;  %v460_v28 = vld [vmem:[#allocation2 + $0xd8] sm:$0xff]  ;;  %v443_v29 = vld [vmem:[#allocation2 + $0x50] sm:$0xff] }
  0x40   : > { %v461_v30 = vld [vmem:[#allocation2 + $0xe0] sm:$0xff]  ;;  %v444_v31 = vld [vmem:[#allocation2 + $0x58] sm:$0xff]  ;;  %v462_v32 = vld [vmem:[#allocation2 + $0xe8] sm:$0xff] }
  0x41   : > { %v445_v33 = vld [vmem:[#allocation2 + $0x60] sm:$0xff]  ;;  %v446_v35 = vld [vmem:[#allocation2 + $0x68] sm:$0xff]  ;;  %v464_v36 = vld [vmem:[#allocation2 + $0xf8] sm:$0xff] }
  0x42   : > { %5594 = vmatpush3.bf16.msra.mxu1 %v5649_v10  ;;  %5330 = vmatpush3.bf16.msra.mxu0 %v5649_v10  ;;  %v463_v34 = vld [vmem:[#allocation2 + $0xf0] sm:$0xff]  ;;  %v465_v38 = vld [vmem:[#allocation2 + $0x100] sm:$0xff]  ;;  %v448_v39 = vld [vmem:[#allocation2 + $0x78] sm:$0xff] }
  0x43   : > { %v447_v37 = vld [vmem:[#allocation2 + $0x70] sm:$0xff]  ;;  %v466_v40 = vld [vmem:[#allocation2 + $0x108] sm:$0xff]  ;;  %v449_v41 = vld [vmem:[#allocation2 + $0x80] sm:$0xff] }
  0x44   : > { %v467_v42 = vld [vmem:[#allocation2 + $0x110] sm:$0xff]  ;;  %v450_v43 = vld [vmem:[#allocation2 + $0x88] sm:$0xff]  ;;  %v468_v44 = vld [vmem:[#allocation2 + $0x118] sm:$0xff] }
  0x45   : > { %5368 = vmatmul.mubr.bf16.vlgmr.msra.gmra.mrb[0].mxu1 %v452_v11  ;;  %5332 = vmatmul.mubr.bf16.vlgmr.msra.gmra.mrb[0].mxu0 %v434_v12 }
  0x46   : > { %5335 = vmatprep.mubr.bf16.mxu0 %v435_v13  ;;  %5371 = vmatprep.mubr.bf16.mxu1 %v453_v14 }
  0x4d   : > { %5336 = vmatmul.mubr.bf16.gmra.mrb[4].mxu0 %v436_v15  ;;  %5372 = vmatmul.mubr.bf16.gmra.mrb[4].mxu1 %v454_v16 }
  0x4e   : > { %5339 = vmatprep.mubr.bf16.mxu0 %v437_v17  ;;  %5375 = vmatprep.mubr.bf16.mxu1 %v455_v18 }
  0x55   : > { %5340 = vmatmul.mubr.bf16.gmra.mrb[8].mxu0 %v438_v19  ;;  %5376 = vmatmul.mubr.bf16.gmra.mrb[8].mxu1 %v456_v20 }
  0x56   : > { %5343 = vmatprep.mubr.bf16.mxu0 %v439_v21  ;;  %5379 = vmatprep.mubr.bf16.mxu1 %v457_v22 }
  0x5d   : > { %5344 = vmatmul.mubr.bf16.gmra.mrb[12].mxu0 %v440_v23  ;;  %5380 = vmatmul.mubr.bf16.gmra.mrb[12].mxu1 %v458_v24 }
  0x5e   : > { %5347 = vmatprep.mubr.bf16.mxu0 %v441_v25  ;;  %5383 = vmatprep.mubr.bf16.mxu1 %v459_v26 }
  0x65   : > { %5348 = vmatmul.mubr.bf16.gmra.mrb[16].mxu0 %v442_v27  ;;  %5384 = vmatmul.mubr.bf16.gmra.mrb[16].mxu1 %v460_v28 }
  0x66   : > { %5351 = vmatprep.mubr.bf16.mxu0 %v443_v29  ;;  %5387 = vmatprep.mubr.bf16.mxu1 %v461_v30 }
  0x6d   : > { %5352 = vmatmul.mubr.bf16.gmra.mrb[20].mxu0 %v444_v31  ;;  %5388 = vmatmul.mubr.bf16.gmra.mrb[20].mxu1 %v462_v32 }
  0x6e   : > { %5355 = vmatprep.mubr.bf16.mxu0 %v445_v33  ;;  %5391 = vmatprep.mubr.bf16.mxu1 %v463_v34 }
  0x75   : > { %5356 = vmatmul.mubr.bf16.gmra.mrb[24].mxu0 %v446_v35  ;;  %5392 = vmatmul.mubr.bf16.gmra.mrb[24].mxu1 %v464_v36 }
  0x76   : > { %5359 = vmatprep.mubr.bf16.mxu0 %v447_v37  ;;  %5395 = vmatprep.mubr.bf16.mxu1 %v465_v38 }
  0x7d   : > { %5360 = vmatmul.mubr.bf16.gmra.mrb[28].mxu0 %v448_v39  ;;  %5396 = vmatmul.mubr.bf16.gmra.mrb[28].mxu1 %v466_v40 }
  0x7e   : > { %5363 = vmatprep.mubr.bf16.mxu0 %v449_v41  ;;  %5399 = vmatprep.mubr.bf16.mxu1 %v467_v42 }
  0x85   : > { %5364 = vmatmul.mubr.bf16.gmra.mrb[32].mxu0 %v450_v43  ;;  %5400 = vmatmul.mubr.bf16.gmra.mrb[32].mxu1 %v468_v44 }
 0x118   : > { %v5917_v45 = vpop.f32.mrb[0].mxu1  ;;  %v5919_v46 = vpop.f32.mrb[0].mxu0 }
 0x119   : > { %941 = vrot.lane.b32.xlu0 %v5917_v45, %s5741_s6  ;;  %1130 = vrot.lane.b32.xlu1 %v5917_v45, %s5742_s7  ;;  %v5925_v47 = vpop.f32.mrb[1].mxu1  ;;  %v5927_v48 = vpop.f32.mrb[1].mxu0 }
 0x11a   : > { %v5370_v49 = vpop.f32.mrb[2].mxu1  ;;  %v5334_v50 = vpop.f32.mrb[2].mxu0 }
 0x11b   : > { %v5929_v51 = vpop.f32.mrb[3].mxu1  ;;  %v5931_v52 = vpop.f32.mrb[3].mxu0 }
 0x11d   : > { %937 = vrot.lane.b32.xlu0 %v5925_v47, %s5741_s6  ;;  %1126 = vrot.lane.b32.xlu1 %v5925_v47, %s5742_s7 }
 0x120   : > { %v5937_v53 = vpop.f32.mrb[4].mxu0  ;;  %v5939_v54 = vpop.f32.mrb[4].mxu1 }
 0x121   : > { %939 = vrot.lane.b32.xlu1 %v5929_v51, %s5741_s6  ;;  %1128 = vrot.lane.b32.xlu0 %v5929_v51, %s5742_s7  ;;  %v5945_v55 = vpop.f32.mrb[5].mxu0  ;;  %v5947_v56 = vpop.f32.mrb[5].mxu1 }
 0x122   : > { %v5338_v57 = vpop.f32.mrb[6].mxu0  ;;  %v5374_v58 = vpop.f32.mrb[6].mxu1 }
 0x123   : > { %v5949_v59 = vpop.f32.mrb[7].mxu0  ;;  %v5951_v60 = vpop.f32.mrb[7].mxu1 }
 0x125   : > { %947 = vrot.lane.b32.xlu0 %v5939_v54, %s5741_s6  ;;  %893 = vrot.lane.b32.xlu1 %v5937_v53, %s5741_s6 }
 0x128   : > { %v5957_v61 = vpop.f32.mrb[8].mxu0  ;;  %v5959_v62 = vpop.f32.mrb[8].mxu1 }
 0x129   : > { %1136 = vrot.lane.b32.xlu1 %v5939_v54, %s5742_s7  ;;  %889 = vrot.lane.b32.xlu0 %v5945_v55, %s5741_s6  ;;  %v5965_v63 = vpop.f32.mrb[9].mxu0  ;;  %v5967_v0 = vpop.f32.mrb[9].mxu1 }
 0x12a   : > { %v5342_v1 = vpop.f32.mrb[10].mxu0  ;;  %v5378_v2 = vpop.f32.mrb[10].mxu1 }
 0x12b   : > { %v5969_v3 = vpop.f32.mrb[11].mxu0  ;;  %v5971_v4 = vpop.f32.mrb[11].mxu1 }
 0x12d   : > { %1132 = vrot.lane.b32.xlu1 %v5947_v56, %s5742_s7  ;;  %943 = vrot.lane.b32.xlu0 %v5947_v56, %s5741_s6 }
 0x130   : > { %v5977_v5 = vpop.f32.mrb[12].mxu0  ;;  %v5979_v6 = vpop.f32.mrb[12].mxu1 }
 0x131   : > { %945 = vrot.lane.b32.xlu1 %v5951_v60, %s5741_s6  ;;  %891 = vrot.lane.b32.xlu0 %v5949_v59, %s5741_s6  ;;  %v5985_v7 = vpop.f32.mrb[13].mxu0  ;;  %v5987_v8 = vpop.f32.mrb[13].mxu1 }
 0x132   : > { %v5346_v9 = vpop.f32.mrb[14].mxu0  ;;  %v5382_v10 = vpop.f32.mrb[14].mxu1 }
 0x133   : > { %v5989_v11 = vpop.f32.mrb[15].mxu0  ;;  %v5991_v12 = vpop.f32.mrb[15].mxu1 }
 0x135   : > { %1134 = vrot.lane.b32.xlu0 %v5951_v60, %s5742_s7  ;;  %1088 = vrot.lane.b32.xlu1 %v5957_v61, %s5742_s7 }
 0x138   : > { %v5997_v13 = vpop.f32.mrb[16].mxu0  ;;  %v5999_v14 = vpop.f32.mrb[16].mxu1 }
 0x139   : > { %8931 = vst [vmem:[#allocation3_spill] sm:$0xff] %v5999_v14  ;;  %899 = vrot.lane.b32.xlu0 %v5957_v61, %s5741_s6  ;;  %1142 = vrot.lane.b32.xlu1 %v5959_v62, %s5742_s7  ;;  %v6005_v15 = vpop.f32.mrb[17].mxu0  ;;  %v6007_v16 = vpop.f32.mrb[17].mxu1 }
 0x13a   : > { %8932 = vst [vmem:[#allocation4_spill] sm:$0xff] %v6007_v16  ;;  %v5350_v17 = vpop.f32.mrb[18].mxu0  ;;  %v5386_v18 = vpop.f32.mrb[18].mxu1 }
 0x13b   : > { %v6009_v19 = vpop.f32.mrb[19].mxu0  ;;  %v6011_v20 = vpop.f32.mrb[19].mxu1 }
 0x13c   : > { %8933 = vst [vmem:[#allocation5_spill] sm:$0xff] %v6009_v19  ;;  %8934 = vst [vmem:[#allocation6_spill] sm:$0xff] %v6011_v20 }
 0x13d   : > { %953 = vrot.lane.b32.xlu0 %v5959_v62, %s5741_s6  ;;  %1084 = vrot.lane.b32.xlu1 %v5965_v63, %s5742_s7 }
 0x140   : > { %v6017_v21 = vpop.f32.mrb[20].mxu0  ;;  %v6019_v22 = vpop.f32.mrb[20].mxu1 }
 0x141   : > { %8935 = vst [vmem:[#allocation7_spill] sm:$0xff] %v6017_v21  ;;  %8936 = vst [vmem:[#allocation8_spill] sm:$0xff] %v6019_v22  ;;  %895 = vrot.lane.b32.xlu0 %v5965_v63, %s5741_s6  ;;  %1138 = vrot.lane.b32.xlu1 %v5967_v0, %s5742_s7  ;;  %v6025_v23 = vpop.f32.mrb[21].mxu0  ;;  %v6027_v24 = vpop.f32.mrb[21].mxu1 }
 0x142   : > { %8937 = vst [vmem:[#allocation9_spill] sm:$0xff] %v6025_v23  ;;  %8938 = vst [vmem:[#allocation10_spill] sm:$0xff] %v6027_v24  ;;  %v5354_v25 = vpop.f32.mrb[22].mxu0  ;;  %v5390_v26 = vpop.f32.mrb[22].mxu1 }
 0x143   : > { %v6029_v27 = vpop.f32.mrb[23].mxu0  ;;  %v6031_v28 = vpop.f32.mrb[23].mxu1 }
 0x144   : > { %8939 = vst [vmem:[#allocation11_spill] sm:$0xff] %v6029_v27  ;;  %8940 = vst [vmem:[#allocation12_spill] sm:$0xff] %v6031_v28 }
 0x145   : > { %949 = vrot.lane.b32.xlu0 %v5967_v0, %s5741_s6  ;;  %897 = vrot.lane.b32.xlu1 %v5969_v3, %s5741_s6 }
 0x148   : > { %v6037_v29 = vpop.f32.mrb[24].mxu0  ;;  %v6039_v30 = vpop.f32.mrb[24].mxu1 }
 0x149   : > { %8941 = vst [vmem:[#allocation13_spill] sm:$0xff] %v6037_v29  ;;  %8942 = vst [vmem:[#allocation14_spill] sm:$0xff] %v6039_v30  ;;  %951 = vrot.lane.b32.xlu1 %v5971_v4, %s5741_s6  ;;  %1086 = vrot.lane.b32.xlu0 %v5969_v3, %s5742_s7  ;;  %v6045_v31 = vpop.f32.mrb[25].mxu0  ;;  %v6047_v32 = vpop.f32.mrb[25].mxu1 }
 0x14a   : > { %8943 = vst [vmem:[#allocation15_spill] sm:$0xff] %v6045_v31  ;;  %8944 = vst [vmem:[#allocation16_spill] sm:$0xff] %v6047_v32  ;;  %v5358_v33 = vpop.f32.mrb[26].mxu0  ;;  %v5394_v34 = vpop.f32.mrb[26].mxu1 }
 0x14b   : > { %v6049_v35 = vpop.f32.mrb[27].mxu0  ;;  %v6051_v36 = vpop.f32.mrb[27].mxu1 }
 0x14c   : > { %8945 = vst [vmem:[#allocation17_spill] sm:$0xff] %v6049_v35  ;;  %8946 = vst [vmem:[#allocation18_spill] sm:$0xff] %v6051_v36 }
 0x14d   : > { %1140 = vrot.lane.b32.xlu0 %v5971_v4, %s5742_s7  ;;  %1094 = vrot.lane.b32.xlu1 %v5977_v5, %s5742_s7 }
 0x150   : > { %v6057_v37 = vpop.f32.mrb[28].mxu0  ;;  %v6059_v38 = vpop.f32.mrb[28].mxu1 }
 0x151   : > { %8947 = vst [vmem:[#allocation19_spill] sm:$0xff] %v6057_v37  ;;  %905 = vrot.lane.b32.xlu0 %v5977_v5, %s5741_s6  ;;  %1148 = vrot.lane.b32.xlu1 %v5979_v6, %s5742_s7  ;;  %v6065_v39 = vpop.f32.mrb[29].mxu0  ;;  %v6067_v40 = vpop.f32.mrb[29].mxu1 }
 0x152   : > { %v5362_v41 = vpop.f32.mrb[30].mxu0  ;;  %v5398_v42 = vpop.f32.mrb[30].mxu1 }
 0x153   : > { %v6069_v43 = vpop.f32.mrb[31].mxu0  ;;  %v6071_v44 = vpop.f32.mrb[31].mxu1 }
 0x155   : > { %959 = vrot.lane.b32.xlu0 %v5979_v6, %s5741_s6  ;;  %1090 = vrot.lane.b32.xlu1 %v5985_v7, %s5742_s7 }
 0x158   : > { %v6077_v49 = vpop.f32.mrb[32].mxu0  ;;  %v6079_v50 = vpop.f32.mrb[32].mxu1 }
 0x159   : > { %901 = vrot.lane.b32.xlu0 %v5985_v7, %s5741_s6  ;;  %1144 = vrot.lane.b32.xlu1 %v5987_v8, %s5742_s7  ;;  %v6085_v57 = vpop.f32.mrb[33].mxu0  ;;  %v6087_v58 = vpop.f32.mrb[33].mxu1 }
 0x15a   : > { %v5366_v1 = vpop.f32.mrb[34].mxu0  ;;  %v5402_v2 = vpop.f32.mrb[34].mxu1 }
 0x15b   : > { %v6089_v9 = vpop.f32.mrb[35].mxu0  ;;  %v6091_v10 = vpop.f32.mrb[35].mxu1 }
 0x15d   : > { %955 = vrot.lane.b32.xlu0 %v5987_v8, %s5741_s6  ;;  %903 = vrot.lane.b32.xlu1 %v5989_v11, %s5741_s6 }
 0x161   : > { %957 = vrot.lane.b32.xlu1 %v5991_v12, %s5741_s6  ;;  %1092 = vrot.lane.b32.xlu0 %v5989_v11, %s5742_s7 }
 0x165   : > { %1146 = vrot.lane.b32.xlu0 %v5991_v12, %s5742_s7  ;;  %1100 = vrot.lane.b32.xlu1 %v5997_v13, %s5742_s7 }
 0x169   : > { %911 = vrot.lane.b32.xlu0 %v5997_v13, %s5741_s6  ;;  %1154 = vrot.lane.b32.xlu1 %v5999_v14, %s5742_s7 }
 0x16d   : > { %965 = vrot.lane.b32.xlu0 %v5999_v14, %s5741_s6  ;;  %1096 = vrot.lane.b32.xlu1 %v6005_v15, %s5742_s7 }
 0x171   : > { %907 = vrot.lane.b32.xlu0 %v6005_v15, %s5741_s6  ;;  %1150 = vrot.lane.b32.xlu1 %v6007_v16, %s5742_s7 }
 0x175   : > { %961 = vrot.lane.b32.xlu0 %v6007_v16, %s5741_s6  ;;  %909 = vrot.lane.b32.xlu1 %v6009_v19, %s5741_s6 }
 0x179   : > { %963 = vrot.lane.b32.xlu1 %v6011_v20, %s5741_s6  ;;  %1098 = vrot.lane.b32.xlu0 %v6009_v19, %s5742_s7 }
 0x17d   : > { %1152 = vrot.lane.b32.xlu0 %v6011_v20, %s5742_s7  ;;  %1106 = vrot.lane.b32.xlu1 %v6017_v21, %s5742_s7 }
 0x181   : > { %917 = vrot.lane.b32.xlu0 %v6017_v21, %s5741_s6  ;;  %1160 = vrot.lane.b32.xlu1 %v6019_v22, %s5742_s7 }
 0x185   : > { %971 = vrot.lane.b32.xlu0 %v6019_v22, %s5741_s6  ;;  %1102 = vrot.lane.b32.xlu1 %v6025_v23, %s5742_s7 }
 0x189   : > { %913 = vrot.lane.b32.xlu0 %v6025_v23, %s5741_s6  ;;  %1156 = vrot.lane.b32.xlu1 %v6027_v24, %s5742_s7 }
 0x18b   : > { %v942_v17 = vpop.permute.xlu0 %941  ;;  %v6141_v18 = vpop.permute.xlu1 %1130 }
 0x18c   : > { %8948 = vst [vmem:[#allocation20_spill] sm:$0xff] %v6141_v18 }
 0x18d   : > { %967 = vrot.lane.b32.xlu0 %v6027_v24, %s5741_s6  ;;  %915 = vrot.lane.b32.xlu1 %v6029_v27, %s5741_s6 }
 0x18f   : > { %v938_v25 = vpop.permute.xlu0 %937  ;;  %v6147_v26 = vpop.permute.xlu1 %1126 }
 0x190   : > { %8949 = vst [vmem:[#allocation21_spill] sm:$0xff] %v6147_v26  ;;  %v1057_v24 = vadd.f32 %v938_v25, %v6085_v57 }
 0x191   : > { %969 = vrot.lane.b32.xlu1 %v6031_v28, %s5741_s6  ;;  %1104 = vrot.lane.b32.xlu0 %v6029_v27, %s5742_s7 }
 0x193   : > { %v940_v33 = vpop.permute.xlu1 %939  ;;  %v6153_v34 = vpop.permute.xlu0 %1128 }
 0x194   : > { %8950 = vst [vmem:[#allocation22_spill] sm:$0xff] %v6153_v34 }
 0x195   : > { %1158 = vrot.lane.b32.xlu0 %v6031_v28, %s5742_s7  ;;  %1112 = vrot.lane.b32.xlu1 %v6037_v29, %s5742_s7  ;;  %v1059_v28 = vadd.f32 %v6077_v49, %v942_v17 }
 0x197   : > { %v948_v41 = vpop.permute.xlu0 %947  ;;  %v894_v42 = vpop.permute.xlu1 %893 }
 0x198   : > { %v1062_v16 = vadd.f32 %v5917_v45, %v948_v41 }
 0x199   : > { %923 = vrot.lane.b32.xlu0 %v6037_v29, %s5741_s6  ;;  %1166 = vrot.lane.b32.xlu1 %v6039_v30, %s5742_s7 }
 0x19b   : > { %v1137_v1 = vpop.permute.xlu1 %1136  ;;  %v890_v2 = vpop.permute.xlu0 %889 }
 0x19c   : > { %v6178_v22 = vadd.f32 %v1137_v1, %v1059_v28 }
 0x19d   : > { %977 = vrot.lane.b32.xlu0 %v6039_v30, %s5741_s6  ;;  %1108 = vrot.lane.b32.xlu1 %v6045_v31, %s5742_s7  ;;  %v1058_v30 = vadd.f32 %v940_v33, %v6089_v9 }
 0x19f   : > { %v1133_v34 = vpop.permute.xlu1 %1132  ;;  %v944_v26 = vpop.permute.xlu0 %943 }
 0x1a0   : > { %v1060_v14 = vadd.f32 %v944_v26, %v5925_v47 }
 0x1a1   : > { %919 = vrot.lane.b32.xlu0 %v6045_v31, %s5741_s6  ;;  %1162 = vrot.lane.b32.xlu1 %v6047_v32, %s5742_s7  ;;  %v6180_v31 = vadd.f32 %v1133_v34, %v1057_v24  ;;  %v8806_v24 = vrot.slane %v6178_v22, 1  ;;  %v8807_v34 = vrot.slane %v6178_v22, 2 }
 0x1a3   : > { %v946_v18 = vpop.permute.xlu1 %945  ;;  %v892_v29 = vpop.permute.xlu0 %891  ;;  %8951 = vst [vmem:[#allocation23_spill] sm:$0xff] %v6180_v31  ;;  %v1413_v17 = vrot.slane %v6180_v31, 1  ;;  %v1686_v33 = vrot.slane %v6180_v31, 2 }
 0x1a5   : > { %973 = vrot.lane.b32.xlu0 %v6047_v32, %s5741_s6  ;;  %921 = vrot.lane.b32.xlu1 %v6049_v35, %s5741_s6 }
 0x1a7   : > { %v1135_v27 = vpop.permute.xlu0 %1134  ;;  %v1089_v23 = vpop.permute.xlu1 %1088 }
 0x1a8   : > { %v6182_v21 = vadd.f32 %v1135_v27, %v1058_v30 }
 0x1a9   : > { %975 = vrot.lane.b32.xlu1 %v6051_v36, %s5741_s6  ;;  %1110 = vrot.lane.b32.xlu0 %v6049_v35, %s5742_s7 }
 0x1aa   : > { %8952 = vst [vmem:[#allocation24_spill] sm:$0xff] %v6182_v21  ;;  %v1414_v25 = vrot.slane %v6182_v21, 1  ;;  %v1687_v28 = vrot.slane %v6182_v21, 2 }
 0x1ab   : > { %v6193_v27 = vpop.permute.xlu0 %899  ;;  %v1143_v30 = vpop.permute.xlu1 %1142 }
 0x1ac   : > { %v6199_v1 = vsel %vm1372_vm2, %v1414_v25, %v8806_v24  ;;  %v6202_v32 = vsel %vm1372_vm2, %v1413_v17, %v1414_v25  ;;  %v6211_v31 = vsel %vm1645_vm3, %v1687_v28, %v8807_v34  ;;  %v6214_v21 = vsel %vm1645_vm3, %v1686_v33, %v1687_v28 }
 0x1ad   : > { %1164 = vrot.lane.b32.xlu0 %v6051_v36, %s5742_s7  ;;  %1118 = vrot.lane.b32.xlu1 %v6057_v37, %s5742_s7  ;;  %v1035_v28 = vadd.f32 %v5919_v46, %v894_v42  ;;  %v1033_v36 = vadd.f32 %v890_v2, %v5927_v48  ;;  %v1061_v48 = vadd.f32 %v946_v18, %v5929_v51 }
 0x1ae   : > { %v6247_v2 = vadd.f32 %v1143_v30, %v1062_v16 }
 0x1af   : > { %v6216_v35 = vpop.permute.xlu0 %953  ;;  %v1085_v24 = vpop.permute.xlu1 %1084 }
 0x1b0   : > { %v6239_v20 = vadd.f32 %v1085_v24, %v1033_v36  ;;  %v8816_v30 = vrot.slane %v6247_v2, 1 }
 0x1b1   : > { %929 = vrot.lane.b32.xlu0 %v6057_v37, %s5741_s6  ;;  %1172 = vrot.lane.b32.xlu1 %v6059_v38, %s5742_s7  ;;  %v6232_v37 = vadd.f32 %v1089_v23, %v1035_v28 }
 0x1b2   : > { %v1373_v45 = vrot.slane %v6239_v20, 1  ;;  %v1646_v36 = vrot.slane %v6239_v20, 2 }
 0x1b3   : > { %v6222_v17 = vpop.permute.xlu0 %895  ;;  %v1139_v25 = vpop.permute.xlu1 %1138  ;;  %v8814_v23 = vrot.slane %v6232_v37, 1  ;;  %v8815_v51 = vrot.slane %v6232_v37, 2 }
 0x1b5   : > { %983 = vrot.lane.b32.xlu0 %v6059_v38, %s5741_s6  ;;  %1114 = vrot.lane.b32.xlu1 %v6065_v39, %s5742_s7  ;;  %v1034_v38 = vadd.f32 %v892_v29, %v5931_v52  ;;  %v6254_v52 = vadd.f32 %v1139_v25, %v1060_v14 }
 0x1b7   : > { %v6229_v33 = vpop.permute.xlu0 %949  ;;  %v898_v34 = vpop.permute.xlu1 %897  ;;  %8953 = vst [vmem:[#allocation25_spill] sm:$0xff] %v6254_v52  ;;  %v1418_v25 = vrot.slane %v6254_v52, 1 }
 0x1b9   : > { %925 = vrot.lane.b32.xlu0 %v6065_v39, %s5741_s6  ;;  %1168 = vrot.lane.b32.xlu1 %v6067_v40, %s5742_s7 }
 0x1bb   : > { %v952_v46 = vpop.permute.xlu1 %951  ;;  %v1087_v42 = vpop.permute.xlu0 %1086 }
 0x1bc   : > { %v6243_v19 = vadd.f32 %v1087_v42, %v1034_v38  ;;  %v8817_v42 = vrot.slane %v6247_v2, 2 }
 0x1bd   : > { %979 = vrot.lane.b32.xlu0 %v6067_v40, %s5741_s6  ;;  %927 = vrot.lane.b32.xlu1 %v6069_v43, %s5741_s6 }
 0x1be   : > { %v1374_v47 = vrot.slane %v6243_v19, 1  ;;  %v1647_v29 = vrot.slane %v6243_v19, 2 }
 0x1bf   : > { %v1141_v16 = vpop.permute.xlu0 %1140  ;;  %v1095_v18 = vpop.permute.xlu1 %1094 }
 0x1c0   : > { %v6260_v26 = vadd.f32 %v1141_v16, %v1061_v48  ;;  %v6263_v40 = vsel %vm1372_vm2, %v1373_v45, %v1374_v47  ;;  %v6268_v14 = vsel %vm1372_vm2, %v1374_v47, %v8814_v23  ;;  %v6277_v41 = vsel %vm1645_vm3, %v1647_v29, %v8815_v51 }
 0x1c1   : > { %981 = vrot.lane.b32.xlu1 %v6071_v44, %s5741_s6  ;;  %1116 = vrot.lane.b32.xlu0 %v6069_v43, %s5742_s7  ;;  %v6280_v24 = vsel %vm1645_vm3, %v1646_v36, %v1647_v29  ;;  %v1691_v48 = vrot.slane %v6254_v52, 2 }
 0x1c2   : > { %v1419_v28 = vrot.slane %v6260_v26, 1  ;;  %v1692_v38 = vrot.slane %v6260_v26, 2 }
 0x1c3   : > { %v6288_v45 = vpop.permute.xlu0 %905  ;;  %v1149_v47 = vpop.permute.xlu1 %1148 }
 0x1c4   : > { %v6293_v29 = vsel %vm1372_vm2, %v1419_v28, %v8816_v30  ;;  %v6296_v36 = vsel %vm1372_vm2, %v1418_v25, %v1419_v28  ;;  %v6303_v16 = vsel %vm1645_vm3, %v1691_v48, %v1692_v38  ;;  %v6308_v23 = vsel %vm1645_vm3, %v1692_v38, %v8817_v42 }
 0x1c5   : > { %1170 = vrot.lane.b32.xlu0 %v6071_v44, %s5742_s7  ;;  %1124 = vrot.lane.b32.xlu1 %v6077_v49, %s5742_s7  ;;  %v1038_v28 = vadd.f32 %v5937_v53, %v6193_v27  ;;  %v1065_v53 = vadd.f32 %v5939_v54, %v6216_v35 }
 0x1c7   : > { %v6310_v51 = vpop.permute.xlu0 %959  ;;  %v1091_v30 = vpop.permute.xlu1 %1090 }
 0x1c9   : > { %935 = vrot.lane.b32.xlu0 %v6077_v49, %s5741_s6  ;;  %1178 = vrot.lane.b32.xlu1 %v6079_v50, %s5742_s7  ;;  %v1036_v49 = vadd.f32 %v6222_v17, %v5945_v55  ;;  %v6330_v50 = vadd.f32 %v1095_v18, %v1038_v28  ;;  %v1063_v55 = vadd.f32 %v6229_v33, %v5947_v56 }
 0x1ca   : > { %v1064_v18 = vadd.f32 %v952_v46, %v5951_v60  ;;  %v6347_v28 = vadd.f32 %v1149_v47, %v1065_v53  ;;  %v8957_v47 = vrot.slane %v6178_v22, 1 }
 0x1cb   : > { %v6316_v44 = vpop.permute.xlu0 %901  ;;  %v1145_v25 = vpop.permute.xlu1 %1144  ;;  %v6337_v42 = vadd.f32 %v1091_v30, %v1036_v49  ;;  %v8820_v60 = vrot.slane %v6330_v50, 2  ;;  %v8956_v30 = vrot.slane %v6178_v22, 2 }
 0x1cd   : > { %931 = vrot.lane.b32.xlu0 %v6085_v57, %s5741_s6  ;;  %1120 = vrot.lane.b32.xlu1 %v6085_v57, %s5742_s7  ;;  %v1037_v57 = vadd.f32 %v898_v34, %v5949_v59  ;;  %v1378_v54 = vrot.slane %v6337_v42, 1  ;;  %v6354_v59 = vadd.f32 %v1145_v25, %v1063_v55  ;;  %v1651_v34 = vrot.slane %v6337_v42, 2 }
 0x1cf   : > { %v6324_v38 = vpop.permute.xlu0 %955  ;;  %v6326_v48 = vpop.permute.xlu1 %903  ;;  %8954 = vst [vmem:[#allocation26_spill] sm:$0xff] %v6354_v59  ;;  %v1423_v53 = vrot.slane %v6354_v59, 1 }
 0x1d1   : > { %1174 = vrot.lane.b32.xlu1 %v6087_v58, %s5742_s7  ;;  %1122 = vrot.lane.b32.xlu0 %v6089_v9, %s5742_s7  ;;  %v8819_v58 = vrot.slane %v6330_v50, 1 }
 0x1d3   : > { %v958_v27 = vpop.permute.xlu1 %957  ;;  %v1093_v52 = vpop.permute.xlu0 %1092 }
 0x1d4   : > { %v6343_v17 = vadd.f32 %v1093_v52, %v1037_v57  ;;  %v8821_v57 = vrot.slane %v6347_v28, 1 }
 0x1d5   : > { %933 = vrot.lane.b32.xlu1 %v6089_v9, %s5741_s6  ;;  %1176 = vrot.lane.b32.xlu0 %v6091_v10, %s5742_s7 }
 0x1d6   : > { %v1379_v56 = vrot.slane %v6343_v17, 1  ;;  %v1652_v35 = vrot.slane %v6343_v17, 2 }
 0x1d7   : > { %v1147_v33 = vpop.permute.xlu0 %1146  ;;  %v1101_v46 = vpop.permute.xlu1 %1100 }
 0x1d8   : > { %v6360_v52 = vadd.f32 %v1147_v33, %v1064_v18  ;;  %v6363_v9 = vsel %vm1372_vm2, %v1378_v54, %v1379_v56  ;;  %v6368_v10 = vsel %vm1372_vm2, %v1379_v56, %v8819_v58  ;;  %v6379_v25 = vsel %vm1645_vm3, %v1652_v35, %v8820_v60 }
 0x1d9   : > { %1778 = vrot.lane.b32.xlu1 %v8956_v30, %s5743_s9  ;;  %1505 = vrot.lane.b32.xlu0 %v8957_v47, %s5744_s10  ;;  %v6382_v49 = vsel %vm1645_vm3, %v1651_v34, %v1652_v35  ;;  %v8822_v54 = vrot.slane %v6347_v28, 2  ;;  %v1696_v56 = vrot.slane %v6354_v59, 2  ;;  %v8960_v59 = vrot.slane %v6247_v2, 2 }
 0x1da   : > { %8955 = vst [vmem:[#allocation27_spill] sm:$0xff] %v6360_v52  ;;  %v1424_v55 = vrot.slane %v6360_v52, 1  ;;  %v1697_v18 = vrot.slane %v6360_v52, 2 }
 0x1db   : > { %v6390_v33 = vpop.permute.xlu0 %911  ;;  %v1155_v30 = vpop.permute.xlu1 %1154 }
 0x1dc   : > { %v6395_v35 = vsel %vm1372_vm2, %v1424_v55, %v8821_v57  ;;  %v6398_v34 = vsel %vm1372_vm2, %v1423_v53, %v1424_v55  ;;  %v6405_v47 = vsel %vm1645_vm3, %v1696_v56, %v1697_v18  ;;  %v6410_v58 = vsel %vm1645_vm3, %v1697_v18, %v8822_v54 }
 0x1dd   : > { %1503 = vrot.lane.b32.xlu1 %v6199_v1, %s5744_s10  ;;  %1501 = vrot.lane.b32.xlu0 %v6202_v32, %s5744_s10  ;;  %v8958_v53 = vrot.slane %v6232_v37, 2  ;;  %v8959_v55 = vrot.slane %v6232_v37, 1  ;;  %v1041_v18 = vadd.f32 %v5957_v61, %v6288_v45  ;;  %v1068_v45 = vadd.f32 %v5959_v62, %v6310_v51 }
 0x1df   : > { %v6412_v60 = vpop.permute.xlu0 %965  ;;  %v1097_v57 = vpop.permute.xlu1 %1096  ;;  %v6432_v54 = vadd.f32 %v1101_v46, %v1041_v18 }
 0x1e1   : > { %1776 = vrot.lane.b32.xlu1 %v6211_v31, %s5743_s9  ;;  %1774 = vrot.lane.b32.xlu0 %v6214_v21, %s5743_s9  ;;  %v1039_v21 = vadd.f32 %v6316_v44, %v5965_v63  ;;  %v1066_v44 = vadd.f32 %v6324_v38, %v5967_v0  ;;  %v8827_v18 = vrot.slane %v6432_v54, 1 }
 0x1e3   : > { %v6418_v1 = vpop.permute.xlu0 %907  ;;  %v1151_v32 = vpop.permute.xlu1 %1150  ;;  %v6442_v61 = vadd.f32 %v1097_v57, %v1039_v21 }
 0x1e5   : > { %1730 = vrot.lane.b32.xlu1 %v8958_v53, %s5743_s9  ;;  %1457 = vrot.lane.b32.xlu0 %v8959_v55, %s5744_s10  ;;  %v8961_v53 = vrot.slane %v6247_v2, 1  ;;  %v1040_v55 = vadd.f32 %v6326_v48, %v5969_v3  ;;  %v1383_v62 = vrot.slane %v6442_v61, 1  ;;  %v6459_v3 = vadd.f32 %v1151_v32, %v1066_v44 }
 0x1e6   : > { %v1656_v38 = vrot.slane %v6442_v61, 2 }
 0x1e7   : > { %v6428_v56 = vpop.permute.xlu0 %961  ;;  %v910_v31 = vpop.permute.xlu1 %909  ;;  %8962 = vst [vmem:[#allocation28_spill] sm:$0xff] %v6459_v3 }
 0x1e9   : > { %1784 = vrot.lane.b32.xlu1 %v8960_v59, %s5743_s9  ;;  %1511 = vrot.lane.b32.xlu0 %v8961_v53, %s5744_s10  ;;  %v1067_v59 = vadd.f32 %v958_v27, %v5971_v4  ;;  %v6452_v53 = vadd.f32 %v1155_v30, %v1068_v45  ;;  %v8828_v4 = vrot.slane %v6432_v54, 2 }
 0x1eb   : > { %v964_v52 = vpop.permute.xlu1 %963  ;;  %v1099_v63 = vpop.permute.xlu0 %1098  ;;  %v8825_v21 = vrot.slane %v6452_v53, 1 }
 0x1ec   : > { %v6448_v46 = vadd.f32 %v1099_v63, %v1040_v55  ;;  %v1428_v55 = vrot.slane %v6459_v3, 1 }
 0x1ed   : > { %1453 = vrot.lane.b32.xlu1 %v6263_v40, %s5744_s10  ;;  %1455 = vrot.lane.b32.xlu0 %v6268_v14, %s5744_s10 }
 0x1ee   : > { %v1384_v0 = vrot.slane %v6448_v46, 1  ;;  %v1657_v51 = vrot.slane %v6448_v46, 2 }
 0x1ef   : > { %v1153_v48 = vpop.permute.xlu0 %1152  ;;  %v1107_v27 = vpop.permute.xlu1 %1106 }
 0x1f0   : > { %v6465_v57 = vadd.f32 %v1153_v48, %v1067_v59  ;;  %v6468_v40 = vsel %vm1372_vm2, %v1383_v62, %v1384_v0  ;;  %v6473_v14 = vsel %vm1372_vm2, %v1384_v0, %v8827_v18  ;;  %v6482_v30 = vsel %vm1645_vm3, %v1657_v51, %v8828_v4 }
 0x1f1   : > { %1728 = vrot.lane.b32.xlu1 %v6277_v41, %s5743_s9  ;;  %1726 = vrot.lane.b32.xlu0 %v6280_v24, %s5743_s9  ;;  %v6485_v32 = vsel %vm1645_vm3, %v1656_v38, %v1657_v51  ;;  %v8826_v41 = vrot.slane %v6452_v53, 2  ;;  %v1701_v24 = vrot.slane %v6459_v3, 2  ;;  %v8966_v18 = vrot.slane %v6347_v28, 2 }
 0x1f2   : > { %v1429_v45 = vrot.slane %v6465_v57, 1  ;;  %v1702_v63 = vrot.slane %v6465_v57, 2 }
 0x1f3   : > { %v6493_v44 = vpop.permute.xlu0 %917  ;;  %v1161_v59 = vpop.permute.xlu1 %1160 }
 0x1f4   : > { %v6498_v62 = vsel %vm1372_vm2, %v1429_v45, %v8825_v21  ;;  %v6501_v0 = vsel %vm1372_vm2, %v1428_v55, %v1429_v45  ;;  %v6508_v51 = vsel %vm1645_vm3, %v1701_v24, %v1702_v63  ;;  %v6513_v38 = vsel %vm1645_vm3, %v1702_v63, %v8826_v41 }
 0x1f5   : > { %1509 = vrot.lane.b32.xlu1 %v6293_v29, %s5744_s10  ;;  %1507 = vrot.lane.b32.xlu0 %v6296_v36, %s5744_s10  ;;  %v8963_v55 = vrot.slane %v6330_v50, 2  ;;  %v8964_v45 = vrot.slane %v6330_v50, 1  ;;  %v1044_v63 = vadd.f32 %v5977_v5, %v6390_v33  ;;  %v1071_v5 = vadd.f32 %v5979_v6, %v6412_v60 }
 0x1f7   : > { %v6515_v48 = vpop.permute.xlu0 %971  ;;  %v1103_v21 = vpop.permute.xlu1 %1102  ;;  %v6535_v41 = vadd.f32 %v1107_v27, %v1044_v63  ;;  %v6554_v63 = vadd.f32 %v1161_v59, %v1071_v5 }
 0x1f9   : > { %1780 = vrot.lane.b32.xlu1 %v6303_v16, %s5743_s9  ;;  %1782 = vrot.lane.b32.xlu0 %v6308_v23, %s5743_s9  ;;  %v1042_v23 = vadd.f32 %v6418_v1, %v5985_v7  ;;  %8965 = vst [vmem:[#allocation29_spill] sm:$0xff] %v6535_v41  ;;  %v1069_v7 = vadd.f32 %v6428_v56, %v5987_v8  ;;  %v8832_v27 = vrot.slane %v6535_v41, 1  ;;  %8970 = vst [vmem:[#allocation32_spill] sm:$0xff] %v6554_v63 }
 0x1fb   : > { %v6521_v29 = vpop.permute.xlu0 %913  ;;  %v1157_v36 = vpop.permute.xlu1 %1156  ;;  %v6544_v4 = vadd.f32 %v1103_v21, %v1042_v23 }
 0x1fd   : > { %1736 = vrot.lane.b32.xlu1 %v8963_v55, %s5743_s9  ;;  %1463 = vrot.lane.b32.xlu0 %v8964_v45, %s5744_s10  ;;  %v8967_v55 = vrot.slane %v6347_v28, 1  ;;  %v1043_v45 = vadd.f32 %v910_v31, %v5989_v11  ;;  %8968 = vst [vmem:[#allocation30_spill] sm:$0xff] %v6544_v4  ;;  %v1388_v6 = vrot.slane %v6544_v4, 1  ;;  %v6561_v11 = vadd.f32 %v1157_v36, %v1069_v7 }
 0x1fe   : > { %v8830_v36 = vrot.slane %v6554_v63, 1 }
 0x1ff   : > { %v6531_v24 = vpop.permute.xlu0 %967  ;;  %v916_v16 = vpop.permute.xlu1 %915  ;;  %8971 = vst [vmem:[#allocation33_spill] sm:$0xff] %v6561_v11  ;;  %v1433_v23 = vrot.slane %v6561_v11, 1 }
 0x201   : > { %1790 = vrot.lane.b32.xlu1 %v8966_v18, %s5743_s9  ;;  %1517 = vrot.lane.b32.xlu0 %v8967_v55, %s5744_s10  ;;  %v1070_v18 = vadd.f32 %v964_v52, %v5991_v12  ;;  %v8833_v12 = vrot.slane %v6535_v41, 2  ;;  %v1661_v52 = vrot.slane %v6544_v4, 2 }
 0x203   : > { %v970_v33 = vpop.permute.xlu1 %969  ;;  %v1105_v3 = vpop.permute.xlu0 %1104 }
 0x204   : > { %v6550_v1 = vadd.f32 %v1105_v3, %v1043_v45 }
 0x205   : > { %1459 = vrot.lane.b32.xlu1 %v6363_v9, %s5744_s10  ;;  %1461 = vrot.lane.b32.xlu0 %v6368_v10, %s5744_s10 }
 0x206   : > { %8969 = vst [vmem:[#allocation31_spill] sm:$0xff] %v6550_v1  ;;  %v1389_v8 = vrot.slane %v6550_v1, 1  ;;  %v1662_v60 = vrot.slane %v6550_v1, 2 }
 0x207   : > { %v1159_v56 = vpop.permute.xlu0 %1158  ;;  %v1113_v31 = vpop.permute.xlu1 %1112 }
 0x208   : > { %v6567_v3 = vadd.f32 %v1159_v56, %v1070_v18  ;;  %v6570_v9 = vsel %vm1372_vm2, %v1388_v6, %v1389_v8  ;;  %v6575_v10 = vsel %vm1372_vm2, %v1389_v8, %v8832_v27  ;;  %v6584_v21 = vsel %vm1645_vm3, %v1662_v60, %v8833_v12 }
 0x209   : > { %1734 = vrot.lane.b32.xlu1 %v6379_v25, %s5743_s9  ;;  %1732 = vrot.lane.b32.xlu0 %v6382_v49, %s5743_s9  ;;  %v6587_v59 = vsel %vm1645_vm3, %v1661_v52, %v1662_v60  ;;  %v8831_v25 = vrot.slane %v6554_v63, 2  ;;  %v1706_v49 = vrot.slane %v6561_v11, 2 }
 0x20a   : > { %8972 = vst [vmem:[#allocation34_spill] sm:$0xff] %v6567_v3  ;;  %v1434_v55 = vrot.slane %v6567_v3, 1  ;;  %v1707_v45 = vrot.slane %v6567_v3, 2 }
 0x20b   : > { %v6595_v5 = vpop.permute.xlu0 %923  ;;  %v1167_v7 = vpop.permute.xlu1 %1166 }
 0x20c   : > { %v6600_v18 = vsel %vm1372_vm2, %v1434_v55, %v8830_v36  ;;  %v6603_v6 = vsel %vm1372_vm2, %v1433_v23, %v1434_v55  ;;  %v6610_v8 = vsel %vm1645_vm3, %v1706_v49, %v1707_v45  ;;  %v6615_v60 = vsel %vm1645_vm3, %v1707_v45, %v8831_v25 }
 0x20d   : > { %1515 = vrot.lane.b32.xlu1 %v6395_v35, %s5744_s10  ;;  %1513 = vrot.lane.b32.xlu0 %v6398_v34, %s5744_s10  ;;  %v8973_v23 = vrot.slane %v6432_v54, 2  ;;  %v8974_v55 = vrot.slane %v6432_v54, 1  ;;  %v1047_v45 = vadd.f32 %v5997_v13, %v6493_v44  ;;  %v8975_v25 = vrot.slane %v6452_v53, 2  ;;  %v8979_v13 = vld [vmem:[#allocation3_spill] sm:$0xff] }
 0x20e   : > { %v1074_v44 = vadd.f32 %v8979_v13, %v6515_v48 }
 0x20f   : > { %v6617_v52 = vpop.permute.xlu0 %977  ;;  %v1109_v56 = vpop.permute.xlu1 %1108  ;;  %v6637_v36 = vadd.f32 %v1113_v31, %v1047_v45  ;;  %v8982_v45 = vld [vmem:[#allocation6_spill] sm:$0xff] }
 0x210   : > { %v6656_v4 = vadd.f32 %v1167_v7, %v1074_v44 }
 0x211   : > { %1786 = vrot.lane.b32.xlu1 %v6405_v47, %s5743_s9  ;;  %1788 = vrot.lane.b32.xlu0 %v6410_v58, %s5743_s9  ;;  %v1045_v58 = vadd.f32 %v6521_v29, %v6005_v15  ;;  %v8980_v15 = vld [vmem:[#allocation4_spill] sm:$0xff]  ;;  %v8840_v1 = vrot.slane %v6637_v36, 1 }
 0x212   : > { %v1072_v29 = vadd.f32 %v6531_v24, %v8980_v15 }
 0x213   : > { %v6623_v35 = vpop.permute.xlu0 %919  ;;  %v1163_v34 = vpop.permute.xlu1 %1162  ;;  %v6646_v12 = vadd.f32 %v1109_v56, %v1045_v58 }
 0x215   : > { %1742 = vrot.lane.b32.xlu1 %v8973_v23, %s5743_s9  ;;  %1469 = vrot.lane.b32.xlu0 %v8974_v55, %s5744_s10  ;;  %v8976_v23 = vrot.slane %v6452_v53, 1  ;;  %v8977_v55 = vld [vmem:[#allocation5_spill] sm:$0xff]  ;;  %v1393_v48 = vrot.slane %v6646_v12, 1 }
 0x216   : > { %v1046_v27 = vadd.f32 %v916_v16, %v8977_v55  ;;  %8978 = vst [vmem:[#allocation5_spill] sm:$0xff] %v6646_v12  ;;  %v6663_v16 = vadd.f32 %v1163_v34, %v1072_v29  ;;  %v8838_v55 = vrot.slane %v6656_v4, 1 }
 0x217   : > { %v6633_v49 = vpop.permute.xlu0 %973  ;;  %v922_v47 = vpop.permute.xlu1 %921 }
 0x218   : > { %8983 = vst [vmem:[#allocation4_spill] sm:$0xff] %v6663_v16  ;;  %v1438_v13 = vrot.slane %v6663_v16, 1 }
 0x219   : > { %1796 = vrot.lane.b32.xlu1 %v8975_v25, %s5743_s9  ;;  %1523 = vrot.lane.b32.xlu0 %v8976_v23, %s5744_s10  ;;  %v1073_v25 = vadd.f32 %v970_v33, %v8982_v45  ;;  %v8841_v33 = vrot.slane %v6637_v36, 2 }
 0x21b   : > { %v976_v11 = vpop.permute.xlu1 %975  ;;  %v1111_v3 = vpop.permute.xlu0 %1110 }
 0x21c   : > { %v6652_v31 = vadd.f32 %v1111_v3, %v1046_v27  ;;  %v1666_v3 = vrot.slane %v6646_v12, 2 }
 0x21d   : > { %1465 = vrot.lane.b32.xlu1 %v6468_v40, %s5744_s10  ;;  %1467 = vrot.lane.b32.xlu0 %v6473_v14, %s5744_s10 }
 0x21e   : > { %8981 = vst [vmem:[#allocation3_spill] sm:$0xff] %v6652_v31  ;;  %v1394_v24 = vrot.slane %v6652_v31, 1  ;;  %v1667_v27 = vrot.slane %v6652_v31, 2 }
 0x21f   : > { %v1165_v7 = vpop.permute.xlu0 %1164  ;;  %v1119_v56 = vpop.permute.xlu1 %1118 }
 0x220   : > { %v6669_v58 = vadd.f32 %v1165_v7, %v1073_v25  ;;  %v6672_v40 = vsel %vm1372_vm2, %v1393_v48, %v1394_v24  ;;  %v6677_v14 = vsel %vm1372_vm2, %v1394_v24, %v8840_v1  ;;  %v6686_v34 = vsel %vm1645_vm3, %v1667_v27, %v8841_v33 }
 0x221   : > { %1740 = vrot.lane.b32.xlu1 %v6482_v30, %s5743_s9  ;;  %1738 = vrot.lane.b32.xlu0 %v6485_v32, %s5743_s9  ;;  %v6689_v23 = vsel %vm1645_vm3, %v1666_v3, %v1667_v27  ;;  %v8839_v30 = vrot.slane %v6656_v4, 2  ;;  %v1711_v32 = vrot.slane %v6663_v16, 2  ;;  %v8989_v33 = vrot.slane %v6554_v63, 2 }
 0x222   : > { %8984 = vst [vmem:[#allocation6_spill] sm:$0xff] %v6669_v58  ;;  %v1439_v44 = vrot.slane %v6669_v58, 1  ;;  %v1712_v15 = vrot.slane %v6669_v58, 2 }
 0x223   : > { %v6697_v29 = vpop.permute.xlu0 %929  ;;  %v1173_v45 = vpop.permute.xlu1 %1172 }
 0x224   : > { %v6702_v25 = vsel %vm1372_vm2, %v1439_v44, %v8838_v55  ;;  %v6705_v48 = vsel %vm1372_vm2, %v1438_v13, %v1439_v44  ;;  %v6712_v24 = vsel %vm1645_vm3, %v1711_v32, %v1712_v15  ;;  %v6717_v27 = vsel %vm1645_vm3, %v1712_v15, %v8839_v30  ;;  %v8987_v15 = vld [vmem:[#allocation7_spill] sm:$0xff] }
 0x225   : > { %1521 = vrot.lane.b32.xlu1 %v6498_v62, %s5744_s10  ;;  %1519 = vrot.lane.b32.xlu0 %v6501_v0, %s5744_s10  ;;  %v8985_v0 = vrot.slane %v6535_v41, 2  ;;  %v8986_v44 = vrot.slane %v6535_v41, 1  ;;  %v1050_v32 = vadd.f32 %v8987_v15, %v6595_v5  ;;  %v8992_v5 = vld [vmem:[#allocation8_spill] sm:$0xff] }
 0x226   : > { %v1077_v15 = vadd.f32 %v8992_v5, %v6617_v52 }
 0x227   : > { %v6719_v3 = vpop.permute.xlu0 %983  ;;  %v1115_v7 = vpop.permute.xlu1 %1114 }
 0x229   : > { %1792 = vrot.lane.b32.xlu1 %v6508_v51, %s5743_s9  ;;  %1794 = vrot.lane.b32.xlu0 %v6513_v38, %s5743_s9  ;;  %v8988_v51 = vld [vmem:[#allocation9_spill] sm:$0xff]  ;;  %v6737_v38 = vadd.f32 %v1119_v56, %v1050_v32 }
 0x22a   : > { %v1048_v1 = vadd.f32 %v6623_v35, %v8988_v51  ;;  %v8993_v35 = vld [vmem:[#allocation10_spill] sm:$0xff]  ;;  %v8995_v51 = vld [vmem:[#allocation12_spill] sm:$0xff] }
 0x22b   : > { %v926_v62 = vpop.permute.xlu0 %925  ;;  %v1169_v13 = vpop.permute.xlu1 %1168  ;;  %v1075_v56 = vadd.f32 %v6633_v49, %v8993_v35  ;;  %v8849_v41 = vrot.slane %v6737_v38, 1 }
 0x22c   : > { %v6746_v58 = vadd.f32 %v1115_v7, %v1048_v1 }
 0x22d   : > { %1748 = vrot.lane.b32.xlu1 %v8985_v0, %s5743_s9  ;;  %1475 = vrot.lane.b32.xlu0 %v8986_v44, %s5744_s10  ;;  %v8990_v0 = vrot.slane %v6554_v63, 1  ;;  %v8991_v44 = vld [vmem:[#allocation11_spill] sm:$0xff]  ;;  %v6756_v63 = vadd.f32 %v1173_v45, %v1077_v15  ;;  %v6763_v52 = vadd.f32 %v1169_v13, %v1075_v56 }
 0x22e   : > { %v1049_v16 = vadd.f32 %v922_v47, %v8991_v44  ;;  %v1398_v1 = vrot.slane %v6746_v58, 1  ;;  %v1671_v47 = vrot.slane %v6746_v58, 2 }
 0x22f   : > { %v6733_v55 = vpop.permute.xlu0 %979  ;;  %v928_v30 = vpop.permute.xlu1 %927  ;;  %8996 = vst [vmem:[#allocation9_spill] sm:$0xff] %v6763_v52  ;;  %v8848_v44 = vrot.slane %v6756_v63, 1  ;;  %v1443_v5 = vrot.slane %v6763_v52, 1 }
 0x231   : > { %1802 = vrot.lane.b32.xlu1 %v8989_v33, %s5743_s9  ;;  %1529 = vrot.lane.b32.xlu0 %v8990_v0, %s5744_s10  ;;  %v1076_v33 = vadd.f32 %v976_v11, %v8995_v51  ;;  %v8850_v11 = vrot.slane %v6737_v38, 2 }
 0x233   : > { %v982_v31 = vpop.permute.xlu1 %981  ;;  %v1117_v12 = vpop.permute.xlu0 %1116 }
 0x234   : > { %v6752_v32 = vadd.f32 %v1117_v12, %v1049_v16 }
 0x235   : > { %1471 = vrot.lane.b32.xlu1 %v6570_v9, %s5744_s10  ;;  %1473 = vrot.lane.b32.xlu0 %v6575_v10, %s5744_s10 }
 0x236   : > { %8994 = vst [vmem:[#allocation7_spill] sm:$0xff] %v6752_v32  ;;  %v1399_v49 = vrot.slane %v6752_v32, 1  ;;  %v1672_v12 = vrot.slane %v6752_v32, 2 }
 0x237   : > { %v1171_v16 = vpop.permute.xlu0 %1170  ;;  %v1125_v45 = vpop.permute.xlu1 %1124 }
 0x238   : > { %v6769_v7 = vadd.f32 %v1171_v16, %v1076_v33  ;;  %v6772_v9 = vsel %vm1372_vm2, %v1398_v1, %v1399_v49  ;;  %v6777_v10 = vsel %vm1372_vm2, %v1399_v49, %v8849_v41  ;;  %v6786_v13 = vsel %vm1645_vm3, %v1672_v12, %v8850_v11 }
 0x239   : > { %1746 = vrot.lane.b32.xlu1 %v6584_v21, %s5743_s9  ;;  %1744 = vrot.lane.b32.xlu0 %v6587_v59, %s5743_s9  ;;  %v6789_v0 = vsel %vm1645_vm3, %v1671_v47, %v1672_v12  ;;  %v8851_v21 = vrot.slane %v6756_v63, 2  ;;  %v1716_v59 = vrot.slane %v6763_v52, 2  ;;  %v8998_v47 = vld [vmem:[#allocation13_spill] sm:$0xff] }
 0x23a   : > { %8997 = vst [vmem:[#allocation11_spill] sm:$0xff] %v6769_v7  ;;  %v1444_v15 = vrot.slane %v6769_v7, 1  ;;  %v1717_v35 = vrot.slane %v6769_v7, 2  ;;  %v1053_v16 = vadd.f32 %v8998_v47, %v6697_v29  ;;  %v9001_v29 = vld [vmem:[#allocation19_spill] sm:$0xff]  ;;  %v9005_v7 = vld [vmem:[#allocation16_spill] sm:$0xff] }
 0x23b   : > { %v936_v56 = vpop.permute.xlu0 %935  ;;  %v1179_v51 = vpop.permute.xlu1 %1178  ;;  %v1078_v52 = vadd.f32 %v6733_v55, %v9005_v7 }
 0x23c   : > { %v6800_v33 = vsel %vm1372_vm2, %v1444_v15, %v8848_v44  ;;  %v6803_v1 = vsel %vm1372_vm2, %v1443_v5, %v1444_v15  ;;  %v6810_v49 = vsel %vm1645_vm3, %v1716_v59, %v1717_v35  ;;  %v6815_v12 = vsel %vm1645_vm3, %v1717_v35, %v8851_v21  ;;  %v8999_v15 = vld [vmem:[#allocation15_spill] sm:$0xff] }
 0x23d   : > { %1527 = vrot.lane.b32.xlu1 %v6600_v18, %s5744_s10  ;;  %1525 = vrot.lane.b32.xlu0 %v6603_v6, %s5744_s10  ;;  %v1051_v41 = vadd.f32 %v926_v62, %v8999_v15  ;;  %v6820_v11 = vadd.f32 %v1125_v45, %v1053_v16  ;;  %v6829_v18 = vld [vmem:[%s8789_s2] ss:$0 sm:$0xff]  ;;  %v9000_v6 = vld [vmem:[#allocation17_spill] sm:$0xff]  ;;  %v1056_v59 = vadd.f32 %v9001_v29, %v936_v56  ;;  %v9003_v62 = vld [vmem:[#allocation14_spill] sm:$0xff] }
 0x23e   : > { %v1052_v35 = vadd.f32 %v928_v30, %v9000_v6  ;;  %v1080_v45 = vadd.f32 %v9003_v62, %v6719_v3  ;;  %v9006_v30 = vld [vmem:[#allocation18_spill] sm:$0xff]  ;;  %v9007_v3 = vrot.slane %v6637_v36, 2 }
 0x23f   : > { %v932_v44 = vpop.permute.xlu0 %931  ;;  %v1121_v5 = vpop.permute.xlu1 %1120  ;;  %v1079_v6 = vadd.f32 %v982_v31, %v9006_v30  ;;  %v8855_v7 = vrot.slane %v6820_v11, 2 }
 0x240   : > { %v6833_v47 = vadd.f32 %v1121_v5, %v1051_v41  ;;  %v1054_v16 = vadd.f32 %v932_v44, %v6065_v39  ;;  %v8854_v41 = vrot.slane %v6820_v11, 1  ;;  %v6846_v56 = vadd.f32 %v1179_v51, %v1080_v45  ;;  %v9009_v44 = vld [vmem:[#allocation20_spill] sm:$0xff]  ;;  %v9010_v51 = vld [vmem:[#allocation21_spill] sm:$0xff] }
 0x241   : > { %1798 = vrot.lane.b32.xlu1 %v6610_v8, %s5743_s9  ;;  %1800 = vrot.lane.b32.xlu0 %v6615_v60, %s5743_s9  ;;  %v1302_v60 = vadd.f32 %v6829_v18, %v6178_v22  ;;  %v9008_v39 = vrot.slane %v6637_v36, 1  ;;  %v6855_v5 = vadd.f32 %v9009_v44, %v1056_v59 }
 0x242   : > { %9002 = vst [vmem:[#allocation8_spill] sm:$0xff] %v6833_v47  ;;  %v1403_v22 = vrot.slane %v6833_v47, 1  ;;  %v1676_v29 = vrot.slane %v6833_v47, 2 }
 0x243   : > { %v1175_v8 = vpop.permute.xlu1 %1174  ;;  %v1123_v15 = vpop.permute.xlu0 %1122 }
 0x244   : > { %v6838_v21 = vadd.f32 %v1123_v15, %v1052_v35  ;;  %v6862_v35 = vadd.f32 %v9010_v51, %v1054_v16  ;;  %v6865_v62 = vadd.f32 %v1175_v8, %v1078_v52  ;;  %v8858_v16 = vrot.slane %v6846_v56, 1 }
 0x245   : > { %1754 = vrot.lane.b32.xlu1 %v9007_v3, %s5743_s9  ;;  %1481 = vrot.lane.b32.xlu0 %v9008_v39, %s5744_s10  ;;  %v9014_v52 = vrot.slane %v6656_v4, 2 }
 0x246   : > { %9004 = vst [vmem:[#allocation10_spill] sm:$0xff] %v6838_v21  ;;  %v1404_v55 = vrot.slane %v6838_v21, 1  ;;  %v1677_v31 = vrot.slane %v6838_v21, 2  ;;  %9011 = vst [vmem:[#allocation12_spill] sm:$0xff] %v6862_v35 }
 0x247   : > { %9012 = vst [vmem:[#allocation13_spill] sm:$0xff] %v6865_v62  ;;  %v934_v45 = vpop.permute.xlu1 %933  ;;  %v1177_v15 = vpop.permute.xlu0 %1176 }
 0x248   : > { %v1055_v59 = vadd.f32 %v934_v45, %v6069_v43  ;;  %v6868_v30 = vadd.f32 %v1177_v15, %v1079_v6  ;;  %v6871_v3 = vsel %vm1372_vm2, %v1403_v22, %v1404_v55  ;;  %v6876_v39 = vsel %vm1372_vm2, %v1404_v55, %v8854_v41  ;;  %v9016_v22 = vld [vmem:[#allocation22_spill] sm:$0xff] }
 0x249   : > { %1808 = vrot.lane.b32.xlu1 %v9014_v52, %s5743_s9  ;;  %v9015_v43 = vrot.slane %v6656_v4, 1  ;;  %v6889_v8 = vsel %vm1645_vm3, %v1677_v31, %v8855_v7  ;;  %v6892_v6 = vsel %vm1645_vm3, %v1676_v29, %v1677_v31  ;;  %v1448_v52 = vrot.slane %v6865_v62, 1 }
 0x24a   : > { %9013 = vst [vmem:[#allocation15_spill] sm:$0xff] %v6868_v30  ;;  %v6895_v55 = vadd.f32 %v9016_v22, %v1055_v59  ;;  %v1449_v51 = vrot.slane %v6868_v30, 1  ;;  %v1722_v45 = vrot.slane %v6868_v30, 2  ;;  %v1408_v31 = vrot.slane %v6862_v35, 1 }
 0x24b   : > { %1535 = vrot.lane.b32.xlu0 %v9015_v43, %s5744_s10  ;;  %v1721_v43 = vrot.slane %v6865_v62, 2  ;;  %v1779_v41 = vpop.permute.xlu1 %1778  ;;  %v1506_v44 = vpop.permute.xlu0 %1505  ;;  %v1681_v15 = vrot.slane %v6862_v35, 2 }
 0x24c   : > { %9017 = vst [vmem:[#allocation17_spill] sm:$0xff] %v6895_v55  ;;  %v1623_v29 = vadd.f32 %v1506_v44, %v1302_v60  ;;  %v1409_v59 = vrot.slane %v6895_v55, 1  ;;  %v1682_v22 = vrot.slane %v6895_v55, 2  ;;  %v6909_v30 = vsel %vm1372_vm2, %v1449_v51, %v8858_v16 }
 0x24d   : > { %1477 = vrot.lane.b32.xlu1 %v6672_v40, %s5744_s10  ;;  %v6917_v7 = vsel %vm1372_vm2, %v1448_v52, %v1449_v51  ;;  %v6920_v60 = vsel %vm1645_vm3, %v1721_v43, %v1722_v45  ;;  %v9018_v44 = vrot.slane %v6846_v56, 2  ;;  %v9019_v40 = vrot.slane %v6855_v5, 1 }
 0x24e   : > { %v1896_v16 = vadd.f32 %v1779_v41, %v1623_v29  ;;  %v6928_v55 = vsel %vm1372_vm2, %v1408_v31, %v1409_v59  ;;  %v9020_v51 = vrot.slane %v6855_v5, 2  ;;  %v6941_v21 = vsel %vm1645_vm3, %v1681_v15, %v1682_v22  ;;  %v9022_v31 = vld [vmem:[#allocation23_spill] sm:$0xff] }
 0x24f   : > { %1479 = vrot.lane.b32.xlu0 %v6677_v14, %s5744_s10  ;;  %v6925_v62 = vsel %vm1645_vm3, %v1722_v45, %v9018_v44  ;;  %v6933_v14 = vsel %vm1372_vm2, %v1409_v59, %v9019_v40  ;;  %v1504_v43 = vpop.permute.xlu1 %1503  ;;  %v1502_v35 = vpop.permute.xlu0 %1501  ;;  %v9021_v45 = vld [vmem:[#allocation24_spill] sm:$0xff]  ;;  %v1300_v29 = vadd.f32 %v6829_v18, %v9022_v31 }
 0x250   : > { %v6938_v52 = vsel %vm1645_vm3, %v1682_v22, %v9020_v51  ;;  %v1301_v41 = vadd.f32 %v6829_v18, %v9021_v45  ;;  %v1992_v44 = vmul.f32 0.2, %v1896_v16  ;;  %vm1944_vm4 = vcmp.gt.f32.partialorder %v1896_v16, 0.0 }
 0x251   : > { %1752 = vrot.lane.b32.xlu1 %v6686_v34, %s5743_s9  ;;  %v1621_v40 = vadd.f32 %v1502_v35, %v1300_v29 }
 0x252   : > { %v1622_v59 = vadd.f32 %v1504_v43, %v1301_v41  ;;  %v2040_v32 = vsel %vm1944_vm4, %v1896_v16, %v1992_v44 }
 0x253   : > { %1750 = vrot.lane.b32.xlu0 %v6689_v23, %s5743_s9  ;;  %v1777_v51 = vpop.permute.xlu1 %1776  ;;  %v1775_v47 = vpop.permute.xlu0 %1774  ;;  %v1278_v23 = vadd.f32 %v6829_v18, %v6232_v37  ;;  %v9023_v37 = vrot.slane %v6737_v38, 2 }
 0x254   : > { %v1895_v15 = vadd.f32 %v1777_v51, %v1622_v59  ;;  %v1894_v22 = vadd.f32 %v1775_v47, %v1621_v40  ;;  %v9024_v40 = vrot.slane %v6737_v38, 1 }
 0x255   : > { %1533 = vrot.lane.b32.xlu1 %v6702_v25, %s5744_s10  ;;  %v2079_v25 = vpack.c.bf16 %v2040_v32, %v2040_v32 }
 0x256   : > { %vm1943_vm5 = vcmp.gt.f32.partialorder %v1895_v15, 0.0  ;;  %v1991_v45 = vmul.f32 0.2, %v1895_v15  ;;  %vm1942_vm6 = vcmp.gt.f32.partialorder %v1894_v22, 0.0  ;;  %v1990_v34 = vmul.f32 0.2, %v1894_v22 }
 0x257   : > { %1531 = vrot.lane.b32.xlu0 %v6705_v48, %s5744_s10  ;;  %v1731_v31 = vpop.permute.xlu1 %1730  ;;  %v1458_v35 = vpop.permute.xlu0 %1457 }
 0x258   : > { %v2039_v43 = vsel %vm1943_vm5, %v1895_v15, %v1991_v45  ;;  %v2038_v41 = vsel %vm1942_vm6, %v1894_v22, %v1990_v34  ;;  %v1599_v47 = vadd.f32 %v1458_v35, %v1278_v23  ;;  %v1276_v45 = vadd.f32 %v6829_v18, %v6239_v20  ;;  %v5650_v20 = vld [vmem:[%s8788_s1 + $0x40] sm:$0xff]  }
 0x259   : > { %v6957_v29 = vpack.c.bf16 %v2039_v43, %v2038_v41  ;;  %1804 = vrot.lane.b32.xlu1 %v6712_v24, %s5743_s9  ;;  %v2191_v24 = vshll.u32 %v2079_v25, 16  ;;  %v1277_v34 = vadd.f32 %v6829_v18, %v6243_v19  ;;  %5403 = vmatprep.subr.bf16.mxu1 %v5650_v20 }
 0x25a   : > { %v1872_v59 = vadd.f32 %v1731_v31, %v1599_v47  ;;  %5404 = vmatpush3.bf16.msra.mxu1 %v5650_v20 }
 0x25b   : > { %1806 = vrot.lane.b32.xlu0 %v6717_v27, %s5743_s9  ;;  %v1785_v48 = vpop.permute.xlu1 %1784  ;;  %v1512_v16 = vpop.permute.xlu0 %1511  ;;  %v2184_v44 = vshrl.u32 %v6957_v29, 16  ;;  %v1305_v27 = vadd.f32 %v6829_v18, %v6247_v2 }
 0x25c   : > { %v1968_v31 = vmul.f32 0.2, %v1872_v59  ;;  %vm1920_vm8 = vcmp.gt.f32.partialorder %v1872_v59, 0.0 }
 0x25d   : > { %1760 = vrot.lane.b32.xlu1 %v9023_v37, %s5743_s9  ;;  %v6970_v51 = vrot.slane %v2184_v44, 7  ;;  %v1626_v23 = vadd.f32 %v1512_v16, %v1305_v27 }
 0x25e   : > { %v2016_v19 = vsel %vm1920_vm8, %v1872_v59, %v1968_v31  ;;  %v1304_v59 = vadd.f32 %v6829_v18, %v6260_v26 }
 0x25f   : > { %1487 = vrot.lane.b32.xlu0 %v9024_v40, %s5744_s10  ;;  %v1454_v32 = vpop.permute.xlu1 %1453  ;;  %v1456_v15 = vpop.permute.xlu0 %1455  ;;  %v6976_v22 = vsel %vm2094_vm7, %v6970_v51, %v2191_v24  ;;  %v1899_v44 = vadd.f32 %v1785_v48, %v1626_v23  ;;  %v9025_v48 = vld [vmem:[#allocation25_spill] sm:$0xff] }
 0x260   : > { %v1597_v2 = vadd.f32 %v1454_v32, %v1276_v45  ;;  %v1598_v35 = vadd.f32 %v1456_v15, %v1277_v34  ;;  %v1303_v27 = vadd.f32 %v6829_v18, %v9025_v48  ;;  %v2063_v15 = vpack.c.bf16 %v2016_v19, %v2016_v19 }
 0x261   : > { %1483 = vrot.lane.b32.xlu1 %v6772_v9, %s5744_s10  ;;  %vm1947_vm11 = vcmp.gt.f32.partialorder %v1899_v44, 0.0  ;;  %v9028_v48 = vrot.slane %v6855_v5, 2 }
 0x263   : > { %1485 = vrot.lane.b32.xlu0 %v6777_v10, %s5744_s10  ;;  %v1729_v43 = vpop.permute.xlu1 %1728  ;;  %v1727_v41 = vpop.permute.xlu0 %1726 }
 0x264   : > { %v1871_v47 = vadd.f32 %v1729_v43, %v1598_v35  ;;  %v1870_v25 = vadd.f32 %v1727_v41, %v1597_v2  ;;  %v5652_v43 = vld [vmem:[%s8788_s1 + $0x50] sm:$0xff]   ;;  %v9027_v41 = vrot.slane %v6820_v11, 1 }
 0x265   : > { %1758 = vrot.lane.b32.xlu1 %v6786_v13, %s5743_s9  ;;  %v5651_v13 = vld [vmem:[%s8788_s1 + $0x48] sm:$0xff]  }
 0x266   : > { %vm1919_vm9 = vcmp.gt.f32.partialorder %v1871_v47, 0.0  ;;  %v1967_v9 = vmul.f32 0.2, %v1871_v47  ;;  %vm1918_vm10 = vcmp.gt.f32.partialorder %v1870_v25, 0.0  ;;  %v1966_v10 = vmul.f32 0.2, %v1870_v25  ;;  %5405 = vmatprep.subr.bf16.mxu1 %v5651_v13 }
 0x267   : > { %1756 = vrot.lane.b32.xlu0 %v6789_v0, %s5743_s9  ;;  %v1510_v16 = vpop.permute.xlu1 %1509  ;;  %v1508_v37 = vpop.permute.xlu0 %1507  ;;  %v1995_v0 = vmul.f32 0.2, %v1899_v44  ;;  %5406 = vmatpush3.bf16.msra.mxu1 %v5651_v13  ;;  %v5653_v13 = vld [vmem:[%s8788_s1 + $0x58] sm:$0xff]  }
 0x268   : > { %v2015_v40 = vsel %vm1919_vm9, %v1871_v47, %v1967_v9  ;;  %v2014_v24 = vsel %vm1918_vm10, %v1870_v25, %v1966_v10  ;;  %v1625_v45 = vadd.f32 %v1510_v16, %v1304_v59  ;;  %v1624_v26 = vadd.f32 %v1508_v37, %v1303_v27  ;;  %5407 = vmatprep.subr.bf16.mxu1 %v5652_v43 }
 0x269   : > { %v7000_v32 = vpack.c.bf16 %v2015_v40, %v2014_v24  ;;  %1539 = vrot.lane.b32.xlu1 %v6800_v33, %s5744_s10  ;;  %v2043_v33 = vsel %vm1947_vm11, %v1899_v44, %v1995_v0  ;;  %v2103_v25 = vshll.u32 %v2063_v15, 16  ;;  %v1281_v44 = vadd.f32 %v6829_v18, %v6330_v50 }
 0x26a   : > { %v9029_v27 = vrot.slane %v6855_v5, 1  ;;  %v2081_v50 = vpack.c.bf16 %v2043_v33, %v2043_v33 }
 0x26b   : > { %1537 = vrot.lane.b32.xlu0 %v6803_v1, %s5744_s10  ;;  %v1781_v34 = vpop.permute.xlu1 %1780  ;;  %v1783_v31 = vpop.permute.xlu0 %1782  ;;  %v2096_v23 = vshrl.u32 %v7000_v32, 16  ;;  %v9026_v1 = vrot.slane %v6820_v11, 2  ;;  %5408 = vmatpush3.bf16.msra.mxu1 %v5652_v43 }
 0x26c   : > { %v1897_v2 = vadd.f32 %v1781_v34, %v1624_v26  ;;  %v1898_v35 = vadd.f32 %v1783_v31, %v1625_v45  ;;  %5409 = vmatprep.subr.bf16.mxu1 %v5653_v13  ;;  %v2202_v31 = vshll.u32 %v2081_v50, 16  ;;  %v9030_v50 = vld [vmem:[#allocation27_spill] sm:$0xff] }
 0x26d   : > { %1766 = vrot.lane.b32.xlu1 %v9026_v1, %s5743_s9  ;;  %v7016_v47 = vrot.slane %v2096_v23, 7  ;;  %v5654_v23 = vld [vmem:[%s8788_s1 + $0x60] sm:$0xff]  }
 0x26e   : > { %vm1945_vm12 = vcmp.gt.f32.partialorder %v1897_v2, 0.0  ;;  %v1993_v20 = vmul.f32 0.2, %v1897_v2  ;;  %vm1946_vm13 = vcmp.gt.f32.partialorder %v1898_v35, 0.0  ;;  %v1994_v19 = vmul.f32 0.2, %v1898_v35 }
 0x26f   : > { %1493 = vrot.lane.b32.xlu0 %v9027_v41, %s5744_s10  ;;  %v1737_v9 = vpop.permute.xlu1 %1736  ;;  %v1464_v10 = vpop.permute.xlu0 %1463  ;;  %v7022_v16 = vsel %vm2094_vm7, %v7016_v47, %v2103_v25  ;;  %5410 = vmatpush3.bf16.msra.mxu1 %v5653_v13  ;;  %v1307_v13 = vadd.f32 %v6829_v18, %v9030_v50 }
 0x270   : > { %v2041_v37 = vsel %vm1945_vm12, %v1897_v2, %v1993_v20  ;;  %v2042_v40 = vsel %vm1946_vm13, %v1898_v35, %v1994_v19  ;;  %v1602_v59 = vadd.f32 %v1464_v10, %v1281_v44  ;;  %v1308_v2 = vadd.f32 %v6829_v18, %v6347_v28  ;;  %5411 = vmatprep.subr.bf16.mxu1 %v5654_v23 }
 0x271   : > { %v7024_v24 = vpack.c.bf16 %v2042_v40, %v2041_v37  ;;  %1772 = vrot.lane.b32.xlu1 %v9028_v48, %s5743_s9 }
 0x272   : > { %v1875_v26 = vadd.f32 %v1737_v9, %v1602_v59  ;;  %v5656_v59 = vld [vmem:[%s8788_s1 + $0x70] sm:$0xff]  }
 0x273   : > { %1499 = vrot.lane.b32.xlu0 %v9029_v27, %s5744_s10  ;;  %v1791_v0 = vpop.permute.xlu1 %1790  ;;  %v1518_v15 = vpop.permute.xlu0 %1517  ;;  %v2195_v45 = vshrl.u32 %v7024_v24, 16  ;;  %5412 = vmatpush3.bf16.msra.mxu1 %v5654_v23  ;;  %v5657_v23 = vld [vmem:[%s8788_s1 + $0x78] sm:$0xff]  }
 0x274   : > { %v1971_v1 = vmul.f32 0.2, %v1875_v26  ;;  %v1629_v41 = vadd.f32 %v1518_v15, %v1308_v2  ;;  %vm1923_vm14 = vcmp.gt.f32.partialorder %v1875_v26, 0.0 }
 0x275   : > { %1489 = vrot.lane.b32.xlu1 %v6871_v3, %s5744_s10  ;;  %v7040_v34 = vrot.slane %v2195_v45, 7  ;;  %v1279_v3 = vadd.f32 %v6829_v18, %v6337_v42  ;;  %v5655_v42 = vld [vmem:[%s8788_s1 + $0x68] sm:$0xff]  }
 0x276   : > { %5413 = vmatprep.subr.bf16.mxu1 %v5655_v42  ;;  %v2019_v44 = vsel %vm1923_vm14, %v1875_v26, %v1971_v1  ;;  %v1902_v10 = vadd.f32 %v1791_v0, %v1629_v41 }
 0x277   : > { %1491 = vrot.lane.b32.xlu0 %v6876_v39, %s5744_s10  ;;  %v1460_v35 = vpop.permute.xlu1 %1459  ;;  %v1462_v43 = vpop.permute.xlu0 %1461  ;;  %v7049_v33 = vsel %vm2094_vm7, %v7040_v34, %v2202_v31  ;;  %v1280_v39 = vadd.f32 %v6829_v18, %v6343_v17  ;;  %5414 = vmatpush3.bf16.msra.mxu1 %v5655_v42  ;;  %v2065_v45 = vpack.c.bf16 %v2019_v44, %v2019_v44 }
 0x278   : > { %v1600_v28 = vadd.f32 %v1460_v35, %v1279_v3  ;;  %vm1950_vm1 = vcmp.gt.f32.partialorder %v1902_v10, 0.0  ;;  %5415 = vmatprep.subr.bf16.mxu1 %v5656_v59 }
 0x279   : > { %1764 = vrot.lane.b32.xlu1 %v6889_v8, %s5743_s9  ;;  %v1601_v25 = vadd.f32 %v1462_v43, %v1280_v39  ;;  %v2114_v41 = vshll.u32 %v2065_v45, 16 }
 0x27b   : > { %1762 = vrot.lane.b32.xlu0 %v6892_v6, %s5743_s9  ;;  %v1735_v20 = vpop.permute.xlu1 %1734  ;;  %v1733_v19 = vpop.permute.xlu0 %1732  ;;  %5416 = vmatpush3.bf16.msra.mxu1 %v5656_v59 }
 0x27c   : > { %v1874_v17 = vadd.f32 %v1735_v20, %v1601_v25  ;;  %v1873_v9 = vadd.f32 %v1733_v19, %v1600_v28  ;;  %5417 = vmatprep.subr.bf16.mxu1 %v5657_v23  ;;  %v1284_v20 = vadd.f32 %v6829_v18, %v6432_v54 }
 0x27d   : > { %1495 = vrot.lane.b32.xlu1 %v6928_v55, %s5744_s10  ;;  %v9031_v55 = vld [vmem:[#allocation26_spill] sm:$0xff] }
 0x27e   : > { %vm1922_vm15 = vcmp.gt.f32.partialorder %v1874_v17, 0.0  ;;  %v1970_v8 = vmul.f32 0.2, %v1874_v17  ;;  %vm1921_vm0 = vcmp.gt.f32.partialorder %v1873_v9, 0.0  ;;  %v1969_v6 = vmul.f32 0.2, %v1873_v9 }
 0x27f   : > { %1497 = vrot.lane.b32.xlu0 %v6933_v14, %s5744_s10  ;;  %v1516_v37 = vpop.permute.xlu1 %1515  ;;  %v1514_v40 = vpop.permute.xlu0 %1513  ;;  %v1306_v0 = vadd.f32 %v6829_v18, %v9031_v55  ;;  %v1998_v14 = vmul.f32 0.2, %v1902_v10  ;;  %5418 = vmatpush3.bf16.msra.mxu1 %v5657_v23  ;;  %v1311_v55 = vadd.f32 %v6829_v18, %v6452_v53 }
 0x280   : > { %v2018_v48 = vsel %vm1922_vm15, %v1874_v17, %v1970_v8  ;;  %v2017_v27 = vsel %vm1921_vm0, %v1873_v9, %v1969_v6  ;;  %v1628_v26 = vadd.f32 %v1516_v37, %v1307_v13  ;;  %v2402_v9 = vld [vmem:[#allocation2 + $0x8] sm:$0xff]  ;;  %v9032_v8 = vrot.slane %v6756_v63, 2 }
 0x281   : > { %v7073_v15 = vpack.c.bf16 %v2018_v48, %v2017_v27  ;;  %1770 = vrot.lane.b32.xlu1 %v6938_v52, %s5743_s9  ;;  %v1627_v31 = vadd.f32 %v1514_v40, %v1306_v0  ;;  %v2401_v52 = vld [vmem:[#allocation2] sm:$0xff]  ;;  %v2046_v1 = vsel %vm1950_vm1, %v1902_v10, %v1998_v14  ;;  %v9033_v6 = vrot.slane %v6756_v63, 1 }
 0x282   : > { %5419 = vmatprep.mubr.bf16.mxu1 %v2401_v52  ;;  %v2083_v37 = vpack.c.bf16 %v2046_v1, %v2046_v1  ;;  %v2099_v48 = vshll.u32 %v7000_v32, 16 }
 0x283   : > { %1768 = vrot.lane.b32.xlu0 %v6941_v21, %s5743_s9  ;;  %v1787_v2 = vpop.permute.xlu1 %1786  ;;  %v1789_v35 = vpop.permute.xlu0 %1788  ;;  %v2107_v43 = vshrl.u32 %v7073_v15, 16  ;;  %5420 = vmatmul.mubr.bf16.vlgmr.msra.gmra.mrb[36].mxu1 %v2402_v9 }
 0x284   : > { %v1900_v3 = vadd.f32 %v1787_v2, %v1627_v31  ;;  %v1901_v39 = vadd.f32 %v1789_v35, %v1628_v26  ;;  %v2213_v13 = vshll.u32 %v2083_v37, 16  ;;  %v2101_v45 = vor.u32 %v2099_v48, %v7016_v47 }
 0x285   : > { %1810 = vrot.lane.b32.xlu1 %v6810_v49, %s5743_s9  ;;  %v2109_v21 = vrot.slane %v2107_v43, 7 }
 0x286   : > { %vm1948_vm4 = vcmp.gt.f32.partialorder %v1900_v3, 0.0  ;;  %v1996_v28 = vmul.f32 0.2, %v1900_v3  ;;  %vm1949_vm5 = vcmp.gt.f32.partialorder %v1901_v39, 0.0  ;;  %v1997_v25 = vmul.f32 0.2, %v1901_v39 }
 0x287   : > { %1812 = vrot.lane.b32.xlu0 %v6815_v12, %s5743_s9  ;;  %v1743_v42 = vpop.permute.xlu1 %1742  ;;  %v1470_v19 = vpop.permute.xlu0 %1469  ;;  %v2116_v17 = vsel %vm2094_vm7, %v2109_v21, %v2114_v41 }
 0x288   : > { %v2044_v49 = vsel %vm1948_vm4, %v1900_v3, %v1996_v28  ;;  %v2045_v44 = vsel %vm1949_vm5, %v1901_v39, %v1997_v25  ;;  %v1605_v12 = vadd.f32 %v1470_v19, %v1284_v20 }
 0x289   : > { %v7090_v10 = vpack.c.bf16 %v2045_v44, %v2044_v49  ;;  %1814 = vrot.lane.b32.xlu1 %v9032_v8, %s5743_s9 }
 0x28a   : > { %v1878_v27 = vadd.f32 %v1743_v42, %v1605_v12  ;;  %v9034_v42 = vld [vmem:[#allocation28_spill] sm:$0xff] }
 0x28b   : > { %1541 = vrot.lane.b32.xlu0 %v9033_v6, %s5744_s10  ;;  %v1797_v54 = vpop.permute.xlu1 %1796  ;;  %v1524_v40 = vpop.permute.xlu0 %1523  ;;  %v2206_v59 = vshrl.u32 %v7090_v10, 16  ;;  %v1309_v20 = vadd.f32 %v6829_v18, %v9034_v42 }
 0x28c   : > { %v1974_v26 = vmul.f32 0.2, %v1878_v27  ;;  %v1632_v31 = vadd.f32 %v1524_v40, %v1311_v55  ;;  %vm1926_vm6 = vcmp.gt.f32.partialorder %v1878_v27, 0.0  ;;  %v9037_v55 = vld [vmem:[#allocation29_spill] sm:$0xff] }
 0x28d   : > { %1545 = vrot.lane.b32.xlu1 %v6909_v30, %s5744_s10  ;;  %v7104_v50 = vrot.slane %v2206_v59, 7  ;;  %v1282_v30 = vadd.f32 %v6829_v18, %v6442_v61  ;;  %v2110_v61 = vshll.u32 %v7073_v15, 16  ;;  %v1310_v15 = vadd.f32 %v6829_v18, %v6465_v57 }
 0x28e   : > { %v2022_v3 = vsel %vm1926_vm6, %v1878_v27, %v1974_v26  ;;  %v1905_v39 = vadd.f32 %v1797_v54, %v1632_v31  ;;  %v9035_v54 = vrot.slane %v6846_v56, 2  ;;  %v2187_v31 = vshll.u32 %v6957_v29, 16 }
 0x28f   : > { %1543 = vrot.lane.b32.xlu0 %v6917_v7, %s5744_s10  ;;  %v1466_v0 = vpop.permute.xlu1 %1465  ;;  %v1468_v14 = vpop.permute.xlu0 %1467  ;;  %v7111_v32 = vsel %vm2094_vm7, %v7104_v50, %v2213_v13  ;;  %v1283_v7 = vadd.f32 %v6829_v18, %v6448_v46  ;;  %v2112_v41 = vor.u32 %v2110_v61, %v2109_v21 }
 0x290   : > { %v1603_v53 = vadd.f32 %v1466_v0, %v1282_v30  ;;  %v2001_v19 = vmul.f32 0.2, %v1905_v39  ;;  %vm1953_vm10 = vcmp.gt.f32.partialorder %v1905_v39, 0.0  ;;  %v1287_v0 = vadd.f32 %v6829_v18, %v9037_v55 }
 0x291   : > { %2273 = vrot.lane.b32.xlu1 %v7022_v16, %s5745_s15  ;;  %v1604_v47 = vadd.f32 %v1468_v14, %v1283_v7 }
 0x292   : > { %v2049_v37 = vsel %vm1953_vm10, %v1905_v39, %v2001_v19 }
 0x293   : > { %2271 = vrot.lane.b32.xlu0 %v2101_v45, %s5745_s15  ;;  %v1741_v23 = vpop.permute.xlu1 %1740  ;;  %v1739_v2 = vpop.permute.xlu0 %1738 }
 0x294   : > { %v1877_v35 = vadd.f32 %v1741_v23, %v1604_v47  ;;  %v1876_v43 = vadd.f32 %v1739_v2, %v1603_v53  ;;  %v2085_v23 = vpack.c.bf16 %v2049_v37, %v2049_v37 }
 0x295   : > { %1816 = vrot.lane.b32.xlu1 %v6920_v60, %s5743_s9 }
 0x296   : > { %vm1925_vm8 = vcmp.gt.f32.partialorder %v1877_v35, 0.0  ;;  %v1973_v46 = vmul.f32 0.2, %v1877_v35  ;;  %vm1924_vm9 = vcmp.gt.f32.partialorder %v1876_v43, 0.0  ;;  %v1972_v16 = vmul.f32 0.2, %v1876_v43 }
 0x297   : > { %1818 = vrot.lane.b32.xlu0 %v6925_v62, %s5743_s9  ;;  %v1522_v52 = vpop.permute.xlu1 %1521  ;;  %v1520_v1 = vpop.permute.xlu0 %1519  ;;  %v2067_v62 = vpack.c.bf16 %v2022_v3, %v2022_v3  ;;  %v2224_v39 = vshll.u32 %v2085_v23, 16 }
 0x298   : > { %v2021_v28 = vsel %vm1925_vm8, %v1877_v35, %v1973_v46  ;;  %v2020_v25 = vsel %vm1924_vm9, %v1876_v43, %v1972_v16  ;;  %v1631_v9 = vadd.f32 %v1522_v52, %v1310_v15  ;;  %v1630_v49 = vadd.f32 %v1520_v1, %v1309_v20  ;;  %v9038_v46 = vld [vmem:[#allocation32_spill] sm:$0xff] }
 0x299   : > { %v2066_v60 = vpack.c.bf16 %v2021_v28, %v2020_v25  ;;  %2277 = vrot.lane.b32.xlu1 %v2116_v17, %s5745_s15  ;;  %v9036_v17 = vrot.slane %v6846_v56, 1  ;;  %v2125_v59 = vshll.u32 %v2067_v62, 16  ;;  %v2189_v43 = vor.u32 %v2187_v31, %v6970_v51  ;;  %v9039_v51 = vld [vmem:[#allocation30_spill] sm:$0xff]  ;;  %v9040_v25 = vld [vmem:[#allocation31_spill] sm:$0xff] }
 0x29a   : > { %v1314_v16 = vadd.f32 %v6829_v18, %v9038_v46  ;;  %v1285_v28 = vadd.f32 %v6829_v18, %v9039_v51 }
 0x29b   : > { %2275 = vrot.lane.b32.xlu0 %v2112_v41, %s5745_s15  ;;  %v1793_v44 = vpop.permute.xlu1 %1792  ;;  %v1795_v21 = vpop.permute.xlu0 %1794  ;;  %v2118_v12 = vshrl.u32 %v2066_v60, 16  ;;  %v2121_v57 = vshll.u32 %v2066_v60, 16 }
 0x29c   : > { %v1903_v8 = vadd.f32 %v1793_v44, %v1630_v49  ;;  %v1904_v6 = vadd.f32 %v1795_v21, %v1631_v9 }
 0x29d   : > { %1820 = vrot.lane.b32.xlu1 %v9035_v54, %s5743_s9  ;;  %v2120_v40 = vrot.slane %v2118_v12, 7 }
 0x29e   : > { %vm1951_vm11 = vcmp.gt.f32.partialorder %v1903_v8, 0.0  ;;  %v1999_v48 = vmul.f32 0.2, %v1903_v8  ;;  %vm1952_vm12 = vcmp.gt.f32.partialorder %v1904_v6, 0.0  ;;  %v2000_v27 = vmul.f32 0.2, %v1904_v6 }
 0x29f   : > { %1547 = vrot.lane.b32.xlu0 %v9036_v17, %s5744_s10  ;;  %v1749_v13 = vpop.permute.xlu1 %1748  ;;  %v1476_v14 = vpop.permute.xlu0 %1475  ;;  %v2127_v45 = vsel %vm2094_vm7, %v2120_v40, %v2125_v59  ;;  %v2123_v30 = vor.u32 %v2121_v57, %v2120_v40  ;;  %v9041_v17 = vld [vmem:[#allocation34_spill] sm:$0xff]  ;;  %v9042_v59 = vld [vmem:[#allocation33_spill] sm:$0xff] }
 0x2a0   : > { %v2047_v7 = vsel %vm1951_vm11, %v1903_v8, %v1999_v48  ;;  %v2048_v26 = vsel %vm1952_vm12, %v1904_v6, %v2000_v27  ;;  %v1608_v47 = vadd.f32 %v1476_v14, %v1287_v0  ;;  %v1313_v40 = vadd.f32 %v6829_v18, %v9041_v17 }
 0x2a1   : > { %v7141_v53 = vpack.c.bf16 %v2048_v26, %v2047_v7  ;;  %2281 = vrot.lane.b32.xlu1 %v2127_v45, %s5745_s15  ;;  %v1312_v48 = vadd.f32 %v6829_v18, %v9042_v59 }
 0x2a2   : > { %v1881_v3 = vadd.f32 %v1749_v13, %v1608_v47 }
 0x2a3   : > { %2279 = vrot.lane.b32.xlu0 %v2123_v30, %s5745_s15  ;;  %v1803_v2 = vpop.permute.xlu1 %1802  ;;  %v1530_v35 = vpop.permute.xlu0 %1529  ;;  %v2217_v61 = vshrl.u32 %v7141_v53, 16 }
 0x2a4   : > { %v1977_v15 = vmul.f32 0.2, %v1881_v3  ;;  %v1635_v42 = vadd.f32 %v1530_v35, %v1314_v16  ;;  %vm1929_vm13 = vcmp.gt.f32.partialorder %v1881_v3, 0.0 }
 0x2a5   : > { %2305 = vrot.lane.b32.xlu1 %v6976_v22, %s5745_s15  ;;  %v7150_v29 = vrot.slane %v2217_v61, 7  ;;  %v1286_v22 = vadd.f32 %v6829_v18, %v9040_v25 }
 0x2a6   : > { %v2025_v44 = vsel %vm1929_vm13, %v1881_v3, %v1977_v15  ;;  %v1908_v21 = vadd.f32 %v1803_v2, %v1635_v42 }
 0x2a7   : > { %2303 = vrot.lane.b32.xlu0 %v2189_v43, %s5745_s15  ;;  %v1472_v52 = vpop.permute.xlu1 %1471  ;;  %v1474_v1 = vpop.permute.xlu0 %1473  ;;  %v7156_v41 = vsel %vm2094_vm7, %v7150_v29, %v2224_v39  ;;  %v2069_v55 = vpack.c.bf16 %v2025_v44, %v2025_v44  ;;  %v1290_v39 = vadd.f32 %v6829_v18, %v6637_v36 }
 0x2a8   : > { %v1606_v20 = vadd.f32 %v1472_v52, %v1285_v28  ;;  %v1607_v19 = vadd.f32 %v1474_v1, %v1286_v22  ;;  %v2004_v27 = vmul.f32 0.2, %v1908_v21  ;;  %vm1956_vm0 = vcmp.gt.f32.partialorder %v1908_v21, 0.0 }
 0x2a9   : > { %v2136_v35 = vshll.u32 %v2069_v55, 16  ;;  %v2198_v28 = vshll.u32 %v7024_v24, 16 }
 0x2aa   : > { %v2052_v47 = vsel %vm1956_vm0, %v1908_v21, %v2004_v27 }
 0x2ab   : > { %v1747_v60 = vpop.permute.xlu1 %1746  ;;  %v1745_v62 = vpop.permute.xlu0 %1744  ;;  %v2087_v15 = vpack.c.bf16 %v2052_v47, %v2052_v47  ;;  %v2200_v36 = vor.u32 %v2198_v28, %v7040_v34  ;;  %v9043_v34 = vld [vmem:[#allocation5_spill] sm:$0xff] }
 0x2ac   : > { %v1880_v9 = vadd.f32 %v1747_v60, %v1607_v19  ;;  %v1879_v49 = vadd.f32 %v1745_v62, %v1606_v20 }
 0x2ad   : > { %v2235_v24 = vshll.u32 %v2087_v15, 16 }
 0x2ae   : > { %vm1928_vm14 = vcmp.gt.f32.partialorder %v1880_v9, 0.0  ;;  %v1976_v12 = vmul.f32 0.2, %v1880_v9  ;;  %vm1927_vm15 = vcmp.gt.f32.partialorder %v1879_v49, 0.0  ;;  %v1975_v8 = vmul.f32 0.2, %v1879_v49 }
 0x2af   : > { %v1528_v6 = vpop.permute.xlu1 %1527  ;;  %v1526_v37 = vpop.permute.xlu0 %1525 }
 0x2b0   : > { %v2024_v57 = vsel %vm1928_vm14, %v1880_v9, %v1976_v12  ;;  %v2023_v54 = vsel %vm1927_vm15, %v1879_v49, %v1975_v8  ;;  %v1634_v0 = vadd.f32 %v1528_v6, %v1313_v40  ;;  %v1633_v14 = vadd.f32 %v1526_v37, %v1312_v48  ;;  %v9044_v8 = vld [vmem:[#allocation3_spill] sm:$0xff] }
 0x2b1   : > { %v2068_v13 = vpack.c.bf16 %v2024_v57, %v2023_v54  ;;  %v1317_v9 = vadd.f32 %v6829_v18, %v6656_v4  ;;  %v1288_v12 = vadd.f32 %v6829_v18, %v9043_v34 }
 0x2b3   : > { %v1799_v45 = vpop.permute.xlu1 %1798  ;;  %v1801_v30 = vpop.permute.xlu0 %1800  ;;  %v2129_v7 = vshrl.u32 %v2068_v13, 16  ;;  %v2132_v23 = vshll.u32 %v2068_v13, 16 }
 0x2b4   : > { %v1906_v26 = vadd.f32 %v1799_v45, %v1633_v14  ;;  %v1907_v31 = vadd.f32 %v1801_v30, %v1634_v0 }
 0x2b5   : > { %v2131_v2 = vrot.slane %v2129_v7, 7  ;;  %v9045_v7 = vld [vmem:[#allocation6_spill] sm:$0xff] }
 0x2b6   : > { %vm1954_vm1 = vcmp.gt.f32.partialorder %v1906_v26, 0.0  ;;  %v2002_v43 = vmul.f32 0.2, %v1906_v26  ;;  %vm1955_vm4 = vcmp.gt.f32.partialorder %v1907_v31, 0.0  ;;  %v2003_v61 = vmul.f32 0.2, %v1907_v31 }
 0x2b7   : > { %v1755_v3 = vpop.permute.xlu1 %1754  ;;  %v1482_v46 = vpop.permute.xlu0 %1481  ;;  %v2138_v16 = vsel %vm2094_vm7, %v2131_v2, %v2136_v35  ;;  %v2134_v52 = vor.u32 %v2132_v23, %v2131_v2 }
 0x2b8   : > { %v2050_v1 = vsel %vm1954_vm1, %v1906_v26, %v2002_v43  ;;  %v2051_v51 = vsel %vm1955_vm4, %v1907_v31, %v2003_v61  ;;  %2285 = vrot.lane.b32.xlu1 %v2138_v16, %s5745_s15  ;;  %v1611_v22 = vadd.f32 %v1482_v46, %v1290_v39  ;;  %v1316_v26 = vadd.f32 %v6829_v18, %v9045_v7  ;;  %v9046_v31 = vld [vmem:[#allocation4_spill] sm:$0xff] }
 0x2b9   : > { %v7171_v25 = vpack.c.bf16 %v2051_v51, %v2050_v1  ;;  %2283 = vrot.lane.b32.xlu0 %v2134_v52, %s5745_s15  ;;  %v1315_v47 = vadd.f32 %v6829_v18, %v9046_v31  ;;  %v1293_v1 = vadd.f32 %v6829_v18, %v6737_v38  ;;  %v2209_v38 = vshll.u32 %v7090_v10, 16 }
 0x2ba   : > { %v1884_v60 = vadd.f32 %v1755_v3, %v1611_v22 }
 0x2bb   : > { %v1809_v42 = vpop.permute.xlu1 %1808  ;;  %v2228_v19 = vshrl.u32 %v7171_v25, 16 }
 0x2bc   : > { %2309 = vrot.lane.b32.xlu1 %v7049_v33, %s5745_s15  ;;  %v1289_v33 = vadd.f32 %v6829_v18, %v9044_v8  ;;  %v1980_v6 = vmul.f32 0.2, %v1884_v60  ;;  %vm1932_vm5 = vcmp.gt.f32.partialorder %v1884_v60, 0.0 }
 0x2bd   : > { %v1536_v20 = vpop.permute.xlu0 %1535  ;;  %2307 = vrot.lane.b32.xlu0 %v2200_v36, %s5745_s15  ;;  %v7179_v62 = vrot.slane %v2228_v19, 7 }
 0x2be   : > { %v1638_v37 = vadd.f32 %v1536_v20, %v1317_v9  ;;  %v2028_v48 = vsel %vm1932_vm5, %v1884_v60, %v1980_v6 }
 0x2bf   : > { %v1478_v49 = vpop.permute.xlu1 %1477  ;;  %v7185_v21 = vsel %vm2094_vm7, %v7179_v62, %v2235_v24  ;;  %v2071_v35 = vpack.c.bf16 %v2028_v48, %v2028_v48 }
 0x2c0   : > { %v1609_v57 = vadd.f32 %v1478_v49, %v1288_v12  ;;  %v1911_v27 = vadd.f32 %v1809_v42, %v1638_v37  ;;  %v2211_v37 = vor.u32 %v2209_v38, %v7104_v50 }
 0x2c1   : > { %v1480_v44 = vpop.permute.xlu0 %1479  ;;  %v2147_v15 = vshll.u32 %v2071_v35, 16 }
 0x2c2   : > { %v1610_v54 = vadd.f32 %v1480_v44, %v1289_v33  ;;  %v2007_v23 = vmul.f32 0.2, %v1911_v27  ;;  %vm1959_vm9 = vcmp.gt.f32.partialorder %v1911_v27, 0.0 }
 0x2c3   : > { %v1753_v17 = vpop.permute.xlu1 %1752 }
 0x2c4   : > { %v1883_v4 = vadd.f32 %v1753_v17, %v1610_v54  ;;  %v2055_v51 = vsel %vm1959_vm9, %v1911_v27, %v2007_v23  ;;  %v1291_v54 = vadd.f32 %v6829_v18, %v6746_v58  ;;  %v9047_v17 = vld [vmem:[#allocation7_spill] sm:$0xff] }
 0x2c5   : > { %v1751_v40 = vpop.permute.xlu0 %1750  ;;  %v2089_v12 = vpack.c.bf16 %v2055_v51, %v2055_v51 }
 0x2c6   : > { %v1882_v59 = vadd.f32 %v1751_v40, %v1609_v57  ;;  %vm1931_vm6 = vcmp.gt.f32.partialorder %v1883_v4, 0.0  ;;  %v1979_v13 = vmul.f32 0.2, %v1883_v4  ;;  %v1292_v40 = vadd.f32 %v6829_v18, %v9047_v17 }
 0x2c7   : > { %v1534_v0 = vpop.permute.xlu1 %1533 }
 0x2c8   : > { %vm1930_vm8 = vcmp.gt.f32.partialorder %v1882_v59, 0.0  ;;  %v1978_v55 = vmul.f32 0.2, %v1882_v59  ;;  %v2027_v45 = vsel %vm1931_vm6, %v1883_v4, %v1979_v13  ;;  %v1637_v43 = vadd.f32 %v1534_v0, %v1316_v26 }
 0x2c9   : > { %v1532_v14 = vpop.permute.xlu0 %1531 }
 0x2ca   : > { %v2026_v30 = vsel %vm1930_vm8, %v1882_v59, %v1978_v55  ;;  %v1636_v61 = vadd.f32 %v1532_v14, %v1315_v47  ;;  %v2246_v59 = vshll.u32 %v2089_v12, 16 }
 0x2cb   : > { %v2070_v2 = vpack.c.bf16 %v2027_v45, %v2026_v30  ;;  %v1805_v3 = vpop.permute.xlu1 %1804 }
 0x2cc   : > { %v1909_v16 = vadd.f32 %v1805_v3, %v1636_v61 }
 0x2cd   : > { %v1807_v39 = vpop.permute.xlu0 %1806  ;;  %v2140_v46 = vshrl.u32 %v2070_v2, 16  ;;  %v2143_v28 = vshll.u32 %v2070_v2, 16  ;;  %v7225_v2 = vld [vmem:[%s8789_s2] ss:$0 sm:$0xff] }
 0x2ce   : > { %v1910_v52 = vadd.f32 %v1807_v39, %v1637_v43  ;;  %vm1957_vm10 = vcmp.gt.f32.partialorder %v1909_v16, 0.0  ;;  %v2005_v42 = vmul.f32 0.2, %v1909_v16  ;;  %v1296_v35 = vadd.f32 %v7225_v2, %v6820_v11 }
 0x2cf   : > { %v2142_v22 = vrot.slane %v2140_v46, 7  ;;  %v1761_v36 = vpop.permute.xlu1 %1760  ;;  %v1299_v11 = vadd.f32 %v7225_v2, %v6855_v5 }
 0x2d0   : > { %vm1958_vm11 = vcmp.gt.f32.partialorder %v1910_v52, 0.0  ;;  %v2006_v20 = vmul.f32 0.2, %v1910_v52  ;;  %v2053_v9 = vsel %vm1957_vm10, %v1909_v16, %v2005_v42 }
 0x2d1   : > { %v1488_v19 = vpop.permute.xlu0 %1487  ;;  %v2149_v60 = vsel %vm2094_vm7, %v2142_v22, %v2147_v15  ;;  %v2145_v24 = vor.u32 %v2143_v28, %v2142_v22  ;;  %v2220_v22 = vshll.u32 %v7141_v53, 16 }
 0x2d2   : > { %v2054_v49 = vsel %vm1958_vm11, %v1910_v52, %v2006_v20  ;;  %v1614_v44 = vadd.f32 %v1488_v19, %v1293_v1  ;;  %2289 = vrot.lane.b32.xlu1 %v2149_v60, %s5745_s15  ;;  %v9048_v19 = vld [vmem:[#allocation8_spill] sm:$0xff]  ;;  %vm2369_vm11 = vcmask 57376  }
 0x2d3   : > { %v7200_v34 = vpack.c.bf16 %v2054_v49, %v2053_v9  ;;  %2287 = vrot.lane.b32.xlu0 %v2145_v24, %s5745_s15  ;;  %v1484_v33 = vpop.permute.xlu1 %1483  ;;  %v1294_v60 = vadd.f32 %v7225_v2, %v9048_v19  ;;  %v9049_v24 = vld [vmem:[#allocation10_spill] sm:$0xff] }
 0x2d4   : > { %v1887_v8 = vadd.f32 %v1761_v36, %v1614_v44  ;;  %v1612_v48 = vadd.f32 %v1484_v33, %v1291_v54  ;;  %v2222_v36 = vor.u32 %v2220_v22, %v7150_v29  ;;  %v1295_v9 = vadd.f32 %v7225_v2, %v9049_v24 }
 0x2d5   : > { %v1486_v6 = vpop.permute.xlu0 %1485  ;;  %v2239_v57 = vshrl.u32 %v7200_v34, 16 }
 0x2d6   : > { %2313 = vrot.lane.b32.xlu1 %v7111_v32, %s5745_s15  ;;  %v1983_v10 = vmul.f32 0.2, %v1887_v8  ;;  %vm1935_vm12 = vcmp.gt.f32.partialorder %v1887_v8, 0.0  ;;  %v1613_v50 = vadd.f32 %v1486_v6, %v1292_v40 }
 0x2d7   : > { %2311 = vrot.lane.b32.xlu0 %v2211_v37, %s5745_s15  ;;  %v7212_v4 = vrot.slane %v2239_v57, 7  ;;  %v1759_v27 = vpop.permute.xlu1 %1758 }
 0x2d8   : > { %v1886_v55 = vadd.f32 %v1759_v27, %v1613_v50  ;;  %v2031_v0 = vsel %vm1935_vm12, %v1887_v8, %v1983_v10  ;;  %v9050_v10 = vld [vmem:[#allocation12_spill] sm:$0xff]  ;;  %v9052_v27 = vld [vmem:[#allocation9_spill] sm:$0xff]  ;;  %vm2367_vm12 = vcmask 64545  }
 0x2d9   : > { %v1757_v13 = vpop.permute.xlu0 %1756  ;;  %v7216_v58 = vsel %vm2094_vm7, %v7212_v4, %v2246_v59  ;;  %v2073_v47 = vpack.c.bf16 %v2031_v0, %v2031_v0  ;;  %v1297_v59 = vadd.f32 %v7225_v2, %v9050_v10  ;;  %v2242_v10 = vshll.u32 %v7200_v34, 16 }
 0x2da   : > { %v1885_v18 = vadd.f32 %v1757_v13, %v1612_v48  ;;  %vm1934_vm13 = vcmp.gt.f32.partialorder %v1886_v55, 0.0  ;;  %v1982_v32 = vmul.f32 0.2, %v1886_v55  ;;  %v9051_v48 = vld [vmem:[#allocation17_spill] sm:$0xff]  ;;  %v1318_v13 = vadd.f32 %v7225_v2, %v9052_v27 }
 0x2db   : > { %v7218_v45 = vpop.permute.xlu1 %1539  ;;  %v2158_v16 = vshll.u32 %v2073_v47, 16  ;;  %v1298_v50 = vadd.f32 %v7225_v2, %v9051_v48 }
 0x2dc   : > { %vm1933_vm14 = vcmp.gt.f32.partialorder %v1885_v18, 0.0  ;;  %v1981_v14 = vmul.f32 0.2, %v1885_v18  ;;  %v2030_v7 = vsel %vm1934_vm13, %v1886_v55, %v1982_v32  ;;  %v9053_v32 = vld [vmem:[#allocation11_spill] sm:$0xff] }
 0x2dd   : > { %v7220_v30 = vpop.permute.xlu0 %1537 }
 0x2de   : > { %v2029_v26 = vsel %vm1933_vm14, %v1885_v18, %v1981_v14  ;;  %v1319_v14 = vadd.f32 %v7225_v2, %v9053_v32 }
 0x2df   : > { %v2072_v31 = vpack.c.bf16 %v2030_v7, %v2029_v26  ;;  %v1767_v23 = vpop.permute.xlu1 %1766 }
 0x2e1   : > { %v1494_v43 = vpop.permute.xlu0 %1493  ;;  %v2151_v61 = vshrl.u32 %v2072_v31, 16  ;;  %v2154_v3 = vshll.u32 %v2072_v31, 16 }
 0x2e2   : > { %v1617_v39 = vadd.f32 %v1494_v43, %v1296_v35  ;;  %v1640_v35 = vadd.f32 %v7218_v45, %v1319_v14  ;;  %v1639_v43 = vadd.f32 %v7220_v30, %v1318_v13  ;;  %v2231_v30 = vshll.u32 %v7171_v25, 16 }
 0x2e3   : > { %v2153_v46 = vrot.slane %v2151_v61, 7  ;;  %v1773_v52 = vpop.permute.xlu1 %1772 }
 0x2e4   : > { %v1890_v15 = vadd.f32 %v1767_v23, %v1617_v39 }
 0x2e5   : > { %v1500_v1 = vpop.permute.xlu0 %1499  ;;  %v2160_v51 = vsel %vm2094_vm7, %v2153_v46, %v2158_v16  ;;  %v2156_v28 = vor.u32 %v2154_v3, %v2153_v46 }
 0x2e6   : > { %2293 = vrot.lane.b32.xlu1 %v2160_v51, %s5745_s15  ;;  %v1986_v53 = vmul.f32 0.2, %v1890_v15  ;;  %v1620_v49 = vadd.f32 %v1500_v1, %v1299_v11  ;;  %vm1938_vm15 = vcmp.gt.f32.partialorder %v1890_v15, 0.0 }
 0x2e7   : > { %2291 = vrot.lane.b32.xlu0 %v2156_v28, %s5745_s15  ;;  %v1490_v42 = vpop.permute.xlu1 %1489 }
 0x2e8   : > { %v1615_v44 = vadd.f32 %v1490_v42, %v1294_v60  ;;  %v2034_v33 = vsel %vm1938_vm15, %v1890_v15, %v1986_v53  ;;  %v1893_v6 = vadd.f32 %v1773_v52, %v1620_v49  ;;  %v1320_v60 = vadd.f32 %v7225_v2, %v6756_v63 }
 0x2e9   : > { %v1492_v20 = vpop.permute.xlu0 %1491  ;;  %v2075_v0 = vpack.c.bf16 %v2034_v33, %v2034_v33 }
 0x2ea   : > { %2317 = vrot.lane.b32.xlu1 %v7156_v41, %s5745_s15  ;;  %v1616_v5 = vadd.f32 %v1492_v20, %v1295_v9  ;;  %v1989_v55 = vmul.f32 0.2, %v1893_v6  ;;  %vm1941_vm4 = vcmp.gt.f32.partialorder %v1893_v6, 0.0 }
 0x2eb   : > { %2315 = vrot.lane.b32.xlu0 %v2222_v36, %s5745_s15  ;;  %v1765_v38 = vpop.permute.xlu1 %1764  ;;  %v2169_v52 = vshll.u32 %v2075_v0, 16  ;;  %v9055_v0 = vld [vmem:[#allocation13_spill] sm:$0xff] }
 0x2ec   : > { %v1889_v8 = vadd.f32 %v1765_v38, %v1616_v5  ;;  %v2037_v39 = vsel %vm1941_vm4, %v1893_v6, %v1989_v55  ;;  %v2233_v5 = vor.u32 %v2231_v30, %v7179_v62  ;;  %v9054_v55 = vld [vmem:[#allocation15_spill] sm:$0xff]  ;;  %v1321_v32 = vadd.f32 %v7225_v2, %v9055_v0 }
 0x2ed   : > { %v1763_v12 = vpop.permute.xlu0 %1762  ;;  %v2077_v24 = vpack.c.bf16 %v2037_v39, %v2037_v39 }
 0x2ee   : > { %v1888_v29 = vadd.f32 %v1763_v12, %v1615_v44  ;;  %vm1937_vm0 = vcmp.gt.f32.partialorder %v1889_v8, 0.0  ;;  %v1985_v37 = vmul.f32 0.2, %v1889_v8 }
 0x2ef   : > { %v1496_v54 = vpop.permute.xlu1 %1495  ;;  %v2180_v6 = vshll.u32 %v2077_v24, 16 }
 0x2f0   : > { %vm1936_vm1 = vcmp.gt.f32.partialorder %v1888_v29, 0.0  ;;  %v1984_v57 = vmul.f32 0.2, %v1888_v29  ;;  %v2033_v41 = vsel %vm1937_vm0, %v1889_v8, %v1985_v37  ;;  %v1618_v7 = vadd.f32 %v1496_v54, %v1297_v59 }
 0x2f1   : > { %v1498_v17 = vpop.permute.xlu0 %1497 }
 0x2f2   : > { %v2032_v40 = vsel %vm1936_vm1, %v1888_v29, %v1984_v57  ;;  %v1619_v26 = vadd.f32 %v1498_v17, %v1298_v50  ;;  %v2244_v50 = vor.u32 %v2242_v10, %v7212_v4 }
 0x2f3   : > { %v2074_v18 = vpack.c.bf16 %v2033_v41, %v2032_v40  ;;  %v1771_v31 = vpop.permute.xlu1 %1770 }
 0x2f4   : > { %v1892_v61 = vadd.f32 %v1771_v31, %v1619_v26 }
 0x2f5   : > { %v1769_v47 = vpop.permute.xlu0 %1768  ;;  %v2162_v23 = vshrl.u32 %v2074_v18, 16  ;;  %v2165_v46 = vshll.u32 %v2074_v18, 16  ;;  %v1322_v18 = vadd.f32 %v7225_v2, %v9054_v55 }
 0x2f6   : > { %v1891_v3 = vadd.f32 %v1769_v47, %v1618_v7  ;;  %vm1940_vm5 = vcmp.gt.f32.partialorder %v1892_v61, 0.0  ;;  %v1988_v1 = vmul.f32 0.2, %v1892_v61 }
 0x2f7   : > { %v2164_v16 = vrot.slane %v2162_v23, 7  ;;  %v1811_v28 = vpop.permute.xlu1 %1810 }
 0x2f8   : > { %vm1939_vm6 = vcmp.gt.f32.partialorder %v1891_v3, 0.0  ;;  %v1987_v51 = vmul.f32 0.2, %v1891_v3  ;;  %v2036_v42 = vsel %vm1940_vm5, %v1892_v61, %v1988_v1  ;;  %v1912_v45 = vadd.f32 %v1811_v28, %v1639_v43 }
 0x2f9   : > { %v1813_v22 = vpop.permute.xlu0 %1812  ;;  %v2171_v15 = vsel %vm2094_vm7, %v2164_v16, %v2169_v52  ;;  %v2167_v11 = vor.u32 %v2165_v46, %v2164_v16  ;;  %v1323_v28 = vadd.f32 %v7225_v2, %v6846_v56 }
 0x2fa   : > { %v2035_v20 = vsel %vm1939_vm6, %v1891_v3, %v1987_v51  ;;  %v1913_v36 = vadd.f32 %v1813_v22, %v1640_v35  ;;  %2297 = vrot.lane.b32.xlu1 %v2171_v15, %s5745_s15  ;;  %vm1960_vm8 = vcmp.gt.f32.partialorder %v1912_v45, 0.0  ;;  %v2008_v9 = vmul.f32 0.2, %v1912_v45 }
 0x2fb   : > { %v2076_v19 = vpack.c.bf16 %v2036_v42, %v2035_v20  ;;  %2295 = vrot.lane.b32.xlu0 %v2167_v11, %s5745_s15  ;;  %v1815_v49 = vpop.permute.xlu1 %1814 }
 0x2fc   : > { %vm1961_vm9 = vcmp.gt.f32.partialorder %v1913_v36, 0.0  ;;  %v2009_v53 = vmul.f32 0.2, %v1913_v36  ;;  %v2056_v12 = vsel %vm1960_vm8, %v1912_v45, %v2008_v9 }
 0x2fd   : > { %v1542_v44 = vpop.permute.xlu0 %1541  ;;  %v2173_v38 = vshrl.u32 %v2076_v19, 16  ;;  %v2176_v25 = vshll.u32 %v2076_v19, 16 }
 0x2fe   : > { %v2057_v8 = vsel %vm1961_vm9, %v1913_v36, %v2009_v53  ;;  %v1641_v29 = vadd.f32 %v1542_v44, %v1320_v60  ;;  %2321 = vrot.lane.b32.xlu1 %v7185_v21, %s5745_s15 }
 0x2ff   : > { %v2090_v33 = vpack.c.bf16 %v2057_v8, %v2056_v12  ;;  %2319 = vrot.lane.b32.xlu0 %v2233_v5, %s5745_s15  ;;  %v2175_v63 = vrot.slane %v2173_v38, 7  ;;  %v1546_v57 = vpop.permute.xlu1 %1545 }
 0x300   : > { %v1914_v37 = vadd.f32 %v1815_v49, %v1641_v29  ;;  %v1643_v4 = vadd.f32 %v1546_v57, %v1322_v18 }
 0x301   : > { %v1544_v54 = vpop.permute.xlu0 %1543  ;;  %v2182_v17 = vsel %vm2094_vm7, %v2175_v63, %v2180_v6  ;;  %v2178_v41 = vor.u32 %v2176_v25, %v2175_v63  ;;  %v2250_v62 = vshrl.u32 %v2090_v33, 16  ;;  %v2253_v34 = vshll.u32 %v2090_v33, 16 }
 0x302   : > { %vm1962_vm10 = vcmp.gt.f32.partialorder %v1914_v37, 0.0  ;;  %v2010_v40 = vmul.f32 0.2, %v1914_v37  ;;  %2301 = vrot.lane.b32.xlu1 %v2182_v17, %s5745_s15  ;;  %v1642_v7 = vadd.f32 %v1544_v54, %v1321_v32 }
 0x303   : > { %2299 = vrot.lane.b32.xlu0 %v2178_v41, %s5745_s15  ;;  %v2274_v59 = vpop.permute.xlu1 %2273  ;;  %v2252_v13 = vrot.slane %v2250_v62, 7 }
 0x304   : > { %v2058_v21 = vsel %vm1962_vm10, %v1914_v37, %v2010_v40  ;;  %2370 = vst.msk [vmem:[#allocation2 + $0x18] sm:$0x1] %vm2369_vm11, %v2274_v59 }
 0x305   : > { %v2272_v48 = vpop.permute.xlu0 %2271  ;;  %v2091_v27 = vpack.c.bf16 %v2058_v21, %v2058_v21  ;;  %v2255_v23 = vor.u32 %v2253_v34, %v2252_v13 }
 0x306   : > { %2368 = vst.msk [vmem:[#allocation2 + $0x10] sm:$0xfe] %vm2367_vm12, %v2272_v48  ;;  %2325 = vrot.lane.b32.xlu1 %v7216_v58, %s5745_s15 }
 0x307   : > { %2323 = vrot.lane.b32.xlu0 %v2244_v50, %s5745_s15  ;;  %v2257_v14 = vshll.u32 %v2091_v27, 16  ;;  %v1817_v26 = vpop.permute.xlu1 %1816 }
 0x308   : > { %v1915_v35 = vadd.f32 %v1817_v26, %v1642_v7 }
 0x309   : > { %v1819_v31 = vpop.permute.xlu0 %1818  ;;  %v2259_v47 = vsel %vm2094_vm7, %v2252_v13, %v2257_v14 }
 0x30a   : > { %v1916_v43 = vadd.f32 %v1819_v31, %v1643_v4  ;;  %2329 = vrot.lane.b32.xlu1 %v2259_v47, %s5745_s15  ;;  %vm1963_vm13 = vcmp.gt.f32.partialorder %v1915_v35, 0.0  ;;  %v2011_v61 = vmul.f32 0.2, %v1915_v35 }
 0x30b   : > { %2327 = vrot.lane.b32.xlu0 %v2255_v23, %s5745_s15  ;;  %v2278_v3 = vpop.permute.xlu1 %2277  ;;  %v2404_v16 = vld [vmem:[#allocation2 + $0x18] sm:$0xff] }
 0x30c   : > { %vm1964_vm14 = vcmp.gt.f32.partialorder %v1916_v43, 0.0  ;;  %v2012_v58 = vmul.f32 0.2, %v1916_v43  ;;  %v2059_v52 = vsel %vm1963_vm13, %v1915_v35, %v2011_v61  ;;  %2372 = vst.msk [vmem:[#allocation2 + $0x28] sm:$0x1] %vm2369_vm11, %v2278_v3 }
 0x30d   : > { %v2276_v39 = vpop.permute.xlu0 %2275  ;;  %v2403_v46 = vld [vmem:[#allocation2 + $0x10] sm:$0xff] }
 0x30e   : > { %v2060_v1 = vsel %vm1964_vm14, %v1916_v43, %v2012_v58  ;;  %2371 = vst.msk [vmem:[#allocation2 + $0x20] sm:$0xfe] %vm2367_vm12, %v2276_v39  ;;  %5423 = vmatprep.mubr.bf16.mxu1 %v2403_v46 }
 0x30f   : > { %v2092_v51 = vpack.c.bf16 %v2060_v1, %v2059_v52  ;;  %5424 = vmatmul.mubr.bf16.gmra.mrb[40].mxu1 %v2404_v16  ;;  %v1821_v15 = vpop.permute.xlu1 %1820 }
 0x311   : > { %v2261_v22 = vshrl.u32 %v2092_v51, 16  ;;  %v1548_v11 = vpop.permute.xlu0 %1547  ;;  %v2264_v20 = vshll.u32 %v2092_v51, 16 }
 0x312   : > { %v1644_v42 = vadd.f32 %v1548_v11, %v1323_v28 }
 0x313   : > { %v2263_v45 = vrot.slane %v2261_v22, 7  ;;  %v2282_v30 = vpop.permute.xlu1 %2281  ;;  %v2406_v24 = vld [vmem:[#allocation2 + $0x28] sm:$0xff] }
 0x314   : > { %v1917_v36 = vadd.f32 %v1821_v15, %v1644_v42  ;;  %2374 = vst.msk [vmem:[#allocation2 + $0x38] sm:$0x1] %vm2369_vm11, %v2282_v30 }
 0x315   : > { %v2280_v19 = vpop.permute.xlu0 %2279  ;;  %v2405_v60 = vld [vmem:[#allocation2 + $0x20] sm:$0xff]  ;;  %v2266_v9 = vor.u32 %v2264_v20, %v2263_v45 }
 0x316   : > { %vm1965_vm15 = vcmp.gt.f32.partialorder %v1917_v36, 0.0  ;;  %v2013_v53 = vmul.f32 0.2, %v1917_v36  ;;  %2373 = vst.msk [vmem:[#allocation2 + $0x30] sm:$0xfe] %vm2367_vm12, %v2280_v19  ;;  %5427 = vmatprep.mubr.bf16.mxu1 %v2405_v60 }
 0x317   : > { %5428 = vmatmul.mubr.bf16.gmra.mrb[44].mxu1 %v2406_v24  ;;  %2331 = vrot.lane.b32.xlu0 %v2266_v9, %s5745_s15  ;;  %v2306_v2 = vpop.permute.xlu1 %2305  ;;  %v2435_v24 = vld [vmem:[#allocation2 + $0x110] sm:$0xff] }
 0x318   : > { %v2061_v56 = vsel %vm1965_vm15, %v1917_v36, %v2013_v53  ;;  %2386 = vst.msk [vmem:[#allocation2 + $0x98] sm:$0x1] %vm2369_vm11, %v2306_v2  ;;  %v2436_v53 = vld [vmem:[#allocation2 + $0x118] sm:$0xff] }
 0x319   : > { %v2304_v49 = vpop.permute.xlu0 %2303  ;;  %v2093_v44 = vpack.c.bf16 %v2061_v56, %v2061_v56 }
 0x31a   : > { %2385 = vst.msk [vmem:[#allocation2 + $0x90] sm:$0xfe] %vm2367_vm12, %v2304_v49 }
 0x31b   : > { %v2268_v5 = vshll.u32 %v2093_v44, 16  ;;  %v2408_v8 = vld [vmem:[#allocation2 + $0x38] sm:$0xff] }
 0x31d   : > { %v2407_v38 = vld [vmem:[#allocation2 + $0x30] sm:$0xff]  ;;  %v2270_v12 = vsel %vm2094_vm7, %v2263_v45, %v2268_v5 }
 0x31e   : > { %5431 = vmatprep.mubr.bf16.mxu1 %v2407_v38  ;;  %2333 = vrot.lane.b32.xlu1 %v2270_v12, %s5745_s15 }
 0x31f   : > { %5432 = vmatmul.mubr.bf16.gmra.mrb[48].mxu1 %v2408_v8  ;;  %v2420_v46 = vld [vmem:[#allocation2 + $0x98] sm:$0xff] }
 0x321   : > { %v2419_v39 = vld [vmem:[#allocation2 + $0x90] sm:$0xff] }
 0x32a   : > { %v2286_v29 = vpop.permute.xlu1 %2285 }
 0x32b   : > { %2376 = vst.msk [vmem:[#allocation2 + $0x48] sm:$0x1] %vm2369_vm11, %v2286_v29  ;;  %v2284_v25 = vpop.permute.xlu0 %2283 }
 0x32c   : > { %2375 = vst.msk [vmem:[#allocation2 + $0x40] sm:$0xfe] %vm2367_vm12, %v2284_v25 }
 0x32e   : > { %v2310_v33 = vpop.permute.xlu1 %2309 }
 0x32f   : > { %2388 = vst.msk [vmem:[#allocation2 + $0xa8] sm:$0x1] %vm2369_vm11, %v2310_v33  ;;  %v2308_v63 = vpop.permute.xlu0 %2307 }
 0x330   : > { %2387 = vst.msk [vmem:[#allocation2 + $0xa0] sm:$0xfe] %vm2367_vm12, %v2308_v63 }
 0x332   : > { %v2410_v37 = vld [vmem:[#allocation2 + $0x48] sm:$0xff] }
 0x333   : > { %v2409_v6 = vld [vmem:[#allocation2 + $0x40] sm:$0xff] }
 0x334   : > { %5435 = vmatprep.mubr.bf16.mxu1 %v2409_v6 }
 0x335   : > { %5436 = vmatmul.mubr.bf16.gmra.mrb[52].mxu1 %v2410_v37 }
 0x336   : > { %v2422_v1 = vld [vmem:[#allocation2 + $0xa8] sm:$0xff] }
 0x337   : > { %v2421_v16 = vld [vmem:[#allocation2 + $0xa0] sm:$0xff] }
 0x344   : > { %v2290_v57 = vpop.permute.xlu1 %2289 }
 0x345   : > { %2378 = vst.msk [vmem:[#allocation2 + $0x58] sm:$0x1] %vm2369_vm11, %v2290_v57  ;;  %v2288_v54 = vpop.permute.xlu0 %2287 }
 0x346   : > { %2377 = vst.msk [vmem:[#allocation2 + $0x50] sm:$0xfe] %vm2367_vm12, %v2288_v54 }
 0x348   : > { %v2314_v17 = vpop.permute.xlu1 %2313 }
 0x349   : > { %2390 = vst.msk [vmem:[#allocation2 + $0xb8] sm:$0x1] %vm2369_vm11, %v2314_v17  ;;  %v2312_v41 = vpop.permute.xlu0 %2311 }
 0x34a   : > { %2389 = vst.msk [vmem:[#allocation2 + $0xb0] sm:$0xfe] %vm2367_vm12, %v2312_v41 }
 0x34c   : > { %v2412_v40 = vld [vmem:[#allocation2 + $0x58] sm:$0xff] }
 0x34d   : > { %v2411_v62 = vld [vmem:[#allocation2 + $0x50] sm:$0xff] }
 0x34e   : > { %5439 = vmatprep.mubr.bf16.mxu1 %v2411_v62 }
 0x34f   : > { %5440 = vmatmul.mubr.bf16.gmra.mrb[56].mxu1 %v2412_v40 }
 0x350   : > { %v2424_v22 = vld [vmem:[#allocation2 + $0xb8] sm:$0xff] }
 0x351   : > { %v2423_v51 = vld [vmem:[#allocation2 + $0xb0] sm:$0xff] }
 0x356   : > { %v7303_v50 = vpop.f32.mrb[36].mxu1 }
 0x357   : > { %v7305_v27 = vpop.f32.mrb[37].mxu1 }
 0x358   : > { %v2294_v10 = vpop.permute.xlu1 %2293  ;;  %v5422_v55 = vpop.f32.mrb[38].mxu1 }
 0x359   : > { %2380 = vst.msk [vmem:[#allocation2 + $0x68] sm:$0x1] %vm2369_vm11, %v2294_v10  ;;  %v2292_v21 = vpop.permute.xlu0 %2291  ;;  %v7307_v0 = vpop.f32.mrb[39].mxu1 }
 0x35a   : > { %2379 = vst.msk [vmem:[#allocation2 + $0x60] sm:$0xfe] %vm2367_vm12, %v2292_v21 }
 0x35c   : > { %v2318_v59 = vpop.permute.xlu1 %2317 }
 0x35d   : > { %2392 = vst.msk [vmem:[#allocation2 + $0xc8] sm:$0x1] %vm2369_vm11, %v2318_v59  ;;  %v2316_v48 = vpop.permute.xlu0 %2315 }
 0x35e   : > { %2391 = vst.msk [vmem:[#allocation2 + $0xc0] sm:$0xfe] %vm2367_vm12, %v2316_v48 }
 0x360   : > { %v2414_v18 = vld [vmem:[#allocation2 + $0x68] sm:$0xff] }
 0x361   : > { %v2413_v13 = vld [vmem:[#allocation2 + $0x60] sm:$0xff] }
 0x362   : > { %5443 = vmatprep.mubr.bf16.mxu1 %v2413_v13 }
 0x363   : > { %5444 = vmatmul.mubr.bf16.gmra.mrb[60].mxu1 %v2414_v18 }
 0x364   : > { %v2426_v11 = vld [vmem:[#allocation2 + $0xc8] sm:$0xff] }
 0x365   : > { %v2425_v15 = vld [vmem:[#allocation2 + $0xc0] sm:$0xff] }
 0x36c   : > { %v2298_v32 = vpop.permute.xlu1 %2297 }
 0x36d   : > { %2382 = vst.msk [vmem:[#allocation2 + $0x78] sm:$0x1] %vm2369_vm11, %v2298_v32  ;;  %v2296_v34 = vpop.permute.xlu0 %2295 }
 0x36e   : > { %2381 = vst.msk [vmem:[#allocation2 + $0x70] sm:$0xfe] %vm2367_vm12, %v2296_v34 }
 0x370   : > { %v2322_v14 = vpop.permute.xlu1 %2321 }
 0x371   : > { %2394 = vst.msk [vmem:[#allocation2 + $0xd8] sm:$0x1] %vm2369_vm11, %v2322_v14  ;;  %v2320_v4 = vpop.permute.xlu0 %2319 }
 0x372   : > { %2393 = vst.msk [vmem:[#allocation2 + $0xd0] sm:$0xfe] %vm2367_vm12, %v2320_v4 }
 0x374   : > { %v2302_v7 = vpop.permute.xlu1 %2301  ;;  %v2416_v47 = vld [vmem:[#allocation2 + $0x78] sm:$0xff] }
 0x375   : > { %2384 = vst.msk [vmem:[#allocation2 + $0x88] sm:$0x1] %vm2369_vm11, %v2302_v7  ;;  %v2300_v26 = vpop.permute.xlu0 %2299  ;;  %v2415_v31 = vld [vmem:[#allocation2 + $0x70] sm:$0xff] }
 0x376   : > { %2383 = vst.msk [vmem:[#allocation2 + $0x80] sm:$0xfe] %vm2367_vm12, %v2300_v26  ;;  %5447 = vmatprep.mubr.bf16.mxu1 %v2415_v31 }
 0x377   : > { %5448 = vmatmul.mubr.bf16.gmra.mrb[64].mxu1 %v2416_v47 }
 0x378   : > { %v2326_v23 = vpop.permute.xlu1 %2325  ;;  %v2428_v20 = vld [vmem:[#allocation2 + $0xd8] sm:$0xff] }
 0x379   : > { %2396 = vst.msk [vmem:[#allocation2 + $0xe8] sm:$0x1] %vm2369_vm11, %v2326_v23  ;;  %v2324_v35 = vpop.permute.xlu0 %2323  ;;  %v2427_v42 = vld [vmem:[#allocation2 + $0xd0] sm:$0xff] }
 0x37a   : > { %2395 = vst.msk [vmem:[#allocation2 + $0xe0] sm:$0xfe] %vm2367_vm12, %v2324_v35 }
 0x37c   : > { %v2330_v43 = vpop.permute.xlu1 %2329  ;;  %v2418_v3 = vld [vmem:[#allocation2 + $0x88] sm:$0xff] }
 0x37d   : > { %2398 = vst.msk [vmem:[#allocation2 + $0xf8] sm:$0x1] %vm2369_vm11, %v2330_v43  ;;  %v2328_v61 = vpop.permute.xlu0 %2327  ;;  %v2417_v58 = vld [vmem:[#allocation2 + $0x80] sm:$0xff] }
 0x37e   : > { %2397 = vst.msk [vmem:[#allocation2 + $0xf0] sm:$0xfe] %vm2367_vm12, %v2328_v61  ;;  %5451 = vmatprep.mubr.bf16.mxu1 %v2417_v58 }
 0x37f   : > { %5452 = vmatmul.mubr.bf16.gmra.mrb[68].mxu1 %v2418_v3 }
 0x380   : > { %5455 = vmatprep.mubr.bf16.mxu1 %v2419_v39  ;;  %v2430_v36 = vld [vmem:[#allocation2 + $0xe8] sm:$0xff] }
 0x381   : > { %v2429_v45 = vld [vmem:[#allocation2 + $0xe0] sm:$0xff] }
 0x384   : > { %v2432_v19 = vld [vmem:[#allocation2 + $0xf8] sm:$0xff] }
 0x385   : > { %v2431_v30 = vld [vmem:[#allocation2 + $0xf0] sm:$0xff] }
 0x387   : > { %5456 = vmatmul.mubr.bf16.gmra.mrb[72].mxu1 %v2420_v46 }
 0x388   : > { %5459 = vmatprep.mubr.bf16.mxu1 %v2421_v16 }
 0x389   : > { %v2332_v52 = vpop.permute.xlu0 %2331 }
 0x38a   : > { %2399 = vst.msk [vmem:[#allocation2 + $0x100] sm:$0xfe] %vm2367_vm12, %v2332_v52 }
 0x38f   : > { %5460 = vmatmul.mubr.bf16.gmra.mrb[76].mxu1 %v2422_v1 }
 0x390   : > { %v2334_v28 = vpop.permute.xlu1 %2333  ;;  %5463 = vmatprep.mubr.bf16.mxu1 %v2423_v51 }
 0x391   : > { %2400 = vst.msk [vmem:[#allocation2 + $0x108] sm:$0x1] %vm2369_vm11, %v2334_v28  ;;  %v2433_v60 = vld [vmem:[#allocation2 + $0x100] sm:$0xff] }
 0x397   : > { %5464 = vmatmul.mubr.bf16.gmra.mrb[80].mxu1 %v2424_v22 }
 0x398   : > { %5467 = vmatprep.mubr.bf16.mxu1 %v2425_v15  ;;  %v2434_v9 = vld [vmem:[#allocation2 + $0x108] sm:$0xff] }
 0x39f   : > { %5468 = vmatmul.mubr.bf16.gmra.mrb[84].mxu1 %v2426_v11 }
 0x3a0   : > { %5471 = vmatprep.mubr.bf16.mxu1 %v2427_v42 }
 0x3a7   : > { %5472 = vmatmul.mubr.bf16.gmra.mrb[88].mxu1 %v2428_v20 }
 0x3a8   : > { %5475 = vmatprep.mubr.bf16.mxu1 %v2429_v45 }
 0x3af   : > { %5476 = vmatmul.mubr.bf16.gmra.mrb[92].mxu1 %v2430_v36 }
 0x3b0   : > { %5479 = vmatprep.mubr.bf16.mxu1 %v2431_v30 }
 0x3b7   : > { %5480 = vmatmul.mubr.bf16.gmra.mrb[96].mxu1 %v2432_v19 }
 0x3b8   : > { %5483 = vmatprep.mubr.bf16.mxu1 %v2433_v60 }
 0x3bf   : > { %5484 = vmatmul.mubr.bf16.gmra.mrb[100].mxu1 %v2434_v9 }
 0x3c0   : > { %5487 = vmatprep.mubr.bf16.mxu1 %v2435_v24 }
 0x3c7   : > { %5488 = vmatmul.mubr.bf16.gmra.mrb[104].mxu1 %v2436_v53 }
 0x3e2   : > { %v7321_v56 = vpop.f32.mrb[40].mxu1 }
 0x3e3   : > { %v7323_v2 = vpop.f32.mrb[41].mxu1  ;;  %2862 = vrot.lane.b32.xlu0 %v7321_v56, %s5741_s6 }
 0x3e4   : > { %v5426_v49 = vpop.f32.mrb[42].mxu1 }
 0x3e5   : > { %v7327_v44 = vpop.f32.mrb[43].mxu1 }
 0x3e6   : > { %2860 = vrot.lane.b32.xlu1 %v7327_v44, %s5741_s6 }
 0x3e7   : > { %2858 = vrot.lane.b32.xlu0 %v7323_v2, %s5741_s6 }
 0x3ea   : > { %v7333_v5 = vpop.f32.mrb[44].mxu1 }
 0x3eb   : > { %v7335_v38 = vpop.f32.mrb[45].mxu1  ;;  %3057 = vrot.lane.b32.xlu1 %v7333_v5, %s5742_s7  ;;  %2868 = vrot.lane.b32.xlu0 %v7333_v5, %s5741_s6 }
 0x3ec   : > { %v5430_v12 = vpop.f32.mrb[46].mxu1 }
 0x3ed   : > { %v7341_v8 = vpop.f32.mrb[47].mxu1 }
 0x3ef   : > { %3053 = vrot.lane.b32.xlu1 %v7335_v38, %s5742_s7  ;;  %2864 = vrot.lane.b32.xlu0 %v7335_v38, %s5741_s6 }
 0x3f2   : > { %v7347_v29 = vpop.f32.mrb[48].mxu1 }
 0x3f3   : > { %v7349_v25 = vpop.f32.mrb[49].mxu1  ;;  %2866 = vrot.lane.b32.xlu1 %v7341_v8, %s5741_s6  ;;  %3055 = vrot.lane.b32.xlu0 %v7341_v8, %s5742_s7 }
 0x3f4   : > { %v5434_v33 = vpop.f32.mrb[50].mxu1 }
 0x3f5   : > { %v7355_v63 = vpop.f32.mrb[51].mxu1 }
 0x3f7   : > { %3063 = vrot.lane.b32.xlu1 %v7347_v29, %s5742_s7  ;;  %2874 = vrot.lane.b32.xlu0 %v7347_v29, %s5741_s6 }
 0x3fb   : > { %3059 = vrot.lane.b32.xlu1 %v7349_v25, %s5742_s7  ;;  %2870 = vrot.lane.b32.xlu0 %v7349_v25, %s5741_s6 }
 0x3ff   : > { %2872 = vrot.lane.b32.xlu1 %v7355_v63, %s5741_s6  ;;  %3061 = vrot.lane.b32.xlu0 %v7355_v63, %s5742_s7 }
 0x408   : > { %v7369_v6 = vpop.f32.mrb[52].mxu1 }
 0x409   : > { %2880 = vrot.lane.b32.xlu0 %v7369_v6, %s5741_s6  ;;  %3069 = vrot.lane.b32.xlu1 %v7369_v6, %s5742_s7  ;;  %v7375_v37 = vpop.f32.mrb[53].mxu1 }
 0x40a   : > { %v5438_v57 = vpop.f32.mrb[54].mxu1 }
 0x40b   : > { %v7377_v54 = vpop.f32.mrb[55].mxu1 }
 0x40d   : > { %2876 = vrot.lane.b32.xlu0 %v7375_v37, %s5741_s6  ;;  %3065 = vrot.lane.b32.xlu1 %v7375_v37, %s5742_s7 }
 0x411   : > { %2878 = vrot.lane.b32.xlu1 %v7377_v54, %s5741_s6  ;;  %3067 = vrot.lane.b32.xlu0 %v7377_v54, %s5742_s7 }
 0x422   : > { %v7387_v17 = vpop.f32.mrb[56].mxu1 }
 0x423   : > { %2886 = vrot.lane.b32.xlu0 %v7387_v17, %s5741_s6  ;;  %3075 = vrot.lane.b32.xlu1 %v7387_v17, %s5742_s7  ;;  %v7393_v41 = vpop.f32.mrb[57].mxu1 }
 0x424   : > { %v5442_v62 = vpop.f32.mrb[58].mxu1 }
 0x425   : > { %v7395_v40 = vpop.f32.mrb[59].mxu1 }
 0x427   : > { %2882 = vrot.lane.b32.xlu0 %v7393_v41, %s5741_s6  ;;  %3071 = vrot.lane.b32.xlu1 %v7393_v41, %s5742_s7 }
 0x42b   : > { %2884 = vrot.lane.b32.xlu1 %v7395_v40, %s5741_s6  ;;  %3073 = vrot.lane.b32.xlu0 %v7395_v40, %s5742_s7 }
 0x436   : > { %v7405_v10 = vpop.f32.mrb[60].mxu1 }
 0x437   : > { %2892 = vrot.lane.b32.xlu0 %v7405_v10, %s5741_s6  ;;  %3081 = vrot.lane.b32.xlu1 %v7405_v10, %s5742_s7  ;;  %v7411_v21 = vpop.f32.mrb[61].mxu1 }
 0x438   : > { %v5446_v59 = vpop.f32.mrb[62].mxu1 }
 0x439   : > { %v7413_v48 = vpop.f32.mrb[63].mxu1 }
 0x43b   : > { %2888 = vrot.lane.b32.xlu0 %v7411_v21, %s5741_s6  ;;  %3077 = vrot.lane.b32.xlu1 %v7411_v21, %s5742_s7 }
 0x43f   : > { %2890 = vrot.lane.b32.xlu1 %v7413_v48, %s5741_s6  ;;  %3079 = vrot.lane.b32.xlu0 %v7413_v48, %s5742_s7 }
 0x44a   : > { %v7423_v13 = vpop.f32.mrb[64].mxu1 }
 0x44b   : > { %2898 = vrot.lane.b32.xlu0 %v7423_v13, %s5741_s6  ;;  %3087 = vrot.lane.b32.xlu1 %v7423_v13, %s5742_s7  ;;  %v7429_v55 = vpop.f32.mrb[65].mxu1 }
 0x44c   : > { %v5450_v18 = vpop.f32.mrb[66].mxu1 }
 0x44d   : > { %v7431_v32 = vpop.f32.mrb[67].mxu1 }
 0x44f   : > { %2894 = vrot.lane.b32.xlu0 %v7429_v55, %s5741_s6  ;;  %3083 = vrot.lane.b32.xlu1 %v7429_v55, %s5742_s7 }
 0x452   : > { %v7437_v34 = vpop.f32.mrb[68].mxu1 }
 0x453   : > { %2896 = vrot.lane.b32.xlu1 %v7431_v32, %s5741_s6  ;;  %3085 = vrot.lane.b32.xlu0 %v7431_v32, %s5742_s7  ;;  %v7443_v14 = vpop.f32.mrb[69].mxu1 }
 0x454   : > { %v5454_v4 = vpop.f32.mrb[70].mxu1 }
 0x455   : > { %v7445_v7 = vpop.f32.mrb[71].mxu1  ;;  %v2863_v26 = vpop.permute.xlu0 %2862 }
 0x456   : > { %v3004_v52 = vadd.f32 %v7303_v50, %v2863_v26 }
 0x457   : > { %2904 = vrot.lane.b32.xlu0 %v7437_v34, %s5741_s6  ;;  %3093 = vrot.lane.b32.xlu1 %v7437_v34, %s5742_s7 }
 0x458   : > { %v2861_v31 = vpop.permute.xlu1 %2860 }
 0x459   : > { %v2859_v47 = vpop.permute.xlu0 %2858  ;;  %v3003_v22 = vadd.f32 %v2861_v31, %v7307_v0 }
 0x45a   : > { %v7451_v23 = vpop.f32.mrb[72].mxu1  ;;  %v3002_v1 = vadd.f32 %v2859_v47, %v7305_v27 }
 0x45b   : > { %2900 = vrot.lane.b32.xlu0 %v7443_v14, %s5741_s6  ;;  %3089 = vrot.lane.b32.xlu1 %v7443_v14, %s5742_s7  ;;  %v7457_v35 = vpop.f32.mrb[73].mxu1 }
 0x45c   : > { %v5458_v43 = vpop.f32.mrb[74].mxu1 }
 0x45d   : > { %v3058_v61 = vpop.permute.xlu1 %3057  ;;  %v7459_v58 = vpop.f32.mrb[75].mxu1 }
 0x45e   : > { %v2869_v3 = vpop.permute.xlu0 %2868  ;;  %v7476_v15 = vadd.f32 %v3058_v61, %v3004_v52 }
 0x45f   : > { %2902 = vrot.lane.b32.xlu1 %v7445_v7, %s5741_s6  ;;  %3091 = vrot.lane.b32.xlu0 %v7445_v7, %s5742_s7  ;;  %v3007_v4 = vadd.f32 %v7321_v56, %v2869_v3 }
 0x460   : > { %v8866_v45 = vrot.slane %v7476_v15, 1  ;;  %v8867_v60 = vrot.slane %v7476_v15, 2 }
 0x461   : > { %v3054_v39 = vpop.permute.xlu1 %3053 }
 0x462   : > { %v2865_v46 = vpop.permute.xlu0 %2864  ;;  %v7465_v16 = vpop.f32.mrb[76].mxu1  ;;  %v7478_v11 = vadd.f32 %v3054_v39, %v3002_v1 }
 0x463   : > { %2910 = vrot.lane.b32.xlu0 %v7451_v23, %s5741_s6  ;;  %3099 = vrot.lane.b32.xlu1 %v7451_v23, %s5742_s7  ;;  %v7473_v51 = vpop.f32.mrb[77].mxu1  ;;  %v3005_v47 = vadd.f32 %v2865_v46, %v7323_v2 }
 0x464   : > { %v5462_v28 = vpop.f32.mrb[78].mxu1  ;;  %9056 = vst [vmem:[#allocation19_spill] sm:$0xff] %v7478_v11  ;;  %v3613_v0 = vrot.slane %v7478_v11, 2  ;;  %v3341_v24 = vrot.slane %v7478_v11, 1 }
 0x465   : > { %v2867_v42 = vpop.permute.xlu1 %2866  ;;  %v7480_v20 = vpop.f32.mrb[79].mxu1 }
 0x466   : > { %9057 = vst [vmem:[#allocation14_spill] sm:$0xff] %v7480_v20  ;;  %v3056_v50 = vpop.permute.xlu0 %3055  ;;  %v3006_v61 = vadd.f32 %v2867_v42, %v7327_v44 }
 0x467   : > { %v7482_v27 = vadd.f32 %v3056_v50, %v3003_v22  ;;  %2906 = vrot.lane.b32.xlu0 %v7457_v35, %s5741_s6  ;;  %3095 = vrot.lane.b32.xlu1 %v7457_v35, %s5742_s7 }
 0x469   : > { %9058 = vst [vmem:[#allocation16_spill] sm:$0xff] %v7482_v27  ;;  %v3342_v36 = vrot.slane %v7482_v27, 1  ;;  %v3614_v30 = vrot.slane %v7482_v27, 2  ;;  %v3064_v19 = vpop.permute.xlu1 %3063 }
 0x46a   : > { %v2875_v9 = vpop.permute.xlu0 %2874  ;;  %v7494_v53 = vpop.f32.mrb[80].mxu1  ;;  %v7526_v43 = vadd.f32 %v3064_v19, %v3007_v4 }
 0x46b   : > { %9059 = vst [vmem:[#allocation18_spill] sm:$0xff] %v7494_v53  ;;  %2908 = vrot.lane.b32.xlu1 %v7459_v58, %s5741_s6  ;;  %3097 = vrot.lane.b32.xlu0 %v7459_v58, %s5742_s7  ;;  %v7500_v49 = vpop.f32.mrb[81].mxu1  ;;  %v7505_v12 = vsel %vm1372_vm2, %v3342_v36, %v8866_v45  ;;  %v7508_v33 = vsel %vm1645_vm3, %v3613_v0, %v3614_v30 }
 0x46c   : > { %9060 = vst [vmem:[#allocation20_spill] sm:$0xff] %v7500_v49  ;;  %v5466_v57 = vpop.f32.mrb[82].mxu1  ;;  %v7511_v62 = vsel %vm1372_vm2, %v3341_v24, %v3342_v36  ;;  %v7516_v59 = vsel %vm1645_vm3, %v3614_v30, %v8867_v60  ;;  %v8865_v3 = vrot.slane %v7526_v43, 1  ;;  %v8864_v0 = vrot.slane %v7526_v43, 2 }
 0x46d   : > { %v7518_v18 = vpop.f32.mrb[83].mxu1  ;;  %v3060_v26 = vpop.permute.xlu1 %3059 }
 0x46e   : > { %9061 = vst [vmem:[#allocation21_spill] sm:$0xff] %v7518_v18  ;;  %v2871_v31 = vpop.permute.xlu0 %2870  ;;  %v7529_v39 = vadd.f32 %v3060_v26, %v3005_v47 }
 0x46f   : > { %2916 = vrot.lane.b32.xlu0 %v7465_v16, %s5741_s6  ;;  %3105 = vrot.lane.b32.xlu1 %v7465_v16, %s5742_s7 }
 0x470   : > { %9062 = vst [vmem:[#allocation22_spill] sm:$0xff] %v7529_v39  ;;  %v3346_v44 = vrot.slane %v7529_v39, 1  ;;  %v3618_v28 = vrot.slane %v7529_v39, 2 }
 0x471   : > { %v2873_v57 = vpop.permute.xlu1 %2872 }
 0x472   : > { %v3062_v52 = vpop.permute.xlu0 %3061  ;;  %v7531_v1 = vpop.f32.mrb[84].mxu1  ;;  %v3009_v60 = vadd.f32 %v2873_v57, %v7341_v8 }
 0x473   : > { %9063 = vst [vmem:[#allocation24_spill] sm:$0xff] %v7531_v1  ;;  %v7533_v56 = vadd.f32 %v3062_v52, %v3006_v61  ;;  %2912 = vrot.lane.b32.xlu0 %v7473_v51, %s5741_s6  ;;  %3101 = vrot.lane.b32.xlu1 %v7473_v51, %s5742_s7  ;;  %v7539_v2 = vpop.f32.mrb[85].mxu1 }
 0x474   : > { %9065 = vst [vmem:[#allocation25_spill] sm:$0xff] %v7539_v2  ;;  %v5470_v46 = vpop.f32.mrb[86].mxu1 }
 0x475   : > { %9064 = vst [vmem:[#allocation23_spill] sm:$0xff] %v7533_v56  ;;  %v3347_v22 = vrot.slane %v7533_v56, 1  ;;  %v3619_v42 = vrot.slane %v7533_v56, 2  ;;  %v7546_v50 = vpop.f32.mrb[87].mxu1 }
 0x476   : > { %9066 = vst [vmem:[#allocation27_spill] sm:$0xff] %v7546_v50 }
 0x477   : > { %2914 = vrot.lane.b32.xlu1 %v7480_v20, %s5741_s6  ;;  %3103 = vrot.lane.b32.xlu0 %v7480_v20, %s5742_s7  ;;  %v7556_v36 = vsel %vm1372_vm2, %v3347_v22, %v8865_v3  ;;  %v7559_v30 = vsel %vm1645_vm3, %v3618_v28, %v3619_v42  ;;  %v7562_v19 = vsel %vm1372_vm2, %v3346_v44, %v3347_v22 }
 0x478   : > { %v7567_v24 = vsel %vm1645_vm3, %v3619_v42, %v8864_v0  ;;  %v3010_v28 = vadd.f32 %v7333_v5, %v2875_v9  ;;  %v3008_v0 = vadd.f32 %v2871_v31, %v7335_v38 }
 0x47a   : > { %v7569_v4 = vpop.f32.mrb[88].mxu1 }
 0x47b   : > { %9067 = vst [vmem:[#allocation26_spill] sm:$0xff] %v7569_v4  ;;  %2922 = vrot.lane.b32.xlu0 %v7494_v53, %s5741_s6  ;;  %3111 = vrot.lane.b32.xlu1 %v7494_v53, %s5742_s7  ;;  %v7575_v26 = vpop.f32.mrb[89].mxu1  ;;  %v3070_v61 = vpop.permute.xlu1 %3069 }
 0x47c   : > { %9068 = vst [vmem:[#allocation28_spill] sm:$0xff] %v7575_v26  ;;  %v5474_v47 = vpop.f32.mrb[90].mxu1  ;;  %v2881_v46 = vpop.permute.xlu0 %2880  ;;  %v7593_v3 = vadd.f32 %v3070_v61, %v3010_v28 }
 0x47d   : > { %v7577_v52 = vpop.f32.mrb[91].mxu1 }
 0x47e   : > { %v8873_v38 = vrot.slane %v7593_v3, 1 }
 0x47f   : > { %2918 = vrot.lane.b32.xlu0 %v7500_v49, %s5741_s6  ;;  %3107 = vrot.lane.b32.xlu1 %v7500_v49, %s5742_s7  ;;  %v3066_v44 = vpop.permute.xlu1 %3065 }
 0x480   : > { %v2877_v22 = vpop.permute.xlu0 %2876  ;;  %v7596_v56 = vadd.f32 %v3066_v44, %v3008_v0 }
 0x482   : > { %v7584_v42 = vpop.f32.mrb[92].mxu1  ;;  %9070 = vst [vmem:[#allocation32_spill] sm:$0xff] %v7596_v56  ;;  %v3351_v31 = vrot.slane %v7596_v56, 1 }
 0x483   : > { %2920 = vrot.lane.b32.xlu1 %v7518_v18, %s5741_s6  ;;  %3109 = vrot.lane.b32.xlu0 %v7518_v18, %s5742_s7  ;;  %v7591_v47 = vpop.f32.mrb[93].mxu1 }
 0x484   : > { %9069 = vst [vmem:[#allocation29_spill] sm:$0xff] %v7591_v47  ;;  %v5478_v45 = vpop.f32.mrb[94].mxu1  ;;  %v3068_v9 = vpop.permute.xlu0 %3067 }
 0x485   : > { %v7598_v5 = vpop.f32.mrb[95].mxu1  ;;  %v7600_v39 = vadd.f32 %v3068_v9, %v3009_v60  ;;  %v3623_v45 = vrot.slane %v7596_v56, 2 }
 0x486   : > { %9071 = vst [vmem:[#allocation30_spill] sm:$0xff] %v7598_v5 }
 0x487   : > { %9072 = vst [vmem:[#allocation31_spill] sm:$0xff] %v7600_v39  ;;  %2928 = vrot.lane.b32.xlu0 %v7531_v1, %s5741_s6  ;;  %3117 = vrot.lane.b32.xlu1 %v7531_v1, %s5742_s7  ;;  %v3352_v8 = vrot.slane %v7600_v39, 1  ;;  %v3624_v0 = vrot.slane %v7600_v39, 2  ;;  %v9075_v39 = vrot.slane %v7593_v3, 2 }
 0x489   : > { %v7623_v44 = vsel %vm1372_vm2, %v3352_v8, %v8873_v38  ;;  %v7626_v28 = vsel %vm1645_vm3, %v3623_v45, %v3624_v0  ;;  %v7629_v9 = vsel %vm1372_vm2, %v3351_v31, %v3352_v8  ;;  %v7634_v56 = vsel %vm1645_vm3, %v3624_v0, %v9075_v39  ;;  %v2879_v38 = vpop.permute.xlu1 %2878 }
 0x48a   : > { %v7612_v60 = vpop.f32.mrb[96].mxu1 }
 0x48b   : > { %9073 = vst [vmem:[#allocation34_spill] sm:$0xff] %v7612_v60  ;;  %2924 = vrot.lane.b32.xlu0 %v7539_v2, %s5741_s6  ;;  %3113 = vrot.lane.b32.xlu1 %v7539_v2, %s5742_s7  ;;  %v7618_v61 = vpop.f32.mrb[97].mxu1 }
 0x48c   : > { %9074 = vst [vmem:[#allocation33_spill] sm:$0xff] %v7618_v61  ;;  %v5482_v57 = vpop.f32.mrb[98].mxu1 }
 0x48d   : > { %v7636_v27 = vpop.f32.mrb[99].mxu1 }
 0x48e   : > { %9076 = vst [vmem:[#allocation5_spill] sm:$0xff] %v7636_v27 }
 0x48f   : > { %2926 = vrot.lane.b32.xlu1 %v7546_v50, %s5741_s6  ;;  %3115 = vrot.lane.b32.xlu0 %v7546_v50, %s5742_s7  ;;  %v3013_v50 = vadd.f32 %v7347_v29, %v2881_v46 }
 0x492   : > { %v7642_v45 = vpop.f32.mrb[100].mxu1 }
 0x493   : > { %2934 = vrot.lane.b32.xlu0 %v7569_v4, %s5741_s6  ;;  %3123 = vrot.lane.b32.xlu1 %v7569_v4, %s5742_s7  ;;  %v7648_v31 = vpop.f32.mrb[101].mxu1  ;;  %v3011_v4 = vadd.f32 %v2877_v22, %v7349_v25 }
 0x494   : > { %v5486_v39 = vpop.f32.mrb[102].mxu1 }
 0x495   : > { %v3076_v8 = vpop.permute.xlu1 %3075  ;;  %v7650_v0 = vpop.f32.mrb[103].mxu1 }
 0x496   : > { %v2887_v57 = vpop.permute.xlu0 %2886  ;;  %v7666_v18 = vadd.f32 %v3076_v8, %v3013_v50 }
 0x497   : > { %2930 = vrot.lane.b32.xlu0 %v7575_v26, %s5741_s6  ;;  %3119 = vrot.lane.b32.xlu1 %v7575_v26, %s5742_s7  ;;  %v3012_v26 = vadd.f32 %v2879_v38, %v7355_v63 }
 0x498   : > { %v8884_v25 = vrot.slane %v7666_v18, 1 }
 0x499   : > { %v3072_v11 = vpop.permute.xlu1 %3071 }
 0x49a   : > { %v2883_v2 = vpop.permute.xlu0 %2882  ;;  %v7657_v1 = vpop.f32.mrb[104].mxu1  ;;  %v7669_v53 = vadd.f32 %v3072_v11, %v3011_v4  ;;  %v8886_v4 = vrot.slane %v7666_v18, 2 }
 0x49b   : > { %2932 = vrot.lane.b32.xlu1 %v7577_v52, %s5741_s6  ;;  %3121 = vrot.lane.b32.xlu0 %v7577_v52, %s5742_s7  ;;  %v7664_v39 = vpop.f32.mrb[105].mxu1 }
 0x49c   : > { %v5490_v49 = vpop.f32.mrb[106].mxu1  ;;  %9077 = vst [vmem:[#allocation3_spill] sm:$0xff] %v7669_v53  ;;  %v3356_v50 = vrot.slane %v7669_v53, 1 }
 0x49d   : > { %v7671_v29 = vpop.f32.mrb[107].mxu1  ;;  %v3628_v49 = vrot.slane %v7669_v53, 2 }
 0x49e   : > { %v3074_v46 = vpop.permute.xlu0 %3073 }
 0x49f   : > { %v7673_v20 = vadd.f32 %v3074_v46, %v3012_v26  ;;  %2940 = vrot.lane.b32.xlu0 %v7584_v42, %s5741_s6  ;;  %3129 = vrot.lane.b32.xlu1 %v7584_v42, %s5742_s7  ;;  %v2885_v46 = vpop.permute.xlu1 %2884 }
 0x4a0   : > { %v3015_v53 = vadd.f32 %v2885_v46, %v7377_v54 }
 0x4a1   : > { %9078 = vst [vmem:[#allocation6_spill] sm:$0xff] %v7673_v20  ;;  %v3357_v63 = vrot.slane %v7673_v20, 1  ;;  %v3629_v11 = vrot.slane %v7673_v20, 2 }
 0x4a3   : > { %2936 = vrot.lane.b32.xlu0 %v7591_v47, %s5741_s6  ;;  %3125 = vrot.lane.b32.xlu1 %v7591_v47, %s5742_s7  ;;  %v7692_v26 = vsel %vm1372_vm2, %v3357_v63, %v8884_v25  ;;  %v7695_v22 = vsel %vm1645_vm3, %v3628_v49, %v3629_v11  ;;  %v7698_v38 = vsel %vm1372_vm2, %v3356_v50, %v3357_v63 }
 0x4a4   : > { %v7703_v8 = vsel %vm1645_vm3, %v3629_v11, %v8886_v4  ;;  %v3016_v50 = vadd.f32 %v7369_v6, %v2887_v57  ;;  %v3014_v11 = vadd.f32 %v2883_v2, %v7375_v37 }
 0x4a7   : > { %2938 = vrot.lane.b32.xlu1 %v7598_v5, %s5741_s6  ;;  %3127 = vrot.lane.b32.xlu0 %v7598_v5, %s5742_s7 }
 0x4a9   : > { %v3082_v25 = vpop.permute.xlu1 %3081  ;;  %v2893_v20 = vpop.permute.xlu0 %2892 }
 0x4aa   : > { %v7715_v4 = vadd.f32 %v3082_v25, %v3016_v50 }
 0x4ab   : > { %2946 = vrot.lane.b32.xlu0 %v7612_v60, %s5741_s6  ;;  %3135 = vrot.lane.b32.xlu1 %v7612_v60, %s5742_s7 }
 0x4ac   : > { %v8892_v6 = vrot.slane %v7715_v4, 1  ;;  %v8891_v57 = vrot.slane %v7715_v4, 2 }
 0x4ad   : > { %v3078_v49 = vpop.permute.xlu1 %3077  ;;  %v2889_v63 = vpop.permute.xlu0 %2888 }
 0x4ae   : > { %v7722_v5 = vadd.f32 %v3078_v49, %v3014_v11 }
 0x4af   : > { %2942 = vrot.lane.b32.xlu0 %v7618_v61, %s5741_s6  ;;  %3131 = vrot.lane.b32.xlu1 %v7618_v61, %s5742_s7 }
 0x4b0   : > { %9079 = vst [vmem:[#allocation4_spill] sm:$0xff] %v7722_v5  ;;  %v3361_v37 = vrot.slane %v7722_v5, 1  ;;  %v3633_v2 = vrot.slane %v7722_v5, 2 }
 0x4b1   : > { %v3080_v47 = vpop.permute.xlu0 %3079  ;;  %v2891_v49 = vpop.permute.xlu1 %2890 }
 0x4b2   : > { %v7724_v60 = vadd.f32 %v3080_v47, %v3015_v53 }
 0x4b3   : > { %2944 = vrot.lane.b32.xlu1 %v7636_v27, %s5741_s6  ;;  %3133 = vrot.lane.b32.xlu0 %v7636_v27, %s5742_s7 }
 0x4b4   : > { %9080 = vst [vmem:[#allocation7_spill] sm:$0xff] %v7724_v60  ;;  %v3362_v54 = vrot.slane %v7724_v60, 1  ;;  %v3634_v25 = vrot.slane %v7724_v60, 2 }
 0x4b6   : > { %v7739_v53 = vsel %vm1372_vm2, %v3362_v54, %v8892_v6  ;;  %v7742_v47 = vsel %vm1645_vm3, %v3633_v2, %v3634_v25  ;;  %v7745_v46 = vsel %vm1372_vm2, %v3361_v37, %v3362_v54  ;;  %v7750_v50 = vsel %vm1645_vm3, %v3634_v25, %v8891_v57 }
 0x4b7   : > { %2952 = vrot.lane.b32.xlu0 %v7642_v45, %s5741_s6  ;;  %3141 = vrot.lane.b32.xlu1 %v7642_v45, %s5742_s7  ;;  %v3019_v25 = vadd.f32 %v7387_v17, %v2893_v20  ;;  %v3017_v45 = vadd.f32 %v2889_v63, %v7393_v41  ;;  %v9081_v57 = vrot.slane %v7476_v15, 2  ;;  %v3018_v6 = vadd.f32 %v2891_v49, %v7395_v40 }
 0x4bb   : > { %2948 = vrot.lane.b32.xlu0 %v7648_v31, %s5741_s6  ;;  %3137 = vrot.lane.b32.xlu1 %v7648_v31, %s5742_s7  ;;  %v9082_v31 = vrot.slane %v7476_v15, 1 }
 0x4bd   : > { %v3088_v11 = vpop.permute.xlu1 %3087  ;;  %v2899_v37 = vpop.permute.xlu0 %2898 }
 0x4be   : > { %v7773_v60 = vadd.f32 %v3088_v11, %v3019_v25 }
 0x4bf   : > { %2950 = vrot.lane.b32.xlu1 %v7650_v0, %s5741_s6  ;;  %3139 = vrot.lane.b32.xlu0 %v7650_v0, %s5742_s7 }
 0x4c0   : > { %v3369_v17 = vrot.slane %v7773_v60, 1  ;;  %v8905_v63 = vrot.slane %v7773_v60, 2 }
 0x4c1   : > { %v3084_v2 = vpop.permute.xlu1 %3083  ;;  %v2895_v54 = vpop.permute.xlu0 %2894 }
 0x4c2   : > { %v7775_v5 = vadd.f32 %v3084_v2, %v3017_v45  ;;  %v3022_v45 = vadd.f32 %v7405_v10, %v2899_v37  ;;  %v9083_v10 = vrot.slane %v7526_v43, 1 }
 0x4c3   : > { %3697 = vrot.lane.b32.xlu1 %v9081_v57, %s5743_s9  ;;  %3425 = vrot.lane.b32.xlu0 %v9082_v31, %s5744_s10  ;;  %v3020_v31 = vadd.f32 %v2895_v54, %v7411_v21 }
 0x4c4   : > { %v3638_v41 = vrot.slane %v7775_v5, 2  ;;  %v3366_v57 = vrot.slane %v7775_v5, 1 }
 0x4c5   : > { %v2897_v0 = vpop.permute.xlu1 %2896  ;;  %v3086_v27 = vpop.permute.xlu0 %3085 }
 0x4c6   : > { %v7777_v61 = vadd.f32 %v3086_v27, %v3018_v6 }
 0x4c7   : > { %3147 = vrot.lane.b32.xlu1 %v7657_v1, %s5742_s7  ;;  %3423 = vrot.lane.b32.xlu0 %v7505_v12, %s5744_s10 }
 0x4c8   : > { %v3367_v40 = vrot.slane %v7777_v61, 1  ;;  %v3639_v20 = vrot.slane %v7777_v61, 2 }
 0x4c9   : > { %v3094_v27 = vpop.permute.xlu1 %3093  ;;  %v2905_v6 = vpop.permute.xlu0 %2904 }
 0x4ca   : > { %v7792_v1 = vsel %vm1372_vm2, %v3367_v40, %v3369_v17  ;;  %v7795_v12 = vsel %vm1645_vm3, %v3638_v41, %v3639_v20  ;;  %v7802_v49 = vsel %vm1372_vm2, %v3366_v57, %v3367_v40  ;;  %v7807_v11 = vsel %vm1645_vm3, %v3639_v20, %v8905_v63 }
 0x4cb   : > { %3143 = vrot.lane.b32.xlu1 %v7664_v39, %s5742_s7  ;;  %3693 = vrot.lane.b32.xlu0 %v7508_v33, %s5743_s9  ;;  %v3021_v33 = vadd.f32 %v2897_v0, %v7413_v48  ;;  %v7816_v39 = vadd.f32 %v3094_v27, %v3022_v45  ;;  %v9084_v45 = vrot.slane %v7526_v43, 2 }
 0x4cd   : > { %v3090_v2 = vpop.permute.xlu1 %3089  ;;  %v2901_v25 = vpop.permute.xlu0 %2900  ;;  %v8897_v21 = vrot.slane %v7816_v39, 1  ;;  %v8898_v37 = vrot.slane %v7816_v39, 2 }
 0x4ce   : > { %v7818_v41 = vadd.f32 %v3090_v2, %v3020_v31 }
 0x4cf   : > { %3145 = vrot.lane.b32.xlu0 %v7671_v29, %s5742_s7  ;;  %3421 = vrot.lane.b32.xlu1 %v7511_v62, %s5744_s10 }
 0x4d0   : > { %v3643_v62 = vrot.slane %v7818_v41, 2  ;;  %v3371_v54 = vrot.slane %v7818_v41, 1 }
 0x4d1   : > { %v2903_v40 = vpop.permute.xlu1 %2902  ;;  %v3092_v20 = vpop.permute.xlu0 %3091 }
 0x4d2   : > { %v7820_v57 = vadd.f32 %v3092_v20, %v3021_v33 }
 0x4d3   : > { %3431 = vrot.lane.b32.xlu0 %v9083_v10, %s5744_s10  ;;  %3695 = vrot.lane.b32.xlu1 %v7516_v59, %s5743_s9 }
 0x4d4   : > { %v3372_v48 = vrot.slane %v7820_v57, 1  ;;  %v3644_v29 = vrot.slane %v7820_v57, 2 }
 0x4d5   : > { %v3100_v0 = vpop.permute.xlu1 %3099  ;;  %v2911_v27 = vpop.permute.xlu0 %2910 }
 0x4d6   : > { %v7836_v2 = vsel %vm1372_vm2, %v3372_v48, %v8897_v21  ;;  %v7839_v59 = vsel %vm1645_vm3, %v3643_v62, %v3644_v29  ;;  %v7847_v31 = vsel %vm1372_vm2, %v3371_v54, %v3372_v48  ;;  %v7852_v33 = vsel %vm1645_vm3, %v3644_v29, %v8898_v37 }
 0x4d7   : > { %3703 = vrot.lane.b32.xlu1 %v9084_v45, %s5743_s9  ;;  %3429 = vrot.lane.b32.xlu0 %v7556_v36, %s5744_s10  ;;  %v3025_v62 = vadd.f32 %v7423_v13, %v2905_v6  ;;  %v3023_v21 = vadd.f32 %v2901_v25, %v7429_v55  ;;  %v3024_v36 = vadd.f32 %v2903_v40, %v7431_v32  ;;  %v9085_v13 = vrot.slane %v7593_v3, 1 }
 0x4d9   : > { %v3096_v20 = vpop.permute.xlu1 %3095  ;;  %v2907_v10 = vpop.permute.xlu0 %2906  ;;  %v7861_v48 = vadd.f32 %v3100_v0, %v3025_v62 }
 0x4da   : > { %v7863_v54 = vadd.f32 %v3096_v20, %v3023_v21  ;;  %v9086_v20 = vrot.slane %v7593_v3, 2 }
 0x4db   : > { %3699 = vrot.lane.b32.xlu0 %v7559_v30, %s5743_s9  ;;  %3427 = vrot.lane.b32.xlu1 %v7562_v19, %s5744_s10  ;;  %v8899_v55 = vrot.slane %v7861_v48, 1  ;;  %v8900_v6 = vrot.slane %v7861_v48, 2 }
 0x4dc   : > { %v3648_v30 = vrot.slane %v7863_v54, 2  ;;  %v3376_v25 = vrot.slane %v7863_v54, 1 }
 0x4dd   : > { %v2909_v29 = vpop.permute.xlu1 %2908  ;;  %v3098_v45 = vpop.permute.xlu0 %3097 }
 0x4de   : > { %v7865_v37 = vadd.f32 %v3098_v45, %v3024_v36 }
 0x4df   : > { %3437 = vrot.lane.b32.xlu0 %v9085_v13, %s5744_s10  ;;  %3701 = vrot.lane.b32.xlu1 %v7567_v24, %s5743_s9 }
 0x4e0   : > { %v3377_v32 = vrot.slane %v7865_v37, 1  ;;  %v3649_v19 = vrot.slane %v7865_v37, 2 }
 0x4e1   : > { %v3106_v40 = vpop.permute.xlu1 %3105  ;;  %v2917_v21 = vpop.permute.xlu0 %2916 }
 0x4e2   : > { %v7881_v0 = vsel %vm1372_vm2, %v3377_v32, %v8899_v55  ;;  %v7884_v24 = vsel %vm1645_vm3, %v3648_v30, %v3649_v19  ;;  %v7892_v62 = vsel %vm1372_vm2, %v3376_v25, %v3377_v32  ;;  %v7897_v36 = vsel %vm1645_vm3, %v3649_v19, %v8900_v6 }
 0x4e3   : > { %3709 = vrot.lane.b32.xlu1 %v9086_v20, %s5743_s9  ;;  %3435 = vrot.lane.b32.xlu0 %v7623_v44, %s5744_s10  ;;  %v3028_v30 = vadd.f32 %v7437_v34, %v2911_v27  ;;  %v3026_v55 = vadd.f32 %v2907_v10, %v7443_v14  ;;  %v3027_v44 = vadd.f32 %v2909_v29, %v7445_v7  ;;  %v9087_v34 = vrot.slane %v7666_v18, 1 }
 0x4e5   : > { %v3102_v45 = vpop.permute.xlu1 %3101  ;;  %v2913_v13 = vpop.permute.xlu0 %2912  ;;  %v7906_v32 = vadd.f32 %v3106_v40, %v3028_v30 }
 0x4e6   : > { %v7908_v25 = vadd.f32 %v3102_v45, %v3026_v55  ;;  %v9088_v45 = vrot.slane %v7666_v18, 2 }
 0x4e7   : > { %3705 = vrot.lane.b32.xlu0 %v7626_v28, %s5743_s9  ;;  %3433 = vrot.lane.b32.xlu1 %v7629_v9, %s5744_s10  ;;  %v8902_v14 = vrot.slane %v7906_v32, 1  ;;  %v8901_v27 = vrot.slane %v7906_v32, 2 }
 0x4e8   : > { %v3381_v28 = vrot.slane %v7908_v25, 1  ;;  %v3653_v10 = vrot.slane %v7908_v25, 2 }
 0x4e9   : > { %v2915_v19 = vpop.permute.xlu1 %2914  ;;  %v3104_v20 = vpop.permute.xlu0 %3103 }
 0x4ea   : > { %v7910_v6 = vadd.f32 %v3104_v20, %v3027_v44 }
 0x4eb   : > { %3443 = vrot.lane.b32.xlu0 %v9087_v34, %s5744_s10  ;;  %3707 = vrot.lane.b32.xlu1 %v7634_v56, %s5743_s9 }
 0x4ec   : > { %v3382_v7 = vrot.slane %v7910_v6, 1  ;;  %v3654_v9 = vrot.slane %v7910_v6, 2 }
 0x4ed   : > { %v3112_v29 = vpop.permute.xlu1 %3111  ;;  %v2923_v55 = vpop.permute.xlu0 %2922 }
 0x4ee   : > { %v7924_v40 = vsel %vm1372_vm2, %v3381_v28, %v3382_v7  ;;  %v7929_v56 = vsel %vm1372_vm2, %v3382_v7, %v8902_v14  ;;  %v7937_v30 = vsel %vm1645_vm3, %v3653_v10, %v3654_v9  ;;  %v7942_v44 = vsel %vm1645_vm3, %v3654_v9, %v8901_v27 }
 0x4ef   : > { %3715 = vrot.lane.b32.xlu1 %v9088_v45, %s5743_s9  ;;  %3441 = vrot.lane.b32.xlu0 %v7692_v26, %s5744_s10  ;;  %v3031_v28 = vadd.f32 %v7451_v23, %v2917_v21  ;;  %v3029_v7 = vadd.f32 %v2913_v13, %v7457_v35  ;;  %v3030_v26 = vadd.f32 %v2915_v19, %v7459_v58  ;;  %v9092_v23 = vrot.slane %v7715_v4, 1 }
 0x4f1   : > { %v3108_v20 = vpop.permute.xlu1 %3107  ;;  %v2919_v34 = vpop.permute.xlu0 %2918  ;;  %v7951_v10 = vadd.f32 %v3112_v29, %v3031_v28 }
 0x4f2   : > { %v7953_v45 = vadd.f32 %v3108_v20, %v3029_v7  ;;  %v9093_v20 = vrot.slane %v7715_v4, 2 }
 0x4f3   : > { %3711 = vrot.lane.b32.xlu0 %v7695_v22, %s5743_s9  ;;  %3439 = vrot.lane.b32.xlu1 %v7698_v38, %s5744_s10  ;;  %9089 = vst [vmem:[#allocation8_spill] sm:$0xff] %v7951_v10  ;;  %v8903_v35 = vrot.slane %v7951_v10, 1  ;;  %v8904_v21 = vrot.slane %v7951_v10, 2 }
 0x4f4   : > { %9090 = vst [vmem:[#allocation10_spill] sm:$0xff] %v7953_v45  ;;  %v3386_v22 = vrot.slane %v7953_v45, 1  ;;  %v3658_v13 = vrot.slane %v7953_v45, 2 }
 0x4f5   : > { %v2921_v9 = vpop.permute.xlu1 %2920  ;;  %v3110_v27 = vpop.permute.xlu0 %3109 }
 0x4f6   : > { %v7955_v14 = vadd.f32 %v3110_v27, %v3030_v26 }
 0x4f7   : > { %3449 = vrot.lane.b32.xlu0 %v9092_v23, %s5744_s10  ;;  %3713 = vrot.lane.b32.xlu1 %v7703_v8, %s5743_s9 }
 0x4f8   : > { %9091 = vst [vmem:[#allocation12_spill] sm:$0xff] %v7955_v14  ;;  %v3387_v58 = vrot.slane %v7955_v14, 1  ;;  %v3659_v38 = vrot.slane %v7955_v14, 2 }
 0x4f9   : > { %v3118_v19 = vpop.permute.xlu1 %3117  ;;  %v2929_v27 = vpop.permute.xlu0 %2928 }
 0x4fa   : > { %v7969_v29 = vsel %vm1372_vm2, %v3386_v22, %v3387_v58  ;;  %v7974_v8 = vsel %vm1372_vm2, %v3387_v58, %v8903_v35  ;;  %v7984_v28 = vsel %vm1645_vm3, %v3659_v38, %v8904_v21  ;;  %v7987_v7 = vsel %vm1645_vm3, %v3658_v13, %v3659_v38 }
 0x4fb   : > { %3721 = vrot.lane.b32.xlu1 %v9093_v20, %s5743_s9  ;;  %3447 = vrot.lane.b32.xlu0 %v7739_v53, %s5744_s10  ;;  %v3034_v22 = vadd.f32 %v7465_v16, %v2923_v55  ;;  %v3032_v58 = vadd.f32 %v2919_v34, %v7473_v51  ;;  %v9094_v53 = vld [vmem:[#allocation14_spill] sm:$0xff] }
 0x4fc   : > { %v3033_v20 = vadd.f32 %v2921_v9, %v9094_v53 }
 0x4fd   : > { %v3114_v26 = vpop.permute.xlu1 %3113  ;;  %v2925_v23 = vpop.permute.xlu0 %2924  ;;  %v7996_v35 = vadd.f32 %v3118_v19, %v3034_v22 }
 0x4fe   : > { %v7998_v21 = vadd.f32 %v3114_v26, %v3032_v58 }
 0x4ff   : > { %3717 = vrot.lane.b32.xlu0 %v7742_v47, %s5743_s9  ;;  %3445 = vrot.lane.b32.xlu1 %v7745_v46, %s5744_s10  ;;  %v8906_v16 = vrot.slane %v7996_v35, 1  ;;  %v8908_v55 = vrot.slane %v7996_v35, 2 }
 0x500   : > { %9095 = vst [vmem:[#allocation17_spill] sm:$0xff] %v7998_v21  ;;  %v3391_v51 = vrot.slane %v7998_v21, 1  ;;  %v3663_v34 = vrot.slane %v7998_v21, 2 }
 0x501   : > { %v2927_v38 = vpop.permute.xlu1 %2926  ;;  %v3116_v13 = vpop.permute.xlu0 %3115 }
 0x502   : > { %v8000_v63 = vadd.f32 %v3116_v13, %v3033_v20  ;;  %v9098_v13 = vld [vmem:[#allocation18_spill] sm:$0xff] }
 0x503   : > { %3455 = vrot.lane.b32.xlu0 %v3369_v17, %s5744_s10  ;;  %3719 = vrot.lane.b32.xlu1 %v7750_v50, %s5743_s9  ;;  %v9097_v17 = vrot.slane %v7773_v60, 2 }
 0x504   : > { %9096 = vst [vmem:[#allocation9_spill] sm:$0xff] %v8000_v63  ;;  %v3392_v47 = vrot.slane %v8000_v63, 1  ;;  %v3664_v46 = vrot.slane %v8000_v63, 2 }
 0x505   : > { %v3124_v9 = vpop.permute.xlu1 %3123  ;;  %v2935_v19 = vpop.permute.xlu0 %2934 }
 0x506   : > { %v8014_v26 = vsel %vm1372_vm2, %v3391_v51, %v3392_v47  ;;  %v8019_v50 = vsel %vm1372_vm2, %v3392_v47, %v8906_v16  ;;  %v8029_v22 = vsel %vm1645_vm3, %v3664_v46, %v8908_v55  ;;  %v8032_v58 = vsel %vm1645_vm3, %v3663_v34, %v3664_v46  ;;  %v9099_v47 = vld [vmem:[#allocation20_spill] sm:$0xff] }
 0x507   : > { %3727 = vrot.lane.b32.xlu1 %v9097_v17, %s5743_s9  ;;  %3453 = vrot.lane.b32.xlu0 %v7792_v1, %s5744_s10  ;;  %v3037_v51 = vadd.f32 %v9098_v13, %v2929_v27  ;;  %v3035_v16 = vadd.f32 %v2925_v23, %v9099_v47  ;;  %v9100_v1 = vld [vmem:[#allocation21_spill] sm:$0xff]  ;;  %v9103_v27 = vrot.slane %v7816_v39, 1  ;;  %v9104_v47 = vrot.slane %v7816_v39, 2 }
 0x508   : > { %v3036_v17 = vadd.f32 %v2927_v38, %v9100_v1 }
 0x509   : > { %v3120_v53 = vpop.permute.xlu1 %3119  ;;  %v2931_v20 = vpop.permute.xlu0 %2930  ;;  %v8041_v21 = vadd.f32 %v3124_v9, %v3037_v51 }
 0x50a   : > { %v8043_v55 = vadd.f32 %v3120_v53, %v3035_v16 }
 0x50b   : > { %3723 = vrot.lane.b32.xlu0 %v7795_v12, %s5743_s9  ;;  %3451 = vrot.lane.b32.xlu1 %v7802_v49, %s5744_s10  ;;  %v8910_v12 = vrot.slane %v8041_v21, 1  ;;  %v8913_v16 = vrot.slane %v8041_v21, 2 }
 0x50c   : > { %9101 = vst [vmem:[#allocation11_spill] sm:$0xff] %v8043_v55  ;;  %v3396_v49 = vrot.slane %v8043_v55, 1  ;;  %v3668_v9 = vrot.slane %v8043_v55, 2 }
 0x50d   : > { %v2933_v46 = vpop.permute.xlu1 %2932  ;;  %v3122_v34 = vpop.permute.xlu0 %3121 }
 0x50e   : > { %v8045_v63 = vadd.f32 %v3122_v34, %v3036_v17 }
 0x50f   : > { %3461 = vrot.lane.b32.xlu0 %v9103_v27, %s5744_s10  ;;  %3725 = vrot.lane.b32.xlu1 %v7807_v11, %s5743_s9 }
 0x510   : > { %9102 = vst [vmem:[#allocation15_spill] sm:$0xff] %v8045_v63  ;;  %v3397_v23 = vrot.slane %v8045_v63, 1  ;;  %v3669_v38 = vrot.slane %v8045_v63, 2 }
 0x511   : > { %v3130_v53 = vpop.permute.xlu1 %3129  ;;  %v2941_v13 = vpop.permute.xlu0 %2940 }
 0x512   : > { %v8059_v51 = vsel %vm1372_vm2, %v3396_v49, %v3397_v23  ;;  %v8064_v11 = vsel %vm1372_vm2, %v3397_v23, %v8910_v12  ;;  %v8074_v1 = vsel %vm1645_vm3, %v3669_v38, %v8913_v16  ;;  %v8077_v17 = vsel %vm1645_vm3, %v3668_v9, %v3669_v38  ;;  %v9105_v49 = vld [vmem:[#allocation24_spill] sm:$0xff]  ;;  %v9106_v12 = vld [vmem:[#allocation25_spill] sm:$0xff] }
 0x513   : > { %3733 = vrot.lane.b32.xlu1 %v9104_v47, %s5743_s9  ;;  %3459 = vrot.lane.b32.xlu0 %v7836_v2, %s5744_s10  ;;  %v3040_v23 = vadd.f32 %v9105_v49, %v2935_v19  ;;  %v3038_v55 = vadd.f32 %v2931_v20, %v9106_v12  ;;  %v9107_v2 = vld [vmem:[#allocation27_spill] sm:$0xff]  ;;  %v9110_v19 = vrot.slane %v7861_v48, 1 }
 0x514   : > { %v3039_v47 = vadd.f32 %v2933_v46, %v9107_v2 }
 0x515   : > { %v3126_v34 = vpop.permute.xlu1 %3125  ;;  %v2937_v27 = vpop.permute.xlu0 %2936  ;;  %v8086_v63 = vadd.f32 %v3130_v53, %v3040_v23  ;;  %v9111_v23 = vrot.slane %v7861_v48, 2 }
 0x516   : > { %v8088_v16 = vadd.f32 %v3126_v34, %v3038_v55 }
 0x517   : > { %3729 = vrot.lane.b32.xlu0 %v7839_v59, %s5743_s9  ;;  %3457 = vrot.lane.b32.xlu1 %v7847_v31, %s5744_s10  ;;  %v8915_v59 = vrot.slane %v8086_v63, 1  ;;  %v8917_v46 = vrot.slane %v8086_v63, 2 }
 0x518   : > { %9108 = vst [vmem:[#allocation13_spill] sm:$0xff] %v8088_v16  ;;  %v3401_v31 = vrot.slane %v8088_v16, 1  ;;  %v3673_v12 = vrot.slane %v8088_v16, 2 }
 0x519   : > { %v2939_v38 = vpop.permute.xlu1 %2938  ;;  %v3128_v9 = vpop.permute.xlu0 %3127 }
 0x51a   : > { %v8090_v45 = vadd.f32 %v3128_v9, %v3039_v47 }
 0x51b   : > { %3467 = vrot.lane.b32.xlu0 %v9110_v19, %s5744_s10  ;;  %3731 = vrot.lane.b32.xlu1 %v7852_v33, %s5743_s9 }
 0x51c   : > { %9109 = vst [vmem:[#allocation14_spill] sm:$0xff] %v8090_v45  ;;  %v3402_v20 = vrot.slane %v8090_v45, 1  ;;  %v3674_v55 = vrot.slane %v8090_v45, 2 }
 0x51d   : > { %v3136_v53 = vpop.permute.xlu1 %3135  ;;  %v2947_v34 = vpop.permute.xlu0 %2946 }
 0x51e   : > { %v8104_v49 = vsel %vm1372_vm2, %v3401_v31, %v3402_v20  ;;  %v8109_v33 = vsel %vm1372_vm2, %v3402_v20, %v8915_v59  ;;  %v8119_v2 = vsel %vm1645_vm3, %v3674_v55, %v8917_v46  ;;  %v8122_v47 = vsel %vm1645_vm3, %v3673_v12, %v3674_v55  ;;  %v9112_v31 = vld [vmem:[#allocation26_spill] sm:$0xff]  ;;  %v9113_v59 = vld [vmem:[#allocation28_spill] sm:$0xff] }
 0x51f   : > { %3739 = vrot.lane.b32.xlu1 %v9111_v23, %s5743_s9  ;;  %3465 = vrot.lane.b32.xlu0 %v7881_v0, %s5744_s10  ;;  %v3043_v20 = vadd.f32 %v9112_v31, %v2941_v13  ;;  %v3041_v16 = vadd.f32 %v2937_v27, %v9113_v59  ;;  %v3042_v0 = vadd.f32 %v2939_v38, %v7577_v52  ;;  %v9116_v13 = vrot.slane %v7906_v32, 1 }
 0x520   : > { %v9117_v31 = vrot.slane %v7906_v32, 2 }
 0x521   : > { %v3132_v9 = vpop.permute.xlu1 %3131  ;;  %v2943_v19 = vpop.permute.xlu0 %2942  ;;  %v8131_v23 = vadd.f32 %v3136_v53, %v3043_v20 }
 0x522   : > { %v8133_v46 = vadd.f32 %v3132_v9, %v3041_v16 }
 0x523   : > { %3735 = vrot.lane.b32.xlu0 %v7884_v24, %s5743_s9  ;;  %3463 = vrot.lane.b32.xlu1 %v7892_v62, %s5744_s10  ;;  %v8919_v24 = vrot.slane %v8131_v23, 1  ;;  %v8921_v27 = vrot.slane %v8131_v23, 2 }
 0x524   : > { %9114 = vst [vmem:[#allocation18_spill] sm:$0xff] %v8133_v46  ;;  %v3406_v62 = vrot.slane %v8133_v46, 1  ;;  %v3678_v38 = vrot.slane %v8133_v46, 2 }
 0x525   : > { %v2945_v55 = vpop.permute.xlu1 %2944  ;;  %v3134_v12 = vpop.permute.xlu0 %3133 }
 0x526   : > { %v8135_v45 = vadd.f32 %v3134_v12, %v3042_v0  ;;  %v3046_v12 = vadd.f32 %v7584_v42, %v2947_v34  ;;  %v9122_v34 = vrot.slane %v7951_v10, 1 }
 0x527   : > { %3473 = vrot.lane.b32.xlu0 %v9116_v13, %s5744_s10  ;;  %3737 = vrot.lane.b32.xlu1 %v7897_v36, %s5743_s9 }
 0x528   : > { %9115 = vst [vmem:[#allocation20_spill] sm:$0xff] %v8135_v45  ;;  %v3407_v52 = vrot.slane %v8135_v45, 1  ;;  %v3679_v16 = vrot.slane %v8135_v45, 2 }
 0x529   : > { %v3142_v59 = vpop.permute.xlu1 %3141  ;;  %v2953_v53 = vpop.permute.xlu0 %2952 }
 0x52a   : > { %v8149_v9 = vsel %vm1372_vm2, %v3406_v62, %v3407_v52  ;;  %v8154_v36 = vsel %vm1372_vm2, %v3407_v52, %v8919_v24  ;;  %v8164_v20 = vsel %vm1645_vm3, %v3679_v16, %v8921_v27  ;;  %v8167_v0 = vsel %vm1645_vm3, %v3678_v38, %v3679_v16  ;;  %v9118_v52 = vld [vmem:[#allocation29_spill] sm:$0xff] }
 0x52b   : > { %3745 = vrot.lane.b32.xlu1 %v9117_v31, %s5743_s9  ;;  %3469 = vrot.lane.b32.xlu0 %v7924_v40, %s5744_s10  ;;  %v3044_v24 = vadd.f32 %v2943_v19, %v9118_v52  ;;  %v8171_v46 = vadd.f32 %v3142_v59, %v3046_v12  ;;  %v9119_v40 = vld [vmem:[#allocation30_spill] sm:$0xff] }
 0x52c   : > { %v3045_v31 = vadd.f32 %v2945_v55, %v9119_v40 }
 0x52d   : > { %v3138_v13 = vpop.permute.xlu1 %3137  ;;  %v2949_v62 = vpop.permute.xlu0 %2948  ;;  %v8923_v42 = vrot.slane %v8171_v46, 1 }
 0x52e   : > { %v8178_v27 = vadd.f32 %v3138_v13, %v3044_v24 }
 0x52f   : > { %3471 = vrot.lane.b32.xlu1 %v7929_v56, %s5744_s10  ;;  %3741 = vrot.lane.b32.xlu0 %v7937_v30, %s5743_s9  ;;  %v8924_v56 = vrot.slane %v8171_v46, 2 }
 0x530   : > { %9120 = vst [vmem:[#allocation21_spill] sm:$0xff] %v8178_v27  ;;  %v3411_v30 = vrot.slane %v8178_v27, 1  ;;  %v3683_v24 = vrot.slane %v8178_v27, 2  ;;  %v9124_v27 = vld [vmem:[#allocation34_spill] sm:$0xff] }
 0x531   : > { %v2951_v16 = vpop.permute.xlu1 %2950  ;;  %v3140_v38 = vpop.permute.xlu0 %3139 }
 0x532   : > { %v8180_v45 = vadd.f32 %v3140_v38, %v3045_v31  ;;  %v9123_v31 = vrot.slane %v7951_v10, 2 }
 0x533   : > { %3743 = vrot.lane.b32.xlu1 %v7942_v44, %s5743_s9  ;;  %3479 = vrot.lane.b32.xlu0 %v9122_v34, %s5744_s10  ;;  %v8196_v44 = vld [vmem:[%s8789_s2 + $0x1] ss:$0 sm:$0xff] }
 0x534   : > { %9121 = vst [vmem:[#allocation24_spill] sm:$0xff] %v8180_v45  ;;  %v3412_v19 = vrot.slane %v8180_v45, 1  ;;  %v3684_v55 = vrot.slane %v8180_v45, 2  ;;  %v3247_v34 = vadd.f32 %v8196_v44, %v7476_v15  ;;  %v3049_v45 = vadd.f32 %v9124_v27, %v2953_v53 }
 0x535   : > { %v3698_v59 = vpop.permute.xlu1 %3697  ;;  %v3426_v12 = vpop.permute.xlu0 %3425  ;;  %v9126_v15 = vrot.slane %v7996_v35, 1 }
 0x536   : > { %v8199_v13 = vsel %vm1372_vm2, %v3411_v30, %v3412_v19  ;;  %v8204_v52 = vsel %vm1372_vm2, %v3412_v19, %v8923_v42  ;;  %v8209_v40 = vsel %vm1645_vm3, %v3684_v55, %v8924_v56  ;;  %v8217_v38 = vsel %vm1645_vm3, %v3683_v24, %v3684_v55  ;;  %v9127_v24 = vld [vmem:[#allocation5_spill] sm:$0xff] }
 0x537   : > { %3751 = vrot.lane.b32.xlu1 %v9123_v31, %s5743_s9  ;;  %3475 = vrot.lane.b32.xlu0 %v7969_v29, %s5744_s10  ;;  %v3567_v42 = vadd.f32 %v3426_v12, %v3247_v34  ;;  %v9125_v29 = vld [vmem:[#allocation33_spill] sm:$0xff]  ;;  %v3048_v12 = vadd.f32 %v2951_v16, %v9127_v24 }
 0x538   : > { %v3047_v14 = vadd.f32 %v2949_v62, %v9125_v29  ;;  %v9129_v62 = vld [vmem:[#allocation16_spill] sm:$0xff] }
 0x539   : > { %v3148_v30 = vpop.permute.xlu1 %3147  ;;  %v3424_v19 = vpop.permute.xlu0 %3423  ;;  %v3839_v55 = vadd.f32 %v3698_v59, %v3567_v42  ;;  %v3246_v42 = vadd.f32 %v8196_v44, %v9129_v62 }
 0x53b   : > { %3477 = vrot.lane.b32.xlu1 %v7974_v8, %s5744_s10  ;;  %3749 = vrot.lane.b32.xlu0 %v7984_v28, %s5743_s9  ;;  %v9128_v8 = vld [vmem:[#allocation19_spill] sm:$0xff]  ;;  %v8235_v28 = vadd.f32 %v3148_v30, %v3049_v45  ;;  %v3935_v29 = vmul.f32 0.2, %v3839_v55  ;;  %v3566_v45 = vadd.f32 %v3424_v19, %v3246_v42  ;;  %vm3887_vm0 = vcmp.gt.f32.partialorder %v3839_v55, 0.0 }
 0x53c   : > { %v3245_v34 = vadd.f32 %v8196_v44, %v9128_v8  ;;  %v3250_v19 = vadd.f32 %v8196_v44, %v7526_v43 }
 0x53d   : > { %v3144_v56 = vpop.permute.xlu1 %3143  ;;  %v3694_v31 = vpop.permute.xlu0 %3693  ;;  %v8930_v24 = vrot.slane %v8235_v28, 1 }
 0x53e   : > { %v8237_v10 = vadd.f32 %v3144_v56, %v3047_v14  ;;  %v5658_v14 = vld [vmem:[%s8790_s3] sm:$0xff]  }
 0x53f   : > { %3747 = vrot.lane.b32.xlu1 %v7987_v7, %s5743_s9  ;;  %3485 = vrot.lane.b32.xlu0 %v9126_v15, %s5744_s10  ;;  %v9130_v15 = vrot.slane %v7996_v35, 2 }
 0x540   : > { %v3416_v8 = vrot.slane %v8237_v10, 1  ;;  %5491 = vmatprep.subr.bf16.mxu0 %v5658_v14 }
 0x541   : > { %v3422_v27 = vpop.permute.xlu1 %3421  ;;  %v3146_v53 = vpop.permute.xlu0 %3145  ;;  %5492 = vmatpush3.bf16.msra.mxu0 %v5658_v14 }
 0x542   : > { %v3565_v59 = vadd.f32 %v3422_v27, %v3245_v34  ;;  %v8241_v7 = vadd.f32 %v3146_v53, %v3048_v12  ;;  %v8929_v12 = vrot.slane %v8235_v28, 2 }
 0x543   : > { %3757 = vrot.lane.b32.xlu1 %v9130_v15, %s5743_s9  ;;  %3481 = vrot.lane.b32.xlu0 %v8014_v26, %s5744_s10  ;;  %v3688_v26 = vrot.slane %v8237_v10, 2 }
 0x544   : > { %v3837_v16 = vadd.f32 %v3694_v31, %v3565_v59  ;;  %v3417_v56 = vrot.slane %v8241_v7, 1  ;;  %v3689_v30 = vrot.slane %v8241_v7, 2  ;;  %v3983_v59 = vsel %vm3887_vm0, %v3839_v55, %v3935_v29 }
 0x545   : > { %v3696_v34 = vpop.permute.xlu1 %3695  ;;  %v3432_v27 = vpop.permute.xlu0 %3431  ;;  %v9131_v55 = vrot.slane %v8041_v21, 1  ;;  %v4030_v29 = vpack.c.bf16 %v3983_v59, %v3983_v59  ;;  %v9134_v59 = vrot.slane %v8041_v21, 2 }
 0x546   : > { %v3933_v53 = vmul.f32 0.2, %v3837_v16  ;;  %v3838_v62 = vadd.f32 %v3696_v34, %v3566_v45  ;;  %vm3885_vm1 = vcmp.gt.f32.partialorder %v3837_v16, 0.0  ;;  %v8264_v31 = vsel %vm1372_vm2, %v3416_v8, %v3417_v56 }
 0x547   : > { %3483 = vrot.lane.b32.xlu1 %v8019_v50, %s5744_s10  ;;  %3755 = vrot.lane.b32.xlu0 %v8029_v22, %s5743_s9  ;;  %v8269_v42 = vsel %vm1372_vm2, %v3417_v56, %v8930_v24  ;;  %v8274_v43 = vsel %vm1645_vm3, %v3689_v30, %v8929_v12  ;;  %v5659_v50 = vld [vmem:[%s8790_s3 + $0x8] sm:$0xff]   ;;  %v8281_v15 = vsel %vm1645_vm3, %v3688_v26, %v3689_v30  ;;  %v5660_v30 = vld [vmem:[%s8790_s3 + $0x10] sm:$0xff]   ;;  %v9132_v24 = vld [vmem:[#allocation22_spill] sm:$0xff] }
 0x548   : > { %vm3886_vm4 = vcmp.gt.f32.partialorder %v3838_v62, 0.0  ;;  %v3934_v22 = vmul.f32 0.2, %v3838_v62  ;;  %5493 = vmatprep.subr.bf16.mxu0 %v5659_v50  ;;  %v3981_v56 = vsel %vm3885_vm1, %v3837_v16, %v3933_v53  ;;  %v3570_v34 = vadd.f32 %v3432_v27, %v3250_v19  ;;  %v9133_v19 = vld [vmem:[#allocation23_spill] sm:$0xff] }
 0x549   : > { %v3704_v14 = vpop.permute.xlu1 %3703  ;;  %v3430_v45 = vpop.permute.xlu0 %3429  ;;  %5494 = vmatpush3.bf16.msra.mxu0 %v5659_v50  ;;  %v3248_v16 = vadd.f32 %v8196_v44, %v9132_v24  ;;  %v4069_v24 = vshll.u32 %v4030_v29, 16 }
 0x54a   : > { %v3982_v8 = vsel %vm3886_vm4, %v3838_v62, %v3934_v22  ;;  %v3842_v26 = vadd.f32 %v3704_v14, %v3570_v34  ;;  %5495 = vmatprep.subr.bf16.mxu0 %v5660_v30  ;;  %v5661_v14 = vld [vmem:[%s8790_s3 + $0x18] sm:$0xff]  }
 0x54b   : > { %v8283_v12 = vpack.c.bf16 %v3982_v8, %v3981_v56  ;;  %3753 = vrot.lane.b32.xlu1 %v8032_v58, %s5743_s9  ;;  %3491 = vrot.lane.b32.xlu0 %v9131_v55, %s5744_s10  ;;  %v3249_v58 = vadd.f32 %v8196_v44, %v9133_v19 }
 0x54c   : > { %v3938_v56 = vmul.f32 0.2, %v3842_v26  ;;  %vm3890_vm2 = vcmp.gt.f32.partialorder %v3842_v26, 0.0 }
 0x54d   : > { %v4062_v27 = vshrl.u32 %v8283_v12, 16  ;;  %v3428_v53 = vpop.permute.xlu1 %3427  ;;  %v3700_v62 = vpop.permute.xlu0 %3699  ;;  %5496 = vmatpush3.bf16.msra.mxu0 %v5660_v30  ;;  %v3569_v8 = vadd.f32 %v3430_v45, %v3249_v58  ;;  %v5662_v45 = vld [vmem:[%s8790_s3 + $0x20] sm:$0xff]  }
 0x54e   : > { %v3568_v50 = vadd.f32 %v3428_v53, %v3248_v16  ;;  %5497 = vmatprep.subr.bf16.mxu0 %v5661_v14  ;;  %v3986_v29 = vsel %vm3890_vm2, %v3842_v26, %v3938_v56  ;;  %v9136_v56 = vld [vmem:[#allocation32_spill] sm:$0xff] }
 0x54f   : > { %3763 = vrot.lane.b32.xlu1 %v9134_v59, %s5743_s9  ;;  %3487 = vrot.lane.b32.xlu0 %v8059_v51, %s5744_s10  ;;  %v8303_v22 = vrot.slane %v4062_v27, 7 }
 0x550   : > { %v3840_v34 = vadd.f32 %v3700_v62, %v3568_v50  ;;  %v3253_v62 = vadd.f32 %v8196_v44, %v7593_v3  ;;  %v5663_v3 = vld [vmem:[%s8790_s3 + $0x28] sm:$0xff]  }
 0x551   : > { %v3702_v55 = vpop.permute.xlu1 %3701  ;;  %v3438_v30 = vpop.permute.xlu0 %3437  ;;  %v8310_v16 = vsel %vm2094_vm7, %v8303_v22, %v4069_v24  ;;  %5498 = vmatpush3.bf16.msra.mxu0 %v5661_v14 }
 0x552   : > { %v3936_v53 = vmul.f32 0.2, %v3840_v34  ;;  %v3841_v51 = vadd.f32 %v3702_v55, %v3569_v8  ;;  %vm3888_vm3 = vcmp.gt.f32.partialorder %v3840_v34, 0.0  ;;  %5499 = vmatprep.subr.bf16.mxu0 %v5662_v45  ;;  %v3573_v24 = vadd.f32 %v3438_v30, %v3253_v62  ;;  %v5664_v62 = vld [vmem:[%s8790_s3 + $0x30] sm:$0xff]  }
 0x553   : > { %3489 = vrot.lane.b32.xlu1 %v8064_v11, %s5744_s10  ;;  %3761 = vrot.lane.b32.xlu0 %v8074_v1, %s5743_s9  ;;  %v4032_v11 = vpack.c.bf16 %v3986_v29, %v3986_v29  ;;  %v9135_v1 = vrot.slane %v8086_v63, 1  ;;  %v3251_v8 = vadd.f32 %v8196_v44, %v9136_v56  ;;  %v9138_v29 = vrot.slane %v8086_v63, 2 }
 0x554   : > { %vm3889_vm5 = vcmp.gt.f32.partialorder %v3841_v51, 0.0  ;;  %v3937_v27 = vmul.f32 0.2, %v3841_v51  ;;  %v3984_v50 = vsel %vm3888_vm3, %v3840_v34, %v3936_v53  ;;  %v9137_v53 = vld [vmem:[#allocation31_spill] sm:$0xff] }
 0x555   : > { %v3710_v19 = vpop.permute.xlu1 %3709  ;;  %v3436_v58 = vpop.permute.xlu0 %3435  ;;  %5500 = vmatpush3.bf16.msra.mxu0 %v5662_v45  ;;  %v4080_v45 = vshll.u32 %v4032_v11, 16 }
 0x556   : > { %v3985_v59 = vsel %vm3889_vm5, %v3841_v51, %v3937_v27  ;;  %v3845_v26 = vadd.f32 %v3710_v19, %v3573_v24  ;;  %5501 = vmatprep.subr.bf16.mxu0 %v5663_v3 }
 0x557   : > { %v8321_v14 = vpack.c.bf16 %v3985_v59, %v3984_v50  ;;  %3759 = vrot.lane.b32.xlu1 %v8077_v17, %s5743_s9  ;;  %3497 = vrot.lane.b32.xlu0 %v9135_v1, %s5744_s10  ;;  %v3252_v17 = vadd.f32 %v8196_v44, %v9137_v53 }
 0x558   : > { %v3941_v19 = vmul.f32 0.2, %v3845_v26  ;;  %vm3893_vm6 = vcmp.gt.f32.partialorder %v3845_v26, 0.0 }
 0x559   : > { %v4073_v34 = vshrl.u32 %v8321_v14, 16  ;;  %v3434_v55 = vpop.permute.xlu1 %3433  ;;  %v3706_v30 = vpop.permute.xlu0 %3705  ;;  %5502 = vmatpush3.bf16.msra.mxu0 %v5663_v3  ;;  %v3572_v50 = vadd.f32 %v3436_v58, %v3252_v17 }
 0x55a   : > { %v3571_v51 = vadd.f32 %v3434_v55, %v3251_v8  ;;  %5503 = vmatprep.subr.bf16.mxu0 %v5664_v62  ;;  %v3989_v58 = vsel %vm3893_vm6, %v3845_v26, %v3941_v19 }
 0x55b   : > { %3769 = vrot.lane.b32.xlu1 %v9138_v29, %s5743_s9  ;;  %3493 = vrot.lane.b32.xlu0 %v8104_v49, %s5744_s10  ;;  %v8341_v27 = vrot.slane %v4073_v34, 7  ;;  %v5665_v49 = vld [vmem:[%s8790_s3 + $0x38] sm:$0xff]   ;;  %v3256_v34 = vadd.f32 %v8196_v44, %v7666_v18  ;;  %v9139_v29 = vld [vmem:[#allocation3_spill] sm:$0xff] }
 0x55c   : > { %v3843_v59 = vadd.f32 %v3706_v30, %v3571_v51  ;;  %v3254_v18 = vadd.f32 %v8196_v44, %v9139_v29 }
 0x55d   : > { %v3708_v24 = vpop.permute.xlu1 %3707  ;;  %v3444_v1 = vpop.permute.xlu0 %3443  ;;  %v8348_v11 = vsel %vm2094_vm7, %v8341_v27, %v4080_v45  ;;  %5504 = vmatpush3.bf16.msra.mxu0 %v5664_v62  ;;  %v4368_v62 = vld [vmem:[#allocation2 + $0x8] sm:$0xff] }
 0x55e   : > { %v3939_v3 = vmul.f32 0.2, %v3843_v59  ;;  %v3844_v56 = vadd.f32 %v3708_v24, %v3572_v50  ;;  %vm3891_vm8 = vcmp.gt.f32.partialorder %v3843_v59, 0.0  ;;  %5505 = vmatprep.subr.bf16.mxu0 %v5665_v49  ;;  %v3576_v51 = vadd.f32 %v3444_v1, %v3256_v34  ;;  %v9140_v24 = vld [vmem:[#allocation6_spill] sm:$0xff] }
 0x55f   : > { %3495 = vrot.lane.b32.xlu1 %v8109_v33, %s5744_s10  ;;  %3767 = vrot.lane.b32.xlu0 %v8119_v2, %s5743_s9  ;;  %v4034_v33 = vpack.c.bf16 %v3989_v58, %v3989_v58  ;;  %v4367_v2 = vld [vmem:[#allocation2] sm:$0xff]  ;;  %v3255_v1 = vadd.f32 %v8196_v44, %v9140_v24 }
 0x560   : > { %vm3892_vm9 = vcmp.gt.f32.partialorder %v3844_v56, 0.0  ;;  %v3940_v8 = vmul.f32 0.2, %v3844_v56  ;;  %v3987_v53 = vsel %vm3891_vm8, %v3843_v59, %v3939_v3  ;;  %5507 = vmatprep.mubr.bf16.mxu0 %v4367_v2 }
 0x561   : > { %v3716_v55 = vpop.permute.xlu1 %3715  ;;  %v3442_v30 = vpop.permute.xlu0 %3441  ;;  %5506 = vmatpush3.bf16.msra.mxu0 %v5665_v49 }
 0x562   : > { %v3988_v17 = vsel %vm3892_vm9, %v3844_v56, %v3940_v8  ;;  %v3848_v26 = vadd.f32 %v3716_v55, %v3576_v51  ;;  %v4091_v56 = vshll.u32 %v4034_v33, 16  ;;  %v3575_v58 = vadd.f32 %v3442_v30, %v3255_v1 }
 0x563   : > { %v8359_v45 = vpack.c.bf16 %v3988_v17, %v3987_v53  ;;  %3765 = vrot.lane.b32.xlu1 %v8122_v47, %s5743_s9  ;;  %3499 = vrot.lane.b32.xlu0 %v8149_v9, %s5744_s10  ;;  %v4065_v47 = vshll.u32 %v8283_v12, 16  ;;  %v3259_v30 = vadd.f32 %v8196_v44, %v7715_v4 }
 0x564   : > { %5508 = vmatmul.mubr.bf16.vlgmr.msra.gmra.mrb[36].mxu0 %v4368_v62  ;;  %v3944_v49 = vmul.f32 0.2, %v3848_v26  ;;  %vm3896_vm10 = vcmp.gt.f32.partialorder %v3848_v26, 0.0  ;;  %v4076_v62 = vshll.u32 %v8321_v14, 16 }
 0x565   : > { %v4084_v19 = vshrl.u32 %v8359_v45, 16  ;;  %v3440_v50 = vpop.permute.xlu1 %3439  ;;  %v3712_v59 = vpop.permute.xlu0 %3711  ;;  %v4067_v53 = vor.u32 %v4065_v47, %v8303_v22 }
 0x566   : > { %v3574_v3 = vadd.f32 %v3440_v50, %v3254_v18  ;;  %v4078_v47 = vor.u32 %v4076_v62, %v8341_v27 }
 0x567   : > { %3501 = vrot.lane.b32.xlu1 %v8154_v36, %s5744_s10  ;;  %3773 = vrot.lane.b32.xlu0 %v8164_v20, %s5743_s9  ;;  %v4086_v9 = vrot.slane %v4084_v19, 7  ;;  %v3992_v36 = vsel %vm3896_vm10, %v3848_v26, %v3944_v49 }
 0x568   : > { %v3846_v8 = vadd.f32 %v3712_v59, %v3574_v3  ;;  %v4036_v19 = vpack.c.bf16 %v3992_v36, %v3992_v36  ;;  %v9142_v59 = vld [vmem:[#allocation4_spill] sm:$0xff] }
 0x569   : > { %v3714_v34 = vpop.permute.xlu1 %3713  ;;  %v3450_v55 = vpop.permute.xlu0 %3449  ;;  %v8377_v17 = vsel %vm2094_vm7, %v4086_v9, %v4091_v56  ;;  %v3257_v4 = vadd.f32 %v8196_v44, %v9142_v59  ;;  %v9143_v56 = vld [vmem:[#allocation7_spill] sm:$0xff] }
 0x56a   : > { %v3942_v12 = vmul.f32 0.2, %v3846_v8  ;;  %v3847_v51 = vadd.f32 %v3714_v34, %v3575_v58  ;;  %vm3894_vm11 = vcmp.gt.f32.partialorder %v3846_v8, 0.0  ;;  %v3579_v18 = vadd.f32 %v3450_v55, %v3259_v30 }
 0x56b   : > { %3771 = vrot.lane.b32.xlu1 %v8167_v0, %s5743_s9  ;;  %4237 = vrot.lane.b32.xlu0 %v4067_v53, %s5746_s18  ;;  %v9141_v0 = vrot.slane %v8131_v23, 1  ;;  %v3258_v14 = vadd.f32 %v8196_v44, %v9143_v56  ;;  %v4102_v58 = vshll.u32 %v4036_v19, 16  ;;  %v4087_v30 = vshll.u32 %v8359_v45, 16 }
 0x56c   : > { %vm3895_vm12 = vcmp.gt.f32.partialorder %v3847_v51, 0.0  ;;  %v3943_v20 = vmul.f32 0.2, %v3847_v51  ;;  %v3990_v2 = vsel %vm3894_vm11, %v3846_v8, %v3942_v12 }
 0x56d   : > { %v3722_v33 = vpop.permute.xlu1 %3721  ;;  %v3448_v22 = vpop.permute.xlu0 %3447  ;;  %v4089_v62 = vor.u32 %v4087_v30, %v4086_v9  ;;  %v3261_v9 = vadd.f32 %v8196_v44, %v7777_v61 }
 0x56e   : > { %v3991_v29 = vsel %vm3895_vm12, %v3847_v51, %v3943_v20  ;;  %v3851_v26 = vadd.f32 %v3722_v33, %v3579_v18  ;;  %v3578_v55 = vadd.f32 %v3448_v22, %v3258_v14 }
 0x56f   : > { %v4035_v50 = vpack.c.bf16 %v3991_v29, %v3990_v2  ;;  %4239 = vrot.lane.b32.xlu1 %v8310_v16, %s5746_s18  ;;  %3503 = vrot.lane.b32.xlu0 %v9141_v0, %s5744_s10  ;;  %v9144_v16 = vrot.slane %v8131_v23, 2  ;;  %v3262_v2 = vadd.f32 %v8196_v44, %v7773_v60 }
 0x570   : > { %v3947_v34 = vmul.f32 0.2, %v3851_v26  ;;  %vm3899_vm13 = vcmp.gt.f32.partialorder %v3851_v26, 0.0 }
 0x571   : > { %v4095_v24 = vshrl.u32 %v4035_v50, 16  ;;  %v3446_v1 = vpop.permute.xlu1 %3445  ;;  %v3718_v3 = vpop.permute.xlu0 %3717 }
 0x572   : > { %v3577_v49 = vadd.f32 %v3446_v1, %v3257_v4  ;;  %v3995_v33 = vsel %vm3899_vm13, %v3851_v26, %v3947_v34 }
 0x573   : > { %3775 = vrot.lane.b32.xlu1 %v9144_v16, %s5743_s9  ;;  %4241 = vrot.lane.b32.xlu0 %v4078_v47, %s5746_s18  ;;  %v4097_v8 = vrot.slane %v4095_v24, 7  ;;  %v4038_v45 = vpack.c.bf16 %v3995_v33, %v3995_v33 }
 0x574   : > { %v3849_v53 = vadd.f32 %v3718_v3, %v3577_v49  ;;  %v4098_v3 = vshll.u32 %v4035_v50, 16  ;;  %v3265_v50 = vadd.f32 %v8196_v44, %v7816_v39 }
 0x575   : > { %v3720_v12 = vpop.permute.xlu1 %3719  ;;  %v3456_v51 = vpop.permute.xlu0 %3455  ;;  %v4104_v27 = vsel %vm2094_vm7, %v4097_v8, %v4102_v58  ;;  %v4113_v47 = vshll.u32 %v4038_v45, 16 }
 0x576   : > { %v3945_v36 = vmul.f32 0.2, %v3849_v53  ;;  %v3850_v20 = vadd.f32 %v3720_v12, %v3578_v55  ;;  %vm3897_vm14 = vcmp.gt.f32.partialorder %v3849_v53, 0.0  ;;  %v3582_v59 = vadd.f32 %v3456_v51, %v3262_v2 }
 0x577   : > { %4243 = vrot.lane.b32.xlu1 %v8348_v11, %s5746_s18  ;;  %3505 = vrot.lane.b32.xlu0 %v8199_v13, %s5744_s10  ;;  %v3260_v11 = vadd.f32 %v8196_v44, %v7775_v5  ;;  %v4100_v16 = vor.u32 %v4098_v3, %v4097_v8  ;;  %v3263_v2 = vadd.f32 %v8196_v44, %v7818_v41 }
 0x578   : > { %vm3898_vm15 = vcmp.gt.f32.partialorder %v3850_v20, 0.0  ;;  %v3946_v22 = vmul.f32 0.2, %v3850_v20  ;;  %v3993_v19 = vsel %vm3897_vm14, %v3849_v53, %v3945_v36 }
 0x579   : > { %v3728_v29 = vpop.permute.xlu1 %3727  ;;  %v3454_v18 = vpop.permute.xlu0 %3453 }
 0x57a   : > { %v3994_v0 = vsel %vm3898_vm15, %v3850_v20, %v3946_v22  ;;  %v3854_v13 = vadd.f32 %v3728_v29, %v3582_v59  ;;  %v3581_v14 = vadd.f32 %v3454_v18, %v3261_v9 }
 0x57b   : > { %v4037_v4 = vpack.c.bf16 %v3994_v0, %v3993_v19  ;;  %3507 = vrot.lane.b32.xlu1 %v8204_v52, %s5744_s10  ;;  %4245 = vrot.lane.b32.xlu0 %v4089_v62, %s5746_s18  ;;  %v3264_v19 = vadd.f32 %v8196_v44, %v7820_v57 }
 0x57c   : > { %v3950_v56 = vmul.f32 0.2, %v3854_v13  ;;  %vm3902_vm0 = vcmp.gt.f32.partialorder %v3854_v13, 0.0 }
 0x57d   : > { %v4106_v26 = vshrl.u32 %v4037_v4, 16  ;;  %v3452_v24 = vpop.permute.xlu1 %3451  ;;  %v3724_v60 = vpop.permute.xlu0 %3723  ;;  %v4109_v20 = vshll.u32 %v4037_v4, 16 }
 0x57e   : > { %v3580_v1 = vadd.f32 %v3452_v24, %v3260_v11 }
 0x57f   : > { %4247 = vrot.lane.b32.xlu1 %v8377_v17, %s5746_s18  ;;  %3779 = vrot.lane.b32.xlu0 %v8209_v40, %s5743_s9  ;;  %v4108_v52 = vrot.slane %v4106_v26, 7  ;;  %v3998_v17 = vsel %vm3902_vm0, %v3854_v13, %v3950_v56 }
 0x580   : > { %v3852_v49 = vadd.f32 %v3724_v60, %v3580_v1  ;;  %v4040_v30 = vpack.c.bf16 %v3998_v17, %v3998_v17 }
 0x581   : > { %v3726_v5 = vpop.permute.xlu1 %3725  ;;  %v3462_v58 = vpop.permute.xlu0 %3461  ;;  %v4115_v34 = vsel %vm2094_vm7, %v4108_v52, %v4113_v47  ;;  %v4111_v62 = vor.u32 %v4109_v20, %v4108_v52  ;;  %v3268_v47 = vadd.f32 %v8196_v44, %v7861_v48 }
 0x582   : > { %v3948_v61 = vmul.f32 0.2, %v3852_v49  ;;  %v3853_v55 = vadd.f32 %v3726_v5, %v3581_v14  ;;  %vm3900_vm1 = vcmp.gt.f32.partialorder %v3852_v49, 0.0  ;;  %v3585_v36 = vadd.f32 %v3462_v58, %v3265_v50 }
 0x583   : > { %3777 = vrot.lane.b32.xlu1 %v8217_v38, %s5743_s9  ;;  %4249 = vrot.lane.b32.xlu0 %v4100_v16, %s5746_s18  ;;  %v9145_v38 = vrot.slane %v8171_v46, 1  ;;  %v4124_v59 = vshll.u32 %v4040_v30, 16 }
 0x584   : > { %vm3901_vm4 = vcmp.gt.f32.partialorder %v3853_v55, 0.0  ;;  %v3949_v40 = vmul.f32 0.2, %v3853_v55  ;;  %v3996_v51 = vsel %vm3900_vm1, %v3852_v49, %v3948_v61 }
 0x585   : > { %v3734_v53 = vpop.permute.xlu1 %3733  ;;  %v3460_v12 = vpop.permute.xlu0 %3459 }
 0x586   : > { %v3997_v8 = vsel %vm3901_vm4, %v3853_v55, %v3949_v40  ;;  %v3857_v22 = vadd.f32 %v3734_v53, %v3585_v36  ;;  %v3584_v13 = vadd.f32 %v3460_v12, %v3264_v19  ;;  %v3267_v40 = vadd.f32 %v8196_v44, %v7865_v37 }
 0x587   : > { %v4039_v33 = vpack.c.bf16 %v3997_v8, %v3996_v51  ;;  %4251 = vrot.lane.b32.xlu1 %v4104_v27, %s5746_s18  ;;  %3509 = vrot.lane.b32.xlu0 %v9145_v38, %s5744_s10  ;;  %v9146_v27 = vrot.slane %v8171_v46, 2 }
 0x588   : > { %v3953_v4 = vmul.f32 0.2, %v3857_v22  ;;  %vm3905_vm2 = vcmp.gt.f32.partialorder %v3857_v22, 0.0 }
 0x589   : > { %v4117_v29 = vshrl.u32 %v4039_v33, 16  ;;  %v3458_v39 = vpop.permute.xlu1 %3457  ;;  %v3730_v18 = vpop.permute.xlu0 %3729  ;;  %v4120_v57 = vshll.u32 %v4039_v33, 16 }
 0x58a   : > { %v3583_v0 = vadd.f32 %v3458_v39, %v3263_v2  ;;  %v4001_v1 = vsel %vm3905_vm2, %v3857_v22, %v3953_v4  ;;  %v3271_v2 = vadd.f32 %v8196_v44, %v7906_v32 }
 0x58b   : > { %v4119_v45 = vrot.slane %v4117_v29, 7  ;;  %3781 = vrot.lane.b32.xlu1 %v9146_v27, %s5743_s9  ;;  %4253 = vrot.lane.b32.xlu0 %v4111_v62, %s5746_s18  ;;  %v4042_v16 = vpack.c.bf16 %v4001_v1, %v4001_v1 }
 0x58c   : > { %v3855_v11 = vadd.f32 %v3730_v18, %v3583_v0  ;;  %v3269_v0 = vadd.f32 %v8196_v44, %v7908_v25  ;;  %v9148_v25 = vrot.slane %v8235_v28, 2 }
 0x58d   : > { %v3732_v41 = vpop.permute.xlu1 %3731  ;;  %v3468_v26 = vpop.permute.xlu0 %3467  ;;  %v4126_v24 = vsel %vm2094_vm7, %v4119_v45, %v4124_v59  ;;  %v4122_v14 = vor.u32 %v4120_v57, %v4119_v45  ;;  %v4135_v53 = vshll.u32 %v4042_v16, 16 }
 0x58e   : > { %v3951_v60 = vmul.f32 0.2, %v3855_v11  ;;  %v3856_v9 = vadd.f32 %v3732_v41, %v3584_v13  ;;  %vm3903_vm3 = vcmp.gt.f32.partialorder %v3855_v11, 0.0  ;;  %v3588_v58 = vadd.f32 %v3468_v26, %v3268_v47 }
 0x58f   : > { %4255 = vrot.lane.b32.xlu1 %v4115_v34, %s5746_s18  ;;  %3511 = vrot.lane.b32.xlu0 %v8264_v31, %s5744_s10  ;;  %v3266_v34 = vadd.f32 %v8196_v44, %v7863_v54  ;;  %v3270_v41 = vadd.f32 %v8196_v44, %v7910_v6 }
 0x590   : > { %vm3904_vm5 = vcmp.gt.f32.partialorder %v3856_v9, 0.0  ;;  %v3952_v3 = vmul.f32 0.2, %v3856_v9  ;;  %v3999_v49 = vsel %vm3903_vm3, %v3855_v11, %v3951_v60 }
 0x591   : > { %v3740_v52 = vpop.permute.xlu1 %3739  ;;  %v3466_v56 = vpop.permute.xlu0 %3465 }
 0x592   : > { %v4000_v5 = vsel %vm3904_vm5, %v3856_v9, %v3952_v3  ;;  %v3860_v31 = vadd.f32 %v3740_v52, %v3588_v58  ;;  %v3587_v8 = vadd.f32 %v3466_v56, %v3267_v40  ;;  %v9149_v58 = vld [vmem:[#allocation8_spill] sm:$0xff] }
 0x593   : > { %v4041_v61 = vpack.c.bf16 %v4000_v5, %v3999_v49  ;;  %3513 = vrot.lane.b32.xlu1 %v8269_v42, %s5744_s10  ;;  %4257 = vrot.lane.b32.xlu0 %v4122_v14, %s5746_s18  ;;  %v3274_v16 = vadd.f32 %v8196_v44, %v9149_v58 }
 0x594   : > { %v3956_v42 = vmul.f32 0.2, %v3860_v31  ;;  %vm3908_vm6 = vcmp.gt.f32.partialorder %v3860_v31, 0.0 }
 0x595   : > { %v4128_v55 = vshrl.u32 %v4041_v61, 16  ;;  %v3464_v17 = vpop.permute.xlu1 %3463  ;;  %v3736_v48 = vpop.permute.xlu0 %3735  ;;  %v4131_v51 = vshll.u32 %v4041_v61, 16 }
 0x596   : > { %v3586_v50 = vadd.f32 %v3464_v17, %v3266_v34  ;;  %v4004_v22 = vsel %vm3908_vm6, %v3860_v31, %v3956_v42 }
 0x597   : > { %v4130_v12 = vrot.slane %v4128_v55, 7  ;;  %4259 = vrot.lane.b32.xlu1 %v4126_v24, %s5746_s18  ;;  %3785 = vrot.lane.b32.xlu0 %v8274_v43, %s5743_s9  ;;  %v4044_v59 = vpack.c.bf16 %v4004_v22, %v4004_v22 }
 0x598   : > { %v3858_v36 = vadd.f32 %v3736_v48, %v3586_v50 }
 0x599   : > { %v3738_v54 = vpop.permute.xlu1 %3737  ;;  %v3474_v20 = vpop.permute.xlu0 %3473  ;;  %v4133_v30 = vor.u32 %v4131_v51, %v4130_v12  ;;  %v4137_v33 = vsel %vm2094_vm7, %v4130_v12, %v4135_v53  ;;  %v4146_v24 = vshll.u32 %v4044_v59, 16  ;;  %v9150_v53 = vld [vmem:[#allocation12_spill] sm:$0xff] }
 0x59a   : > { %v3954_v38 = vmul.f32 0.2, %v3858_v36  ;;  %v3859_v37 = vadd.f32 %v3738_v54, %v3587_v8  ;;  %vm3906_vm8 = vcmp.gt.f32.partialorder %v3858_v36, 0.0  ;;  %v3591_v19 = vadd.f32 %v3474_v20, %v3271_v2 }
 0x59b   : > { %3783 = vrot.lane.b32.xlu1 %v8281_v15, %s5743_s9  ;;  %4261 = vrot.lane.b32.xlu0 %v4133_v30, %s5746_s18  ;;  %v9147_v15 = vrot.slane %v8235_v28, 1  ;;  %v3273_v12 = vadd.f32 %v8196_v44, %v9150_v53 }
 0x59c   : > { %vm3907_vm9 = vcmp.gt.f32.partialorder %v3859_v37, 0.0  ;;  %v3955_v43 = vmul.f32 0.2, %v3859_v37  ;;  %v4002_v18 = vsel %vm3906_vm8, %v3858_v36, %v3954_v38  ;;  %v9151_v36 = vld [vmem:[#allocation10_spill] sm:$0xff] }
 0x59d   : > { %v3746_v29 = vpop.permute.xlu1 %3745  ;;  %v3470_v39 = vpop.permute.xlu0 %3469  ;;  %v3272_v54 = vadd.f32 %v8196_v44, %v9151_v36 }
 0x59e   : > { %v4003_v62 = vsel %vm3907_vm9, %v3859_v37, %v3955_v43  ;;  %v3863_v27 = vadd.f32 %v3746_v29, %v3591_v19  ;;  %v3589_v4 = vadd.f32 %v3470_v39, %v3269_v0 }
 0x59f   : > { %v4043_v45 = vpack.c.bf16 %v4003_v62, %v4002_v18  ;;  %4263 = vrot.lane.b32.xlu1 %v4137_v33, %s5746_s18  ;;  %3515 = vrot.lane.b32.xlu0 %v9147_v15, %s5744_s10 }
 0x5a0   : > { %v3959_v57 = vmul.f32 0.2, %v3863_v27  ;;  %vm3911_vm10 = vcmp.gt.f32.partialorder %v3863_v27, 0.0 }
 0x5a1   : > { %v4139_v13 = vshrl.u32 %v4043_v45, 16  ;;  %v3472_v32 = vpop.permute.xlu1 %3471  ;;  %v3742_v11 = vpop.permute.xlu0 %3741  ;;  %v4142_v60 = vshll.u32 %v4043_v45, 16  ;;  %v3277_v45 = vadd.f32 %v8196_v44, %v7996_v35 }
 0x5a2   : > { %v3861_v26 = vadd.f32 %v3742_v11, %v3589_v4  ;;  %v3590_v1 = vadd.f32 %v3472_v32, %v3270_v41  ;;  %v4007_v6 = vsel %vm3911_vm10, %v3863_v27, %v3959_v57  ;;  %vm4333_vm10 = vcmask 97345  }
 0x5a3   : > { %3787 = vrot.lane.b32.xlu1 %v9148_v25, %s5743_s9  ;;  %v4141_v9 = vrot.slane %v4139_v13, 7  ;;  %v4046_v48 = vpack.c.bf16 %v4007_v6, %v4007_v6 }
 0x5a4   : > { %v3957_v14 = vmul.f32 0.2, %v3861_v26  ;;  %vm3909_vm11 = vcmp.gt.f32.partialorder %v3861_v26, 0.0 }
 0x5a5   : > { %v3744_v3 = vpop.permute.xlu1 %3743  ;;  %v3480_v47 = vpop.permute.xlu0 %3479  ;;  %v4148_v52 = vsel %vm2094_vm7, %v4141_v9, %v4146_v24  ;;  %v4144_v56 = vor.u32 %v4142_v60, %v4141_v9  ;;  %v4157_v30 = vshll.u32 %v4046_v48, 16  ;;  %v9152_v24 = vld [vmem:[#allocation9_spill] sm:$0xff]  ;;  %v3280_v48 = vadd.f32 %v8196_v44, %v8041_v21 }
 0x5a6   : > { %v3862_v49 = vadd.f32 %v3744_v3, %v3590_v1  ;;  %v4005_v34 = vsel %vm3909_vm11, %v3861_v26, %v3957_v14  ;;  %v3594_v17 = vadd.f32 %v3480_v47, %v3274_v16  ;;  %v3276_v60 = vadd.f32 %v8196_v44, %v9152_v24  ;;  %v9153_v1 = vld [vmem:[#allocation17_spill] sm:$0xff] }
 0x5a7   : > { %4267 = vrot.lane.b32.xlu1 %v4148_v52, %s5746_s18  ;;  %4265 = vrot.lane.b32.xlu0 %v4144_v56, %s5746_s18  ;;  %v3275_v3 = vadd.f32 %v8196_v44, %v9153_v1  ;;  %v9156_v1 = vld [vmem:[#allocation14_spill] sm:$0xff]  ;;  %vm4335_vm11 = vcmask 90176  }
 0x5a8   : > { %vm3910_vm12 = vcmp.gt.f32.partialorder %v3862_v49, 0.0  ;;  %v3958_v5 = vmul.f32 0.2, %v3862_v49 }
 0x5a9   : > { %v3752_v61 = vpop.permute.xlu1 %3751  ;;  %v3476_v31 = vpop.permute.xlu0 %3475 }
 0x5aa   : > { %v4006_v55 = vsel %vm3910_vm12, %v3862_v49, %v3958_v5  ;;  %v3866_v50 = vadd.f32 %v3752_v61, %v3594_v17  ;;  %v3592_v22 = vadd.f32 %v3476_v31, %v3272_v54  ;;  %v9154_v54 = vld [vmem:[#allocation15_spill] sm:$0xff] }
 0x5ab   : > { %v4045_v40 = vpack.c.bf16 %v4006_v55, %v4005_v34 }
 0x5ac   : > { %v3962_v37 = vmul.f32 0.2, %v3866_v50  ;;  %vm3914_vm13 = vcmp.gt.f32.partialorder %v3866_v50, 0.0 }
 0x5ad   : > { %v4150_v51 = vshrl.u32 %v4045_v40, 16  ;;  %v3478_v42 = vpop.permute.xlu1 %3477  ;;  %v3750_v8 = vpop.permute.xlu0 %3749  ;;  %v4153_v33 = vshll.u32 %v4045_v40, 16 }
 0x5ae   : > { %v3593_v20 = vadd.f32 %v3478_v42, %v3273_v12  ;;  %v4010_v0 = vsel %vm3914_vm13, %v3866_v50, %v3962_v37  ;;  %v9155_v37 = vld [vmem:[#allocation11_spill] sm:$0xff] }
 0x5af   : > { %v4152_v38 = vrot.slane %v4150_v51, 7  ;;  %v4048_v11 = vpack.c.bf16 %v4010_v0, %v4010_v0 }
 0x5b0   : > { %v3865_v43 = vadd.f32 %v3750_v8, %v3593_v20  ;;  %v3279_v20 = vadd.f32 %v8196_v44, %v9154_v54 }
 0x5b1   : > { %v3748_v2 = vpop.permute.xlu1 %3747  ;;  %v3486_v29 = vpop.permute.xlu0 %3485  ;;  %v4159_v39 = vsel %vm2094_vm7, %v4152_v38, %v4157_v30  ;;  %v4155_v18 = vor.u32 %v4153_v33, %v4152_v38  ;;  %v4168_v52 = vshll.u32 %v4048_v11, 16 }
 0x5b2   : > { %v3961_v62 = vmul.f32 0.2, %v3865_v43  ;;  %v3864_v19 = vadd.f32 %v3748_v2, %v3592_v22  ;;  %4271 = vrot.lane.b32.xlu1 %v4159_v39, %s5746_s18  ;;  %vm3913_vm14 = vcmp.gt.f32.partialorder %v3865_v43, 0.0  ;;  %v3597_v32 = vadd.f32 %v3486_v29, %v3277_v45 }
 0x5b3   : > { %4269 = vrot.lane.b32.xlu0 %v4155_v18, %s5746_s18  ;;  %v3278_v22 = vadd.f32 %v8196_v44, %v9155_v37 }
 0x5b4   : > { %vm3912_vm15 = vcmp.gt.f32.partialorder %v3864_v19, 0.0  ;;  %v3960_v59 = vmul.f32 0.2, %v3864_v19  ;;  %v4009_v4 = vsel %vm3913_vm14, %v3865_v43, %v3961_v62 }
 0x5b5   : > { %v3758_v15 = vpop.permute.xlu1 %3757  ;;  %v3482_v27 = vpop.permute.xlu0 %3481 }
 0x5b6   : > { %v4008_v13 = vsel %vm3912_vm15, %v3864_v19, %v3960_v59  ;;  %v3869_v26 = vadd.f32 %v3758_v15, %v3597_v32  ;;  %v3595_v49 = vadd.f32 %v3482_v27, %v3275_v3  ;;  %v3283_v32 = vadd.f32 %v8196_v44, %v8086_v63 }
 0x5b7   : > { %v4047_v41 = vpack.c.bf16 %v4009_v4, %v4008_v13  ;;  %v3282_v3 = vadd.f32 %v8196_v44, %v9156_v1 }
 0x5b8   : > { %v3965_v14 = vmul.f32 0.2, %v3869_v26  ;;  %vm3917_vm0 = vcmp.gt.f32.partialorder %v3869_v26, 0.0 }
 0x5b9   : > { %v4161_v25 = vshrl.u32 %v4047_v41, 16  ;;  %v3484_v9 = vpop.permute.xlu1 %3483  ;;  %v3756_v57 = vpop.permute.xlu0 %3755  ;;  %v4164_v35 = vshll.u32 %v4047_v41, 16 }
 0x5ba   : > { %v3596_v47 = vadd.f32 %v3484_v9, %v3276_v60  ;;  %v4013_v55 = vsel %vm3917_vm0, %v3869_v26, %v3965_v14 }
 0x5bb   : > { %v4163_v56 = vrot.slane %v4161_v25, 7  ;;  %v4050_v42 = vpack.c.bf16 %v4013_v55, %v4013_v55 }
 0x5bc   : > { %v3868_v6 = vadd.f32 %v3756_v57, %v3596_v47 }
 0x5bd   : > { %v3754_v5 = vpop.permute.xlu1 %3753  ;;  %v3492_v58 = vpop.permute.xlu0 %3491  ;;  %v4170_v16 = vsel %vm2094_vm7, %v4163_v56, %v4168_v52  ;;  %v4166_v61 = vor.u32 %v4164_v35, %v4163_v56  ;;  %v4179_v2 = vshll.u32 %v4050_v42, 16  ;;  %v9157_v56 = vld [vmem:[#allocation13_spill] sm:$0xff] }
 0x5be   : > { %v3964_v31 = vmul.f32 0.2, %v3868_v6  ;;  %v3867_v34 = vadd.f32 %v3754_v5, %v3595_v49  ;;  %4275 = vrot.lane.b32.xlu1 %v4170_v16, %s5746_s18  ;;  %vm3916_vm1 = vcmp.gt.f32.partialorder %v3868_v6, 0.0  ;;  %v3600_v51 = vadd.f32 %v3492_v58, %v3280_v48 }
 0x5bf   : > { %4273 = vrot.lane.b32.xlu0 %v4166_v61, %s5746_s18  ;;  %v3281_v14 = vadd.f32 %v8196_v44, %v9157_v56 }
 0x5c0   : > { %vm3915_vm4 = vcmp.gt.f32.partialorder %v3867_v34, 0.0  ;;  %v3963_v17 = vmul.f32 0.2, %v3867_v34  ;;  %v4012_v53 = vsel %vm3916_vm1, %v3868_v6, %v3964_v31 }
 0x5c1   : > { %v3764_v40 = vpop.permute.xlu1 %3763  ;;  %v3488_v50 = vpop.permute.xlu0 %3487 }
 0x5c2   : > { %v4011_v12 = vsel %vm3915_vm4, %v3867_v34, %v3963_v17  ;;  %v3872_v36 = vadd.f32 %v3764_v40, %v3600_v51  ;;  %v3598_v18 = vadd.f32 %v3488_v50, %v3278_v22 }
 0x5c3   : > { %v4049_v8 = vpack.c.bf16 %v4012_v53, %v4011_v12  ;;  %v8511_v53 = vld [vmem:[%s8789_s2 + $0x1] ss:$0 sm:$0xff]  ;;  %v9158_v12 = vld [vmem:[#allocation20_spill] sm:$0xff] }
 0x5c4   : > { %v3968_v39 = vmul.f32 0.2, %v3872_v36  ;;  %vm3920_vm2 = vcmp.gt.f32.partialorder %v3872_v36, 0.0  ;;  %v3285_v51 = vadd.f32 %v8511_v53, %v9158_v12 }
 0x5c5   : > { %v4172_v30 = vshrl.u32 %v4049_v8, 16  ;;  %v3490_v33 = vpop.permute.xlu1 %3489  ;;  %v3762_v38 = vpop.permute.xlu0 %3761  ;;  %v4175_v21 = vshll.u32 %v4049_v8, 16 }
 0x5c6   : > { %v3599_v43 = vadd.f32 %v3490_v33, %v3279_v20  ;;  %v4016_v4 = vsel %vm3920_vm2, %v3872_v36, %v3968_v39  ;;  %v9159_v20 = vld [vmem:[#allocation18_spill] sm:$0xff] }
 0x5c7   : > { %v4174_v29 = vrot.slane %v4172_v30, 7  ;;  %v4052_v25 = vpack.c.bf16 %v4016_v4, %v4016_v4  ;;  %v3284_v30 = vadd.f32 %v8511_v53, %v9159_v20 }
 0x5c8   : > { %v3871_v62 = vadd.f32 %v3762_v38, %v3599_v43 }
 0x5c9   : > { %v3760_v19 = vpop.permute.xlu1 %3759  ;;  %v3498_v0 = vpop.permute.xlu0 %3497  ;;  %v4181_v59 = vsel %vm2094_vm7, %v4174_v29, %v4179_v2  ;;  %v4177_v45 = vor.u32 %v4175_v21, %v4174_v29  ;;  %v4190_v6 = vshll.u32 %v4052_v25, 16 }
 0x5ca   : > { %v3967_v15 = vmul.f32 0.2, %v3871_v62  ;;  %v3870_v27 = vadd.f32 %v3760_v19, %v3598_v18  ;;  %4279 = vrot.lane.b32.xlu1 %v4181_v59, %s5746_s18  ;;  %vm3919_vm3 = vcmp.gt.f32.partialorder %v3871_v62, 0.0  ;;  %v3603_v60 = vadd.f32 %v3498_v0, %v3283_v32 }
 0x5cb   : > { %4277 = vrot.lane.b32.xlu0 %v4177_v45, %s5746_s18 }
 0x5cc   : > { %vm3918_vm5 = vcmp.gt.f32.partialorder %v3870_v27, 0.0  ;;  %v3966_v13 = vmul.f32 0.2, %v3870_v27  ;;  %v4015_v26 = vsel %vm3919_vm3, %v3871_v62, %v3967_v15 }
 0x5cd   : > { %v3770_v11 = vpop.permute.xlu1 %3769  ;;  %v3494_v41 = vpop.permute.xlu0 %3493 }
 0x5ce   : > { %v4014_v24 = vsel %vm3918_vm5, %v3870_v27, %v3966_v13  ;;  %v3875_v57 = vadd.f32 %v3770_v11, %v3603_v60  ;;  %v3601_v16 = vadd.f32 %v3494_v41, %v3281_v14  ;;  %v3286_v11 = vadd.f32 %v8511_v53, %v8131_v23 }
 0x5cf   : > { %v4051_v9 = vpack.c.bf16 %v4015_v26, %v4014_v24  ;;  %vm5000_vm5 = vcmask 25600  }
 0x5d0   : > { %v3971_v58 = vmul.f32 0.2, %v3875_v57  ;;  %vm3923_vm6 = vcmp.gt.f32.partialorder %v3875_v57, 0.0 }
 0x5d1   : > { %v4183_v47 = vshrl.u32 %v4051_v9, 16  ;;  %v3496_v52 = vpop.permute.xlu1 %3495  ;;  %v3768_v35 = vpop.permute.xlu0 %3767  ;;  %v4186_v63 = vshll.u32 %v4051_v9, 16 }
 0x5d2   : > { %v3602_v49 = vadd.f32 %v3496_v52, %v3282_v3  ;;  %v4019_v44 = vsel %vm3923_vm6, %v3875_v57, %v3971_v58  ;;  %vm4996_vm6 = vcmask 31746  }
 0x5d3   : > { %v4185_v5 = vrot.slane %v4183_v47, 7  ;;  %v4054_v38 = vpack.c.bf16 %v4019_v44, %v4019_v44 }
 0x5d4   : > { %v3874_v61 = vadd.f32 %v3768_v35, %v3602_v49 }
 0x5d5   : > { %v3766_v31 = vpop.permute.xlu1 %3765  ;;  %v3500_v34 = vpop.permute.xlu0 %3499  ;;  %v4192_v55 = vsel %vm2094_vm7, %v4185_v5, %v4190_v6  ;;  %v4188_v17 = vor.u32 %v4186_v63, %v4185_v5  ;;  %v4201_v62 = vshll.u32 %v4054_v38, 16 }
 0x5d6   : > { %v3970_v48 = vmul.f32 0.2, %v3874_v61  ;;  %v3873_v40 = vadd.f32 %v3766_v31, %v3601_v16  ;;  %4283 = vrot.lane.b32.xlu1 %v4192_v55, %s5746_s18  ;;  %vm3922_vm8 = vcmp.gt.f32.partialorder %v3874_v61, 0.0  ;;  %v3604_v22 = vadd.f32 %v3500_v34, %v3284_v30  ;;  %v9160_v16 = vld [vmem:[#allocation24_spill] sm:$0xff] }
 0x5d7   : > { %4281 = vrot.lane.b32.xlu0 %v4188_v17, %s5746_s18 }
 0x5d8   : > { %vm3921_vm9 = vcmp.gt.f32.partialorder %v3873_v40, 0.0  ;;  %v3969_v50 = vmul.f32 0.2, %v3873_v40  ;;  %v4018_v36 = vsel %vm3922_vm8, %v3874_v61, %v3970_v48  ;;  %v3288_v61 = vadd.f32 %v8511_v53, %v9160_v16 }
 0x5d9   : > { %v3502_v42 = vpop.permute.xlu1 %3501  ;;  %v3774_v8 = vpop.permute.xlu0 %3773  ;;  %vm4998_vm8 = vcmask 31744  }
 0x5da   : > { %v4017_v54 = vsel %vm3921_vm9, %v3873_v40, %v3969_v50  ;;  %v3605_v33 = vadd.f32 %v3502_v42, %v3285_v51  ;;  %v9161_v40 = vld [vmem:[#allocation21_spill] sm:$0xff] }
 0x5db   : > { %v4053_v37 = vpack.c.bf16 %v4018_v36, %v4017_v54  ;;  %v3287_v44 = vadd.f32 %v8511_v53, %v9161_v40 }
 0x5dc   : > { %v3877_v43 = vadd.f32 %v3774_v8, %v3605_v33 }
 0x5dd   : > { %v4194_v2 = vshrl.u32 %v4053_v37, 16  ;;  %v3772_v21 = vpop.permute.xlu1 %3771  ;;  %v4238_v29 = vpop.permute.xlu0 %4237  ;;  %v4197_v19 = vshll.u32 %v4053_v37, 16 }
 0x5de   : > { %v3973_v39 = vmul.f32 0.2, %v3877_v43  ;;  %v3876_v18 = vadd.f32 %v3772_v21, %v3604_v22  ;;  %4334 = vst.msk [vmem:[#allocation2 + $0x10] sm:$0xfe] %vm4333_vm10, %v4238_v29  ;;  %vm3925_vm12 = vcmp.gt.f32.partialorder %v3877_v43, 0.0 }
 0x5df   : > { %v4196_v0 = vrot.slane %v4194_v2, 7 }
 0x5e0   : > { %vm3924_vm13 = vcmp.gt.f32.partialorder %v3876_v18, 0.0  ;;  %v3972_v59 = vmul.f32 0.2, %v3876_v18  ;;  %v4021_v13 = vsel %vm3925_vm12, %v3877_v43, %v3973_v39  ;;  %v3289_v43 = vadd.f32 %v8511_v53, %v8171_v46 }
 0x5e1   : > { %v4240_v45 = vpop.permute.xlu1 %4239  ;;  %v3504_v15 = vpop.permute.xlu0 %3503  ;;  %v4203_v27 = vsel %vm2094_vm7, %v4196_v0, %v4201_v62  ;;  %v4199_v4 = vor.u32 %v4197_v19, %v4196_v0 }
 0x5e2   : > { %v4020_v32 = vsel %vm3924_vm13, %v3876_v18, %v3972_v59  ;;  %4336 = vst.msk [vmem:[#allocation2 + $0x18] sm:$0x1] %vm4335_vm11, %v4240_v45  ;;  %4287 = vrot.lane.b32.xlu1 %v4203_v27, %s5746_s18  ;;  %v3606_v26 = vadd.f32 %v3504_v15, %v3286_v11 }
 0x5e3   : > { %v4055_v41 = vpack.c.bf16 %v4021_v13, %v4020_v32  ;;  %4285 = vrot.lane.b32.xlu0 %v4199_v4, %s5746_s18 }
 0x5e5   : > { %v4205_v24 = vshrl.u32 %v4055_v41, 16  ;;  %v3776_v60 = vpop.permute.xlu1 %3775  ;;  %v4242_v25 = vpop.permute.xlu0 %4241  ;;  %v4369_v9 = vld [vmem:[#allocation2 + $0x10] sm:$0xff]  ;;  %v4208_v3 = vshll.u32 %v4055_v41, 16 }
 0x5e6   : > { %v3878_v57 = vadd.f32 %v3776_v60, %v3606_v26  ;;  %4337 = vst.msk [vmem:[#allocation2 + $0x20] sm:$0xfe] %vm4333_vm10, %v4242_v25  ;;  %5511 = vmatprep.mubr.bf16.mxu0 %v4369_v9  ;;  %v3291_v60 = vadd.f32 %v8511_v53, %v8241_v7 }
 0x5e7   : > { %v4207_v1 = vrot.slane %v4205_v24, 7 }
 0x5e8   : > { %vm3926_vm14 = vcmp.gt.f32.partialorder %v3878_v57, 0.0  ;;  %v3974_v47 = vmul.f32 0.2, %v3878_v57 }
 0x5e9   : > { %v4244_v52 = vpop.permute.xlu1 %4243  ;;  %v3506_v23 = vpop.permute.xlu0 %3505  ;;  %v4370_v35 = vld [vmem:[#allocation2 + $0x18] sm:$0xff]  ;;  %v4210_v56 = vor.u32 %v4208_v3, %v4207_v1 }
 0x5ea   : > { %v4022_v14 = vsel %vm3926_vm14, %v3878_v57, %v3974_v47  ;;  %4338 = vst.msk [vmem:[#allocation2 + $0x28] sm:$0x1] %vm4335_vm11, %v4244_v52  ;;  %5512 = vmatmul.mubr.bf16.gmra.mrb[40].mxu0 %v4370_v35  ;;  %v3607_v12 = vadd.f32 %v3506_v23, %v3287_v44  ;;  %v3290_v47 = vadd.f32 %v8511_v53, %v8237_v10 }
 0x5eb   : > { %v4056_v49 = vpack.c.bf16 %v4022_v14, %v4022_v14  ;;  %4289 = vrot.lane.b32.xlu0 %v4210_v56, %s5746_s18 }
 0x5ed   : > { %v4212_v6 = vshll.u32 %v4056_v49, 16  ;;  %v3508_v63 = vpop.permute.xlu1 %3507  ;;  %v4246_v5 = vpop.permute.xlu0 %4245  ;;  %v4371_v58 = vld [vmem:[#allocation2 + $0x20] sm:$0xff] }
 0x5ee   : > { %4339 = vst.msk [vmem:[#allocation2 + $0x30] sm:$0xfe] %vm4333_vm10, %v4246_v5  ;;  %5515 = vmatprep.mubr.bf16.mxu0 %v4371_v58  ;;  %v3608_v34 = vadd.f32 %v3508_v63, %v3288_v61  ;;  %v3292_v61 = vadd.f32 %v8511_v53, %v8235_v28 }
 0x5ef   : > { %v4214_v31 = vsel %vm2094_vm7, %v4207_v1, %v4212_v6 }
 0x5f0   : > { %4291 = vrot.lane.b32.xlu1 %v4214_v31, %s5746_s18 }
 0x5f1   : > { %v4248_v55 = vpop.permute.xlu1 %4247  ;;  %v3780_v17 = vpop.permute.xlu0 %3779  ;;  %v4372_v48 = vld [vmem:[#allocation2 + $0x28] sm:$0xff] }
 0x5f2   : > { %4340 = vst.msk [vmem:[#allocation2 + $0x38] sm:$0x1] %vm4335_vm11, %v4248_v55  ;;  %v3880_v50 = vadd.f32 %v3780_v17, %v3608_v34  ;;  %5516 = vmatmul.mubr.bf16.gmra.mrb[44].mxu0 %v4372_v48 }
 0x5f4   : > { %v3976_v36 = vmul.f32 0.2, %v3880_v50  ;;  %vm3928_vm15 = vcmp.gt.f32.partialorder %v3880_v50, 0.0 }
 0x5f5   : > { %v3778_v51 = vpop.permute.xlu1 %3777  ;;  %v4250_v42 = vpop.permute.xlu0 %4249  ;;  %v4373_v8 = vld [vmem:[#allocation2 + $0x30] sm:$0xff] }
 0x5f6   : > { %v3879_v54 = vadd.f32 %v3778_v51, %v3607_v12  ;;  %4341 = vst.msk [vmem:[#allocation2 + $0x40] sm:$0xfe] %vm4333_vm10, %v4250_v42  ;;  %5519 = vmatprep.mubr.bf16.mxu0 %v4373_v8  ;;  %v4024_v37 = vsel %vm3928_vm15, %v3880_v50, %v3976_v36 }
 0x5f8   : > { %vm3927_vm0 = vcmp.gt.f32.partialorder %v3879_v54, 0.0  ;;  %v3975_v20 = vmul.f32 0.2, %v3879_v54 }
 0x5f9   : > { %v4252_v30 = vpop.permute.xlu1 %4251  ;;  %v3510_v33 = vpop.permute.xlu0 %3509  ;;  %v4374_v38 = vld [vmem:[#allocation2 + $0x38] sm:$0xff] }
 0x5fa   : > { %v4023_v22 = vsel %vm3927_vm0, %v3879_v54, %v3975_v20  ;;  %4342 = vst.msk [vmem:[#allocation2 + $0x48] sm:$0x1] %vm4335_vm11, %v4252_v30  ;;  %5520 = vmatmul.mubr.bf16.gmra.mrb[48].mxu0 %v4374_v38  ;;  %v3609_v21 = vadd.f32 %v3510_v33, %v3289_v43 }
 0x5fb   : > { %v4057_v2 = vpack.c.bf16 %v4024_v37, %v4023_v22 }
 0x5fd   : > { %v4216_v29 = vshrl.u32 %v4057_v2, 16  ;;  %v3782_v39 = vpop.permute.xlu1 %3781  ;;  %v4254_v18 = vpop.permute.xlu0 %4253  ;;  %v4375_v62 = vld [vmem:[#allocation2 + $0x40] sm:$0xff]  ;;  %v4219_v59 = vshll.u32 %v4057_v2, 16 }
 0x5fe   : > { %v3881_v19 = vadd.f32 %v3782_v39, %v3609_v21  ;;  %4343 = vst.msk [vmem:[#allocation2 + $0x50] sm:$0xfe] %vm4333_vm10, %v4254_v18  ;;  %5523 = vmatprep.mubr.bf16.mxu0 %v4375_v62 }
 0x5ff   : > { %v4218_v0 = vrot.slane %v4216_v29, 7 }
 0x600   : > { %vm3929_vm1 = vcmp.gt.f32.partialorder %v3881_v19, 0.0  ;;  %v3977_v45 = vmul.f32 0.2, %v3881_v19 }
 0x601   : > { %v4256_v15 = vpop.permute.xlu1 %4255  ;;  %v3512_v27 = vpop.permute.xlu0 %3511  ;;  %v4376_v4 = vld [vmem:[#allocation2 + $0x48] sm:$0xff]  ;;  %v4221_v13 = vor.u32 %v4219_v59, %v4218_v0 }
 0x602   : > { %v4025_v46 = vsel %vm3929_vm1, %v3881_v19, %v3977_v45  ;;  %4344 = vst.msk [vmem:[#allocation2 + $0x58] sm:$0x1] %vm4335_vm11, %v4256_v15  ;;  %5524 = vmatmul.mubr.bf16.gmra.mrb[52].mxu0 %v4376_v4  ;;  %v3610_v23 = vadd.f32 %v3512_v27, %v3290_v47 }
 0x603   : > { %v4058_v32 = vpack.c.bf16 %v4025_v46, %v4025_v46  ;;  %4293 = vrot.lane.b32.xlu0 %v4221_v13, %s5746_s18 }
 0x605   : > { %v4223_v11 = vshll.u32 %v4058_v32, 16  ;;  %v3514_v41 = vpop.permute.xlu1 %3513  ;;  %v4258_v26 = vpop.permute.xlu0 %4257  ;;  %v4377_v24 = vld [vmem:[#allocation2 + $0x50] sm:$0xff] }
 0x606   : > { %4345 = vst.msk [vmem:[#allocation2 + $0x60] sm:$0xfe] %vm4333_vm10, %v4258_v26  ;;  %5527 = vmatprep.mubr.bf16.mxu0 %v4377_v24  ;;  %v3611_v9 = vadd.f32 %v3514_v41, %v3291_v60 }
 0x607   : > { %v4225_v25 = vsel %vm2094_vm7, %v4218_v0, %v4223_v11 }
 0x608   : > { %4295 = vrot.lane.b32.xlu1 %v4225_v25, %s5746_s18 }
 0x609   : > { %v4260_v57 = vpop.permute.xlu1 %4259  ;;  %v3786_v1 = vpop.permute.xlu0 %3785  ;;  %v4378_v3 = vld [vmem:[#allocation2 + $0x58] sm:$0xff] }
 0x60a   : > { %4346 = vst.msk [vmem:[#allocation2 + $0x68] sm:$0x1] %vm4335_vm11, %v4260_v57  ;;  %v3883_v52 = vadd.f32 %v3786_v1, %v3611_v9  ;;  %5528 = vmatmul.mubr.bf16.gmra.mrb[56].mxu0 %v4378_v3 }
 0x60c   : > { %v3979_v14 = vmul.f32 0.2, %v3883_v52  ;;  %vm3931_vm4 = vcmp.gt.f32.partialorder %v3883_v52, 0.0 }
 0x60d   : > { %v3784_v7 = vpop.permute.xlu1 %3783  ;;  %v4262_v35 = vpop.permute.xlu0 %4261  ;;  %v4379_v56 = vld [vmem:[#allocation2 + $0x60] sm:$0xff] }
 0x60e   : > { %v3882_v49 = vadd.f32 %v3784_v7, %v3610_v23  ;;  %4347 = vst.msk [vmem:[#allocation2 + $0x70] sm:$0xfe] %vm4333_vm10, %v4262_v35  ;;  %5531 = vmatprep.mubr.bf16.mxu0 %v4379_v56  ;;  %v4027_v10 = vsel %vm3931_vm4, %v3883_v52, %v3979_v14  ;;  %v4401_v56 = vld [vmem:[#allocation2 + $0x110] sm:$0xff] }
 0x610   : > { %vm3930_vm2 = vcmp.gt.f32.partialorder %v3882_v49, 0.0  ;;  %v3978_v6 = vmul.f32 0.2, %v3882_v49 }
 0x611   : > { %v4264_v63 = vpop.permute.xlu1 %4263  ;;  %v3516_v5 = vpop.permute.xlu0 %3515  ;;  %v4380_v58 = vld [vmem:[#allocation2 + $0x68] sm:$0xff] }
 0x612   : > { %v4026_v16 = vsel %vm3930_vm2, %v3882_v49, %v3978_v6  ;;  %4348 = vst.msk [vmem:[#allocation2 + $0x78] sm:$0x1] %vm4335_vm11, %v4264_v63  ;;  %5532 = vmatmul.mubr.bf16.gmra.mrb[60].mxu0 %v4380_v58  ;;  %v3612_v34 = vadd.f32 %v3516_v5, %v3292_v61  ;;  %v4402_v49 = vld [vmem:[#allocation2 + $0x118] sm:$0xff]  ;;  %v8578_v6 = vld [vmem:[%s8791_s4] ss:$0 sm:$0xff]  ;;  %v5668_v63 = vld [vmem:[%s5810_s30 + $0x8] sm:$0xff] }
 0x613   : > { %v4059_v31 = vpack.c.bf16 %v4027_v10, %v4026_v16  ;;  %v4853_v5 = vrot.slane %v5668_v63, 6  ;;  %v5669_v58 = vld [vmem:[%s5810_s30] sm:$0xff] }
 0x614   : > { %v4852_v10 = vrot.slane %v5669_v58, 6 }
 0x615   : > { %v4227_v55 = vshrl.u32 %v4059_v31, 16  ;;  %v3788_v17 = vpop.permute.xlu1 %3787  ;;  %v4381_v48 = vld [vmem:[#allocation2 + $0x70] sm:$0xff]  ;;  %v4230_v50 = vshll.u32 %v4059_v31, 16 }
 0x616   : > { %v3884_v40 = vadd.f32 %v3788_v17, %v3612_v34  ;;  %5535 = vmatprep.mubr.bf16.mxu0 %v4381_v48 }
 0x617   : > { %v4229_v44 = vrot.slane %v4227_v55, 7 }
 0x618   : > { %vm3932_vm3 = vcmp.gt.f32.partialorder %v3884_v40, 0.0  ;;  %v3980_v12 = vmul.f32 0.2, %v3884_v40 }
 0x619   : > { %v4268_v51 = vpop.permute.xlu1 %4267  ;;  %v4266_v42 = vpop.permute.xlu0 %4265  ;;  %v4382_v8 = vld [vmem:[#allocation2 + $0x78] sm:$0xff]  ;;  %v4232_v36 = vor.u32 %v4230_v50, %v4229_v44 }
 0x61a   : > { %v4028_v54 = vsel %vm3932_vm3, %v3884_v40, %v3980_v12  ;;  %4350 = vst.msk [vmem:[#allocation2 + $0x88] sm:$0x1] %vm4335_vm11, %v4268_v51  ;;  %5536 = vmatmul.mubr.bf16.gmra.mrb[64].mxu0 %v4382_v8  ;;  %v5670_v51 = vld [vmem:[%s5810_s30 + $0x18] sm:$0xff]  ;;  %v5671_v8 = vld [vmem:[%s5810_s30 + $0x10] sm:$0xff] }
 0x61b   : > { %4349 = vst.msk [vmem:[#allocation2 + $0x80] sm:$0xfe] %vm4333_vm10, %v4266_v42  ;;  %v4060_v28 = vpack.c.bf16 %v4028_v54, %v4028_v54  ;;  %4297 = vrot.lane.b32.xlu0 %v4232_v36, %s5746_s18  ;;  %v4856_v42 = vrot.slane %v5670_v51, 6  ;;  %v4855_v36 = vrot.slane %v5671_v8, 6 }
 0x61d   : > { %v4234_v53 = vshll.u32 %v4060_v28, 16 }
 0x61f   : > { %v4236_v20 = vsel %vm2094_vm7, %v4229_v44, %v4234_v53  ;;  %vm4851_vm7 = vcmask 1041408  }
 0x620   : > { %4299 = vrot.lane.b32.xlu1 %v4236_v20, %s5746_s18  ;;  %v4854_v40 = vsel %vm4851_vm7, %v4852_v10, %v4853_v5 }
 0x621   : > { %v4384_v33 = vld [vmem:[#allocation2 + $0x88] sm:$0xff] }
 0x622   : > { %v4383_v30 = vld [vmem:[#allocation2 + $0x80] sm:$0xff] }
 0x623   : > { %5539 = vmatprep.mubr.bf16.mxu0 %v4383_v30 }
 0x624   : > { %5540 = vmatmul.mubr.bf16.gmra.mrb[68].mxu0 %v4384_v33  ;;  %v4272_v38 = vpop.permute.xlu1 %4271 }
 0x625   : > { %4352 = vst.msk [vmem:[#allocation2 + $0x98] sm:$0x1] %vm4335_vm11, %v4272_v38  ;;  %v4270_v37 = vpop.permute.xlu0 %4269 }
 0x626   : > { %4351 = vst.msk [vmem:[#allocation2 + $0x90] sm:$0xfe] %vm4333_vm10, %v4270_v37  ;;  %v4857_v37 = vsel %vm4851_vm7, %v4855_v36, %v4856_v42 }
 0x62c   : > { %v4386_v43 = vld [vmem:[#allocation2 + $0x98] sm:$0xff] }
 0x62d   : > { %v4385_v22 = vld [vmem:[#allocation2 + $0x90] sm:$0xff] }
 0x62e   : > { %5543 = vmatprep.mubr.bf16.mxu0 %v4385_v22 }
 0x62f   : > { %5544 = vmatmul.mubr.bf16.gmra.mrb[72].mxu0 %v4386_v43 }
 0x630   : > { %v4276_v2 = vpop.permute.xlu1 %4275 }
 0x631   : > { %4354 = vst.msk [vmem:[#allocation2 + $0xa8] sm:$0x1] %vm4335_vm11, %v4276_v2  ;;  %v4274_v21 = vpop.permute.xlu0 %4273 }
 0x632   : > { %4353 = vst.msk [vmem:[#allocation2 + $0xa0] sm:$0xfe] %vm4333_vm10, %v4274_v21  ;;  %v5672_v21 = vld [vmem:[%s5810_s30 + $0x28] sm:$0xff] }
 0x637   : > { %v5509_v29 = vpop.f32.mrb[36].mxu0 }
 0x638   : > { %v4501_v18 = vpop.f32.mrb[37].mxu0  ;;  %v4388_v62 = vld [vmem:[#allocation2 + $0xa8] sm:$0xff]  ;;  %v4859_v29 = vrot.slane %v5672_v21, 6 }
 0x639   : > { %v4387_v39 = vld [vmem:[#allocation2 + $0xa0] sm:$0xff]  ;;  %v5510_v19 = vpop.f32.mrb[38].mxu0 }
 0x63a   : > { %5547 = vmatprep.mubr.bf16.mxu0 %v4387_v39  ;;  %v4503_v0 = vpop.f32.mrb[39].mxu0  ;;  %v5673_v39 = vld [vmem:[%s5810_s30 + $0x20] sm:$0xff] }
 0x63b   : > { %5548 = vmatmul.mubr.bf16.gmra.mrb[76].mxu0 %v4388_v62  ;;  %v4858_v18 = vrot.slane %v5673_v39, 6 }
 0x63c   : > { %v4280_v59 = vpop.permute.xlu1 %4279 }
 0x63d   : > { %4356 = vst.msk [vmem:[#allocation2 + $0xb8] sm:$0x1] %vm4335_vm11, %v4280_v59  ;;  %v4278_v45 = vpop.permute.xlu0 %4277 }
 0x63e   : > { %4355 = vst.msk [vmem:[#allocation2 + $0xb0] sm:$0xfe] %vm4333_vm10, %v4278_v45 }
 0x644   : > { %v4390_v27 = vld [vmem:[#allocation2 + $0xb8] sm:$0xff] }
 0x645   : > { %v4389_v15 = vld [vmem:[#allocation2 + $0xb0] sm:$0xff] }
 0x646   : > { %5551 = vmatprep.mubr.bf16.mxu0 %v4389_v15 }
 0x647   : > { %5552 = vmatmul.mubr.bf16.gmra.mrb[80].mxu0 %v4390_v27 }
 0x648   : > { %v4284_v4 = vpop.permute.xlu1 %4283 }
 0x649   : > { %4358 = vst.msk [vmem:[#allocation2 + $0xc8] sm:$0x1] %vm4335_vm11, %v4284_v4  ;;  %v4282_v13 = vpop.permute.xlu0 %4281  ;;  %v4860_v4 = vsel %vm4851_vm7, %v4858_v18, %v4859_v29 }
 0x64a   : > { %4357 = vst.msk [vmem:[#allocation2 + $0xc0] sm:$0xfe] %vm4333_vm10, %v4282_v13 }
 0x650   : > { %v4392_v32 = vld [vmem:[#allocation2 + $0xc8] sm:$0xff] }
 0x651   : > { %v4391_v46 = vld [vmem:[#allocation2 + $0xc0] sm:$0xff] }
 0x652   : > { %5555 = vmatprep.mubr.bf16.mxu0 %v4391_v46 }
 0x653   : > { %5556 = vmatmul.mubr.bf16.gmra.mrb[84].mxu0 %v4392_v32 }
 0x654   : > { %v4288_v11 = vpop.permute.xlu1 %4287 }
 0x655   : > { %4360 = vst.msk [vmem:[#allocation2 + $0xd8] sm:$0x1] %vm4335_vm11, %v4288_v11  ;;  %v4286_v41 = vpop.permute.xlu0 %4285  ;;  %v5674_v11 = vld [vmem:[%s5810_s30 + $0x38] sm:$0xff] }
 0x656   : > { %4359 = vst.msk [vmem:[#allocation2 + $0xd0] sm:$0xfe] %vm4333_vm10, %v4286_v41  ;;  %v4862_v41 = vrot.slane %v5674_v11, 6 }
 0x65c   : > { %v4394_v60 = vld [vmem:[#allocation2 + $0xd8] sm:$0xff] }
 0x65d   : > { %v4290_v26 = vpop.permute.xlu0 %4289  ;;  %v4393_v24 = vld [vmem:[#allocation2 + $0xd0] sm:$0xff] }
 0x65e   : > { %4361 = vst.msk [vmem:[#allocation2 + $0xe0] sm:$0xfe] %vm4333_vm10, %v4290_v26  ;;  %5559 = vmatprep.mubr.bf16.mxu0 %v4393_v24  ;;  %v5675_v26 = vld [vmem:[%s5810_s30 + $0x30] sm:$0xff] }
 0x65f   : > { %5560 = vmatmul.mubr.bf16.gmra.mrb[88].mxu0 %v4394_v60  ;;  %v4861_v24 = vrot.slane %v5675_v26, 6 }
 0x662   : > { %v4292_v25 = vpop.permute.xlu1 %4291 }
 0x663   : > { %4362 = vst.msk [vmem:[#allocation2 + $0xe8] sm:$0x1] %vm4335_vm11, %v4292_v25 }
 0x665   : > { %v4395_v9 = vld [vmem:[#allocation2 + $0xe0] sm:$0xff] }
 0x666   : > { %5563 = vmatprep.mubr.bf16.mxu0 %v4395_v9 }
 0x66a   : > { %v4396_v57 = vld [vmem:[#allocation2 + $0xe8] sm:$0xff] }
 0x66b   : > { %5564 = vmatmul.mubr.bf16.gmra.mrb[92].mxu0 %v4396_v57 }
 0x675   : > { %v4294_v1 = vpop.permute.xlu0 %4293 }
 0x676   : > { %4363 = vst.msk [vmem:[#allocation2 + $0xf0] sm:$0xfe] %vm4333_vm10, %v4294_v1 }
 0x67a   : > { %v4296_v3 = vpop.permute.xlu1 %4295 }
 0x67b   : > { %4364 = vst.msk [vmem:[#allocation2 + $0xf8] sm:$0x1] %vm4335_vm11, %v4296_v3 }
 0x67d   : > { %v4397_v47 = vld [vmem:[#allocation2 + $0xf0] sm:$0xff] }
 0x67e   : > { %5567 = vmatprep.mubr.bf16.mxu0 %v4397_v47 }
 0x682   : > { %v4398_v52 = vld [vmem:[#allocation2 + $0xf8] sm:$0xff] }
 0x683   : > { %5568 = vmatmul.mubr.bf16.gmra.mrb[96].mxu0 %v4398_v52  ;;  %v4863_v52 = vsel %vm4851_vm7, %v4861_v24, %v4862_v41 }
 0x68d   : > { %v4298_v23 = vpop.permute.xlu0 %4297 }
 0x68e   : > { %4365 = vst.msk [vmem:[#allocation2 + $0x100] sm:$0xfe] %vm4333_vm10, %v4298_v23 }
 0x692   : > { %v4300_v7 = vpop.permute.xlu1 %4299 }
 0x693   : > { %4366 = vst.msk [vmem:[#allocation2 + $0x108] sm:$0x1] %vm4335_vm11, %v4300_v7 }
 0x695   : > { %v4399_v35 = vld [vmem:[#allocation2 + $0x100] sm:$0xff] }
 0x696   : > { %5571 = vmatprep.mubr.bf16.mxu0 %v4399_v35 }
 0x69a   : > { %v4400_v14 = vld [vmem:[#allocation2 + $0x108] sm:$0xff] }
 0x69b   : > { %5572 = vmatmul.mubr.bf16.gmra.mrb[100].mxu0 %v4400_v14 }
 0x69c   : > { %5575 = vmatprep.mubr.bf16.mxu0 %v4401_v56  ;;  %v5676_v56 = vld [vmem:[%s5810_s30 + $0x48] sm:$0xff] }
 0x69d   : > { %v4865_v14 = vrot.slane %v5676_v56, 6 }
 0x6a3   : > { %5576 = vmatmul.mubr.bf16.gmra.mrb[104].mxu0 %v4402_v49  ;;  %v5677_v49 = vld [vmem:[%s5810_s30 + $0x40] sm:$0xff] }
 0x6a4   : > { %v4864_v63 = vrot.slane %v5677_v49, 6 }
 0x6bd   : > { %v5513_v16 = vpop.f32.mrb[40].mxu0 }
 0x6be   : > { %v4773_v61 = vadd.f32 %v5513_v16, %v8578_v6  ;;  %v4513_v31 = vpop.f32.mrb[41].mxu0 }
 0x6bf   : > { %v4771_v34 = vadd.f32 %v8578_v6, %v4513_v31  ;;  %v5514_v55 = vpop.f32.mrb[42].mxu0 }
 0x6c0   : > { %v4950_v17 = vadd.f32 %v4853_v5, %v4773_v61  ;;  %v4516_v48 = vpop.f32.mrb[43].mxu0  ;;  %v4866_v55 = vsel %vm4851_vm7, %v4864_v63, %v4865_v14 }
 0x6c1   : > { %v4948_v44 = vadd.f32 %v4852_v10, %v4771_v34  ;;  %v4772_v50 = vadd.f32 %v8578_v6, %v4516_v48 }
 0x6c2   : > { %5001 = vst.msk [vmem:[%s5815_s8 + $0xe] sm:$0x3] %vm5000_vm5, %v4950_v17 }
 0x6c3   : > { %4997 = vst.msk [vmem:[%s5815_s8 - $0x2] sm:$0xfc] %vm4996_vm6, %v4948_v44  ;;  %v4949_v12 = vadd.f32 %v4854_v40, %v4772_v50  ;;  %v5678_v44 = vld [vmem:[%s5810_s30 + $0x58] sm:$0xff] }
 0x6c4   : > { %v4868_v50 = vrot.slane %v5678_v44, 6 }
 0x6c5   : > { %4999 = vst.msk [vmem:[%s5815_s8 + $0x6] sm:$0xff] %vm4998_vm8, %v4949_v12  ;;  %v5517_v54 = vpop.f32.mrb[44].mxu0  ;;  %v5679_v12 = vld [vmem:[%s5810_s30 + $0x50] sm:$0xff] }
 0x6c6   : > { %v4776_v28 = vadd.f32 %v5517_v54, %v8578_v6  ;;  %v4528_v53 = vpop.f32.mrb[45].mxu0  ;;  %v4867_v51 = vrot.slane %v5679_v12, 6 }
 0x6c7   : > { %v4774_v20 = vadd.f32 %v8578_v6, %v4528_v53  ;;  %v5518_v30 = vpop.f32.mrb[46].mxu0 }
 0x6c8   : > { %v4953_v33 = vadd.f32 %v4856_v42, %v4776_v28  ;;  %v4531_v38 = vpop.f32.mrb[47].mxu0  ;;  %v4869_v30 = vsel %vm4851_vm7, %v4867_v51, %v4868_v50 }
 0x6c9   : > { %v4951_v22 = vadd.f32 %v4855_v36, %v4774_v20  ;;  %v4775_v43 = vadd.f32 %v8578_v6, %v4531_v38 }
 0x6ca   : > { %5004 = vst.msk [vmem:[%s5815_s8 + $0x1e] sm:$0x3] %vm5000_vm5, %v4953_v33 }
 0x6cb   : > { %5002 = vst.msk [vmem:[%s5815_s8 + $0xe] sm:$0xfc] %vm4996_vm6, %v4951_v22  ;;  %v4952_v2 = vadd.f32 %v4857_v37, %v4775_v43  ;;  %v5680_v22 = vld [vmem:[%s5810_s30 + $0x68] sm:$0xff] }
 0x6cc   : > { %v4871_v43 = vrot.slane %v5680_v22, 6 }
 0x6cd   : > { %5003 = vst.msk [vmem:[%s5815_s8 + $0x16] sm:$0xff] %vm4998_vm8, %v4952_v2  ;;  %v5521_v62 = vpop.f32.mrb[48].mxu0  ;;  %v5681_v2 = vld [vmem:[%s5810_s30 + $0x60] sm:$0xff] }
 0x6ce   : > { %v4779_v19 = vadd.f32 %v5521_v62, %v8578_v6  ;;  %v4543_v0 = vpop.f32.mrb[49].mxu0  ;;  %v4870_v21 = vrot.slane %v5681_v2, 6 }
 0x6cf   : > { %v4777_v59 = vadd.f32 %v8578_v6, %v4543_v0  ;;  %v5522_v45 = vpop.f32.mrb[50].mxu0 }
 0x6d0   : > { %v4956_v15 = vadd.f32 %v4859_v29, %v4779_v19  ;;  %v4546_v27 = vpop.f32.mrb[51].mxu0  ;;  %v4872_v45 = vsel %vm4851_vm7, %v4870_v21, %v4871_v43 }
 0x6d1   : > { %v4954_v13 = vadd.f32 %v4858_v18, %v4777_v59  ;;  %v4778_v46 = vadd.f32 %v8578_v6, %v4546_v27 }
 0x6d2   : > { %5007 = vst.msk [vmem:[%s5815_s8 + $0x2e] sm:$0x3] %vm5000_vm5, %v4956_v15 }
 0x6d3   : > { %5005 = vst.msk [vmem:[%s5815_s8 + $0x1e] sm:$0xfc] %vm4996_vm6, %v4954_v13  ;;  %v4955_v32 = vadd.f32 %v4860_v4, %v4778_v46  ;;  %v5682_v13 = vld [vmem:[%s5810_s30 + $0x78] sm:$0xff] }
 0x6d4   : > { %v4874_v46 = vrot.slane %v5682_v13, 6 }
 0x6d5   : > { %5006 = vst.msk [vmem:[%s5815_s8 + $0x26] sm:$0xff] %vm4998_vm8, %v4955_v32  ;;  %v5525_v60 = vpop.f32.mrb[52].mxu0  ;;  %v5683_v32 = vld [vmem:[%s5810_s30 + $0x70] sm:$0xff] }
 0x6d6   : > { %v4782_v25 = vadd.f32 %v5525_v60, %v8578_v6  ;;  %v4558_v9 = vpop.f32.mrb[53].mxu0  ;;  %v4873_v11 = vrot.slane %v5683_v32, 6 }
 0x6d7   : > { %v4780_v57 = vadd.f32 %v8578_v6, %v4558_v9  ;;  %v5526_v1 = vpop.f32.mrb[54].mxu0 }
 0x6d8   : > { %v4959_v3 = vadd.f32 %v4862_v41, %v4782_v25  ;;  %v4561_v47 = vpop.f32.mrb[55].mxu0  ;;  %v4875_v1 = vsel %vm4851_vm7, %v4873_v11, %v4874_v46 }
 0x6d9   : > { %v4957_v23 = vadd.f32 %v4861_v24, %v4780_v57  ;;  %v4781_v7 = vadd.f32 %v8578_v6, %v4561_v47 }
 0x6da   : > { %5010 = vst.msk [vmem:[%s5815_s8 + $0x3e] sm:$0x3] %vm5000_vm5, %v4959_v3 }
 0x6db   : > { %5008 = vst.msk [vmem:[%s5815_s8 + $0x2e] sm:$0xfc] %vm4996_vm6, %v4957_v23  ;;  %v4958_v35 = vadd.f32 %v4863_v52, %v4781_v7  ;;  %v5684_v23 = vld [vmem:[%s5810_s30 + $0x88] sm:$0xff] }
 0x6dc   : > { %v4877_v7 = vrot.slane %v5684_v23, 6 }
 0x6dd   : > { %5009 = vst.msk [vmem:[%s5815_s8 + $0x36] sm:$0xff] %vm4998_vm8, %v4958_v35  ;;  %v5529_v5 = vpop.f32.mrb[56].mxu0  ;;  %v5685_v35 = vld [vmem:[%s5810_s30 + $0x80] sm:$0xff] }
 0x6de   : > { %v4785_v58 = vadd.f32 %v5529_v5, %v8578_v6  ;;  %v4573_v10 = vpop.f32.mrb[57].mxu0  ;;  %v4876_v56 = vrot.slane %v5685_v35, 6 }
 0x6df   : > { %v4783_v16 = vadd.f32 %v8578_v6, %v4573_v10  ;;  %v5530_v61 = vpop.f32.mrb[58].mxu0 }
 0x6e0   : > { %v4962_v31 = vadd.f32 %v4865_v14, %v4785_v58  ;;  %v4576_v34 = vpop.f32.mrb[59].mxu0  ;;  %v4878_v61 = vsel %vm4851_vm7, %v4876_v56, %v4877_v7 }
 0x6e1   : > { %v4960_v17 = vadd.f32 %v4864_v63, %v4783_v16  ;;  %v4784_v48 = vadd.f32 %v8578_v6, %v4576_v34 }
 0x6e2   : > { %5013 = vst.msk [vmem:[%s5815_s8 + $0x4e] sm:$0x3] %vm5000_vm5, %v4962_v31 }
 0x6e3   : > { %5011 = vst.msk [vmem:[%s5815_s8 + $0x3e] sm:$0xfc] %vm4996_vm6, %v4960_v17  ;;  %v4961_v40 = vadd.f32 %v4866_v55, %v4784_v48  ;;  %v5686_v17 = vld [vmem:[%s5810_s30 + $0x98] sm:$0xff] }
 0x6e4   : > { %v4880_v48 = vrot.slane %v5686_v17, 6 }
 0x6e5   : > { %5012 = vst.msk [vmem:[%s5815_s8 + $0x46] sm:$0xff] %vm4998_vm8, %v4961_v40  ;;  %v5533_v42 = vpop.f32.mrb[60].mxu0  ;;  %v5687_v40 = vld [vmem:[%s5810_s30 + $0x90] sm:$0xff] }
 0x6e6   : > { %v4788_v8 = vadd.f32 %v5533_v42, %v8578_v6  ;;  %v4588_v36 = vpop.f32.mrb[61].mxu0  ;;  %v4879_v44 = vrot.slane %v5687_v40, 6 }
 0x6e7   : > { %v4786_v54 = vadd.f32 %v8578_v6, %v4588_v36  ;;  %v5534_v28 = vpop.f32.mrb[62].mxu0 }
 0x6e8   : > { %v4965_v53 = vadd.f32 %v4868_v50, %v4788_v8  ;;  %v4591_v20 = vpop.f32.mrb[63].mxu0  ;;  %v4881_v28 = vsel %vm4851_vm7, %v4879_v44, %v4880_v48 }
 0x6e9   : > { %v4963_v33 = vadd.f32 %v4867_v51, %v4786_v54  ;;  %v4787_v38 = vadd.f32 %v8578_v6, %v4591_v20 }
 0x6ea   : > { %5016 = vst.msk [vmem:[%s5815_s8 + $0x5e] sm:$0x3] %vm5000_vm5, %v4965_v53 }
 0x6eb   : > { %5014 = vst.msk [vmem:[%s5815_s8 + $0x4e] sm:$0xfc] %vm4996_vm6, %v4963_v33  ;;  %v4964_v37 = vadd.f32 %v4869_v30, %v4787_v38  ;;  %v5688_v33 = vld [vmem:[%s5810_s30 + $0xa8] sm:$0xff] }
 0x6ec   : > { %v4883_v38 = vrot.slane %v5688_v33, 6 }
 0x6ed   : > { %5015 = vst.msk [vmem:[%s5815_s8 + $0x56] sm:$0xff] %vm4998_vm8, %v4964_v37  ;;  %v5537_v29 = vpop.f32.mrb[64].mxu0  ;;  %v5689_v37 = vld [vmem:[%s5810_s30 + $0xa0] sm:$0xff] }
 0x6ee   : > { %v4791_v39 = vadd.f32 %v5537_v29, %v8578_v6  ;;  %v4603_v18 = vpop.f32.mrb[65].mxu0  ;;  %v4882_v22 = vrot.slane %v5689_v37, 6 }
 0x6ef   : > { %v4789_v62 = vadd.f32 %v8578_v6, %v4603_v18  ;;  %v5538_v19 = vpop.f32.mrb[66].mxu0 }
 0x6f0   : > { %v4968_v0 = vadd.f32 %v4871_v43, %v4791_v39  ;;  %v4606_v59 = vpop.f32.mrb[67].mxu0  ;;  %v4884_v19 = vsel %vm4851_vm7, %v4882_v22, %v4883_v38 }
 0x6f1   : > { %v4966_v15 = vadd.f32 %v4870_v21, %v4789_v62  ;;  %v4790_v27 = vadd.f32 %v8578_v6, %v4606_v59 }
 0x6f2   : > { %5019 = vst.msk [vmem:[%s5815_s8 + $0x6e] sm:$0x3] %vm5000_vm5, %v4968_v0 }
 0x6f3   : > { %5017 = vst.msk [vmem:[%s5815_s8 + $0x5e] sm:$0xfc] %vm4996_vm6, %v4966_v15  ;;  %v4967_v4 = vadd.f32 %v4872_v45, %v4790_v27  ;;  %v5690_v15 = vld [vmem:[%s5810_s30 + $0xb8] sm:$0xff] }
 0x6f4   : > { %v4886_v27 = vrot.slane %v5690_v15, 6 }
 0x6f5   : > { %5018 = vst.msk [vmem:[%s5815_s8 + $0x66] sm:$0xff] %vm4998_vm8, %v4967_v4  ;;  %v5691_v4 = vld [vmem:[%s5810_s30 + $0xb0] sm:$0xff] }
 0x6f6   : > { %v4885_v13 = vrot.slane %v5691_v4, 6 }
 0x6f7   : > { %v5541_v41 = vpop.f32.mrb[68].mxu0 }
 0x6f8   : > { %v4794_v26 = vadd.f32 %v5541_v41, %v8578_v6  ;;  %v4618_v24 = vpop.f32.mrb[69].mxu0 }
 0x6f9   : > { %v4792_v60 = vadd.f32 %v8578_v6, %v4618_v24  ;;  %v5542_v25 = vpop.f32.mrb[70].mxu0 }
 0x6fa   : > { %v4971_v9 = vadd.f32 %v4874_v46, %v4794_v26  ;;  %v4621_v57 = vpop.f32.mrb[71].mxu0  ;;  %v4887_v25 = vsel %vm4851_vm7, %v4885_v13, %v4886_v27 }
 0x6fb   : > { %v4969_v3 = vadd.f32 %v4873_v11, %v4792_v60  ;;  %v4793_v47 = vadd.f32 %v8578_v6, %v4621_v57 }
 0x6fc   : > { %5022 = vst.msk [vmem:[%s5815_s8 + $0x7e] sm:$0x3] %vm5000_vm5, %v4971_v9 }
 0x6fd   : > { %5020 = vst.msk [vmem:[%s5815_s8 + $0x6e] sm:$0xfc] %vm4996_vm6, %v4969_v3  ;;  %v4970_v52 = vadd.f32 %v4875_v1, %v4793_v47  ;;  %v5692_v3 = vld [vmem:[%s5810_s30 + $0xc8] sm:$0xff] }
 0x6fe   : > { %v4889_v47 = vrot.slane %v5692_v3, 6 }
 0x6ff   : > { %5021 = vst.msk [vmem:[%s5815_s8 + $0x76] sm:$0xff] %vm4998_vm8, %v4970_v52  ;;  %v5693_v52 = vld [vmem:[%s5810_s30 + $0xc0] sm:$0xff] }
 0x700   : > { %v4888_v23 = vrot.slane %v5693_v52, 6 }
 0x702   : > { %v5545_v14 = vpop.f32.mrb[72].mxu0 }
 0x703   : > { %v4797_v49 = vadd.f32 %v5545_v14, %v8578_v6  ;;  %v4633_v63 = vpop.f32.mrb[73].mxu0 }
 0x704   : > { %v4795_v5 = vadd.f32 %v8578_v6, %v4633_v63  ;;  %v5546_v58 = vpop.f32.mrb[74].mxu0 }
 0x705   : > { %v4974_v10 = vadd.f32 %v4877_v7, %v4797_v49  ;;  %v4636_v16 = vpop.f32.mrb[75].mxu0  ;;  %v4890_v58 = vsel %vm4851_vm7, %v4888_v23, %v4889_v47 }
 0x706   : > { %v4972_v31 = vadd.f32 %v4876_v56, %v4795_v5  ;;  %v4796_v34 = vadd.f32 %v8578_v6, %v4636_v16 }
 0x707   : > { %5025 = vst.msk [vmem:[%s5815_s8 + $0x8e] sm:$0x3] %vm5000_vm5, %v4974_v10 }
 0x708   : > { %5023 = vst.msk [vmem:[%s5815_s8 + $0x7e] sm:$0xfc] %vm4996_vm6, %v4972_v31  ;;  %v4973_v55 = vadd.f32 %v4878_v61, %v4796_v34  ;;  %v5694_v31 = vld [vmem:[%s5810_s30 + $0xd8] sm:$0xff] }
 0x709   : > { %v4892_v34 = vrot.slane %v5694_v31, 6 }
 0x70a   : > { %5024 = vst.msk [vmem:[%s5815_s8 + $0x86] sm:$0xff] %vm4998_vm8, %v4973_v55  ;;  %v5695_v55 = vld [vmem:[%s5810_s30 + $0xd0] sm:$0xff] }
 0x70b   : > { %v4891_v17 = vrot.slane %v5695_v55, 6 }
 0x70e   : > { %v5549_v50 = vpop.f32.mrb[76].mxu0 }
 0x70f   : > { %v4800_v12 = vadd.f32 %v5549_v50, %v8578_v6  ;;  %v4648_v51 = vpop.f32.mrb[77].mxu0 }
 0x710   : > { %v4798_v42 = vadd.f32 %v8578_v6, %v4648_v51  ;;  %v5550_v8 = vpop.f32.mrb[78].mxu0 }
 0x711   : > { %v4977_v36 = vadd.f32 %v4880_v48, %v4800_v12  ;;  %v4651_v54 = vpop.f32.mrb[79].mxu0  ;;  %v4893_v8 = vsel %vm4851_vm7, %v4891_v17, %v4892_v34 }
 0x712   : > { %v4975_v53 = vadd.f32 %v4879_v44, %v4798_v42  ;;  %v4799_v20 = vadd.f32 %v8578_v6, %v4651_v54 }
 0x713   : > { %5028 = vst.msk [vmem:[%s5815_s8 + $0x9e] sm:$0x3] %vm5000_vm5, %v4977_v36 }
 0x714   : > { %5026 = vst.msk [vmem:[%s5815_s8 + $0x8e] sm:$0xfc] %vm4996_vm6, %v4975_v53  ;;  %v4976_v30 = vadd.f32 %v4881_v28, %v4799_v20  ;;  %v5696_v53 = vld [vmem:[%s5810_s30 + $0xe8] sm:$0xff] }
 0x715   : > { %v4895_v20 = vrot.slane %v5696_v53, 6 }
 0x716   : > { %5027 = vst.msk [vmem:[%s5815_s8 + $0x96] sm:$0xff] %vm4998_vm8, %v4976_v30  ;;  %v5697_v30 = vld [vmem:[%s5810_s30 + $0xe0] sm:$0xff] }
 0x717   : > { %v4894_v33 = vrot.slane %v5697_v30, 6 }
 0x71a   : > { %v5553_v43 = vpop.f32.mrb[80].mxu0 }
 0x71b   : > { %v4803_v2 = vadd.f32 %v5553_v43, %v8578_v6  ;;  %v4663_v21 = vpop.f32.mrb[81].mxu0 }
 0x71c   : > { %v4801_v29 = vadd.f32 %v8578_v6, %v4663_v21  ;;  %v5554_v39 = vpop.f32.mrb[82].mxu0 }
 0x71d   : > { %v4980_v18 = vadd.f32 %v4883_v38, %v4803_v2  ;;  %v4666_v62 = vpop.f32.mrb[83].mxu0  ;;  %v4896_v39 = vsel %vm4851_vm7, %v4894_v33, %v4895_v20 }
 0x71e   : > { %v4978_v0 = vadd.f32 %v4882_v22, %v4801_v29  ;;  %v4802_v59 = vadd.f32 %v8578_v6, %v4666_v62 }
 0x71f   : > { %5031 = vst.msk [vmem:[%s5815_s8 + $0xae] sm:$0x3] %vm5000_vm5, %v4980_v18 }
 0x720   : > { %5029 = vst.msk [vmem:[%s5815_s8 + $0x9e] sm:$0xfc] %vm4996_vm6, %v4978_v0  ;;  %v4979_v45 = vadd.f32 %v4884_v19, %v4802_v59  ;;  %v5698_v0 = vld [vmem:[%s5810_s30 + $0xf8] sm:$0xff] }
 0x721   : > { %v4898_v59 = vrot.slane %v5698_v0, 6 }
 0x722   : > { %5030 = vst.msk [vmem:[%s5815_s8 + $0xa6] sm:$0xff] %vm4998_vm8, %v4979_v45  ;;  %v5699_v45 = vld [vmem:[%s5810_s30 + $0xf0] sm:$0xff] }
 0x723   : > { %v4897_v15 = vrot.slane %v5699_v45, 6 }
 0x726   : > { %v5557_v46 = vpop.f32.mrb[84].mxu0 }
 0x727   : > { %v4806_v32 = vadd.f32 %v5557_v46, %v8578_v6  ;;  %v4678_v11 = vpop.f32.mrb[85].mxu0 }
 0x728   : > { %v4804_v41 = vadd.f32 %v8578_v6, %v4678_v11  ;;  %v5558_v26 = vpop.f32.mrb[86].mxu0 }
 0x729   : > { %v4983_v24 = vadd.f32 %v4886_v27, %v4806_v32  ;;  %v4681_v60 = vpop.f32.mrb[87].mxu0  ;;  %v4899_v26 = vsel %vm4851_vm7, %v4897_v15, %v4898_v59 }
 0x72a   : > { %v4981_v9 = vadd.f32 %v4885_v13, %v4804_v41  ;;  %v4805_v57 = vadd.f32 %v8578_v6, %v4681_v60 }
 0x72b   : > { %5034 = vst.msk [vmem:[%s5815_s8 + $0xbe] sm:$0x3] %vm5000_vm5, %v4983_v24 }
 0x72c   : > { %5032 = vst.msk [vmem:[%s5815_s8 + $0xae] sm:$0xfc] %vm4996_vm6, %v4981_v9  ;;  %v4982_v1 = vadd.f32 %v4887_v25, %v4805_v57 }
 0x72e   : > { %5033 = vst.msk [vmem:[%s5815_s8 + $0xb6] sm:$0xff] %vm4998_vm8, %v4982_v1 }
 0x732   : > { %v5561_v7 = vpop.f32.mrb[88].mxu0 }
 0x733   : > { %v4809_v35 = vadd.f32 %v5561_v7, %v8578_v6  ;;  %v4693_v56 = vpop.f32.mrb[89].mxu0 }
 0x734   : > { %v4807_v14 = vadd.f32 %v8578_v6, %v4693_v56  ;;  %v5562_v49 = vpop.f32.mrb[90].mxu0 }
 0x735   : > { %v4986_v63 = vadd.f32 %v4889_v47, %v4809_v35  ;;  %v4696_v5 = vpop.f32.mrb[91].mxu0 }
 0x736   : > { %v4984_v10 = vadd.f32 %v4888_v23, %v4807_v14  ;;  %v4808_v16 = vadd.f32 %v8578_v6, %v4696_v5 }
 0x737   : > { %5037 = vst.msk [vmem:[%s5815_s8 + $0xce] sm:$0x3] %vm5000_vm5, %v4986_v63 }
 0x738   : > { %5035 = vst.msk [vmem:[%s5815_s8 + $0xbe] sm:$0xfc] %vm4996_vm6, %v4984_v10  ;;  %v4985_v61 = vadd.f32 %v4890_v58, %v4808_v16 }
 0x73a   : > { %5036 = vst.msk [vmem:[%s5815_s8 + $0xc6] sm:$0xff] %vm4998_vm8, %v4985_v61 }
 0x73e   : > { %v5565_v48 = vpop.f32.mrb[92].mxu0 }
 0x73f   : > { %v4812_v40 = vadd.f32 %v5565_v48, %v8578_v6  ;;  %v4708_v44 = vpop.f32.mrb[93].mxu0 }
 0x740   : > { %v4810_v50 = vadd.f32 %v8578_v6, %v4708_v44  ;;  %v5566_v12 = vpop.f32.mrb[94].mxu0 }
 0x741   : > { %v4989_v51 = vadd.f32 %v4892_v34, %v4812_v40  ;;  %v4711_v42 = vpop.f32.mrb[95].mxu0 }
 0x742   : > { %v4987_v36 = vadd.f32 %v4891_v17, %v4810_v50  ;;  %v4811_v54 = vadd.f32 %v8578_v6, %v4711_v42 }
 0x743   : > { %5040 = vst.msk [vmem:[%s5815_s8 + $0xde] sm:$0x3] %vm5000_vm5, %v4989_v51 }
 0x744   : > { %5038 = vst.msk [vmem:[%s5815_s8 + $0xce] sm:$0xfc] %vm4996_vm6, %v4987_v36  ;;  %v4988_v28 = vadd.f32 %v4893_v8, %v4811_v54 }
 0x746   : > { %5039 = vst.msk [vmem:[%s5815_s8 + $0xd6] sm:$0xff] %vm4998_vm8, %v4988_v28 }
 0x756   : > { %v5569_v38 = vpop.f32.mrb[96].mxu0 }
 0x757   : > { %v4815_v37 = vadd.f32 %v5569_v38, %v8578_v6  ;;  %v4723_v22 = vpop.f32.mrb[97].mxu0 }
 0x758   : > { %v4813_v43 = vadd.f32 %v8578_v6, %v4723_v22  ;;  %v5570_v2 = vpop.f32.mrb[98].mxu0 }
 0x759   : > { %v4992_v21 = vadd.f32 %v4895_v20, %v4815_v37  ;;  %v4726_v29 = vpop.f32.mrb[99].mxu0 }
 0x75a   : > { %v4990_v18 = vadd.f32 %v4894_v33, %v4813_v43  ;;  %v4814_v62 = vadd.f32 %v8578_v6, %v4726_v29 }
 0x75b   : > { %5043 = vst.msk [vmem:[%s5815_s8 + $0xee] sm:$0x3] %vm5000_vm5, %v4992_v21 }
 0x75c   : > { %5041 = vst.msk [vmem:[%s5815_s8 + $0xde] sm:$0xfc] %vm4996_vm6, %v4990_v18  ;;  %v4991_v19 = vadd.f32 %v4896_v39, %v4814_v62 }
 0x75e   : > { %5042 = vst.msk [vmem:[%s5815_s8 + $0xe6] sm:$0xff] %vm4998_vm8, %v4991_v19 }
 0x76e   : > { %v5573_v27 = vpop.f32.mrb[100].mxu0 }
 0x76f   : > { %v4818_v4 = vadd.f32 %v5573_v27, %v8578_v6  ;;  %v4738_v13 = vpop.f32.mrb[101].mxu0 }
 0x770   : > { %v4816_v46 = vadd.f32 %v8578_v6, %v4738_v13  ;;  %v5574_v32 = vpop.f32.mrb[102].mxu0 }
 0x771   : > { %v4995_v11 = vadd.f32 %v4898_v59, %v4818_v4  ;;  %v4741_v41 = vpop.f32.mrb[103].mxu0 }
 0x772   : > { %v4993_v24 = vadd.f32 %v4897_v15, %v4816_v46  ;;  %v4817_v60 = vadd.f32 %v8578_v6, %v4741_v41 }
 0x773   : > { %5046 = vst.msk [vmem:[%s5815_s8 + $0xfe] sm:$0x3] %vm5000_vm5, %v4995_v11 }
 0x774   : > { %5044 = vst.msk [vmem:[%s5815_s8 + $0xee] sm:$0xfc] %vm4996_vm6, %v4993_v24  ;;  %v4994_v25 = vadd.f32 %v4899_v26, %v4817_v60 }
 0x776   : > { %5045 = vst.msk [vmem:[%s5815_s8 + $0xf6] sm:$0xff] %vm4998_vm8, %v4994_v25  ;;  %v5577_v9 = vpop.f32.mrb[104].mxu0 }
 0x777   : > { %v4753_v57 = vpop.f32.mrb[105].mxu0 }
 0x778   : > { %v5578_v1 = vpop.f32.mrb[106].mxu0 }
 0x779   : > { %v4755_v3 = vpop.f32.mrb[107].mxu0 }
 0x77a PF: > { %s15_s22 = sadd.s32 1, %s5738_s22   ;;  %s9162_s18 = smov %s5730_s20 }
 0x77b   : > { %p12_p7 = scmp.ge.s32.totalorder %s15_s22, 6   ;;  %s9163_s19 = smov %s5734_s21 }
 0x77c   : > { %s9164_s20 = smov %s9167_s23  ;;  %s9165_s21 = smov %s9171_s24 }
 0x77d   :  { %14 = sbr.rel (!%p12_p7) target bundleno = 3 (0x3), region = 76 }

</bundles_post_ra>
